<compile_context>
chip_gen: v5e
topology: v5e:2x2
jax: 0.10.0
libtpu: 0.0.40
codegen_flags: <defaults>
</compile_context>

<pallas_src>
import math

import jax
import jax.numpy as jnp
from jax.experimental import pallas as pl
from jax.experimental.pallas import tpu as pltpu


def _round_up(x: int, m: int) -> int:
    return ((x + m - 1) // m) * m


# ----------------------------- Pallas kernel -------------------------------
def _make_specloss_kernel(gamma: float, need_cpx: bool):
    ghalf = 0.5 * float(gamma)
    is_identity = (float(gamma) == 1.0)

    def kernel(yf_ref, sf_ref, basis_hbm, mag_ref, cpx_ref, basis_vmem, dma_sem):
        # One-shot setup: copy the constant DFT basis into single-buffered
        # VMEM scratch and zero the scalar accumulators.
        @pl.when(pl.program_id(0) == 0)
        def _():
            cp = pltpu.make_async_copy(basis_hbm, basis_vmem, dma_sem)
            cp.start()
            cp.wait()
            mag_ref[...] = jnp.zeros_like(mag_ref)
            cpx_ref[...] = jnp.zeros_like(cpx_ref)

        tm = yf_ref.shape[0]
        basis = basis_vmem[...]
        nfp = basis.shape[1] // 2

        # Fused real-DFT for both operands: one wide bf16 MXU matmul per tile
        # (RHS pushed once), f32 accumulation.
        stacked = jnp.concatenate([yf_ref[...], sf_ref[...]], axis=0)  # (2*tm, n_fft)
        ys = jnp.dot(stacked, basis, preferred_element_type=jnp.float32)
        y_re, y_im = ys[:tm, :nfp], ys[:tm, nfp:]
        s_re, s_im = ys[tm:, :nfp], ys[tm:, nfp:]

        eps2 = 1e-24  # (1e-12)^2 clamp on |X|
        y_p2 = jnp.maximum(y_re * y_re + y_im * y_im, eps2)
        s_p2 = jnp.maximum(s_re * s_re + s_im * s_im, eps2)

        if is_identity:
            y_g = jnp.sqrt(y_p2)
            s_g = jnp.sqrt(s_p2)
        else:
            # clamp(|X|, 1e-12)^gamma == max(|X|^2, 1e-24)^(gamma/2)
            y_g = jnp.exp(ghalf * jnp.log(y_p2))
            s_g = jnp.exp(ghalf * jnp.log(s_p2))

        # Magnitude MSE partial: zero-padded rows / freq columns contribute 0.
        d = y_g - s_g
        mag_row = jnp.sum(d * d, axis=1, keepdims=True)           # (tm, 1)
        mag_ref[...] += jnp.sum(mag_row, axis=0, keepdims=True)   # (1, 1)

        if need_cpx:
            # Complex MSE partial: Y' = |Y|^gamma * exp(i*angle(Y))
            #                         = (|Y|^gamma / |Y|) * (re, im)
            if is_identity:
                dr = y_re - s_re
                di = y_im - s_im
            else:
                y_r = y_g * jax.lax.rsqrt(y_p2)
                s_r = s_g * jax.lax.rsqrt(s_p2)
                dr = y_re * y_r - s_re * s_r
                di = y_im * y_r - s_im * s_r
            cpx_row = jnp.sum(dr * dr + di * di, axis=1, keepdims=True)
            cpx_ref[...] += jnp.sum(cpx_row, axis=0, keepdims=True)

    return kernel


# ------------------------------ basis / frames -----------------------------
def _make_basis(n_fft: int, window, dtype):
    """(n_fft, 2*nfp) real-DFT basis WITHOUT the Nyquist bin:
    [window*cos/sqrt(N) | -window*sin/sqrt(N)], each half padded to 128 lanes.
    The Nyquist bin (pure real) is handled exactly in the wrapper so the
    re/im halves stay lane-tight (e.g. 128 instead of 256 lanes at n_fft=256)."""
    n_freq_k = n_fft // 2                   # bins k = 0 .. N/2 - 1
    nfp = _round_up(n_freq_k, 128)
    n = jnp.arange(n_fft, dtype=jnp.float32)[:, None]
    k = jnp.arange(n_freq_k, dtype=jnp.float32)[None, :]
    ang = (2.0 * math.pi / n_fft) * n * k
    wcol = (window.astype(jnp.float32) / math.sqrt(n_fft))[:, None]
    basis = jnp.zeros((n_fft, 2 * nfp), jnp.float32)
    basis = basis.at[:, :n_freq_k].set(jnp.cos(ang) * wcol)
    basis = basis.at[:, nfp:nfp + n_freq_k].set(-jnp.sin(ang) * wcol)
    return basis.astype(dtype), n_freq_k


def _reflect_pad(x2, n_fft: int):
    pad = n_fft // 2
    return jnp.pad(x2, ((0, 0), (pad, pad)), mode="reflect")


def _frames_from_padded(xp, n_fft: int, hop: int, dtype):
    """center=True framing of an already reflect-padded signal -> (B*nf, n_fft)."""
    n_frames = 1 + (xp.shape[-1] - n_fft) // hop
    idx = jnp.arange(n_frames)[:, None] * hop + jnp.arange(n_fft)[None, :]
    # TODO(synk): stream contiguous spans of `xp` straight into the kernel
    # (pl.ANY + manual DMA + hop-shifted VMEM slices) to remove the ~4x
    # hop-induced HBM write/read amplification of this gather (biggest
    # remaining memory-side cost, dominant on v5e's 0.82 TB/s HBM).
    return xp[:, idx].reshape(-1, n_fft).astype(dtype), n_frames


def _nyquist_terms(yp, sp, nyq_vec, hop: int, gamma: float, need_cpx: bool):
    """Exact Nyquist-bin (k=n_fft/2, purely real) loss contributions computed
    from the padded signals with a strided correlation (reads the signal once,
    not the 4x-amplified frames)."""
    def corr(xp):  # y[b, f] = sum_n xp[b, f*hop + n] * nyq_vec[n]
        out = jax.lax.conv_general_dilated(
            xp[:, None, :], nyq_vec[None, None, :],
            window_strides=(hop,), padding="VALID",
            dimension_numbers=("NCH", "OIH", "NCH"))
        return out[:, 0, :]

    y = corr(yp)
    s = corr(sp)
    if gamma != 1.0:
        ya = jnp.maximum(jnp.abs(y), 1e-12) ** gamma
        sa = jnp.maximum(jnp.abs(s), 1e-12) ** gamma
        mag = jnp.sum((ya - sa) ** 2)
        if need_cpx:
            yc = jnp.where(y < 0, -ya, ya)  # |Y|^g * exp(i*angle(Y)), imag == 0
            sc = jnp.where(s < 0, -sa, sa)
            cpx = jnp.sum((yc - sc) ** 2)
        else:
            cpx = jnp.float32(0.0)
    else:
        mag = jnp.sum((jnp.abs(y) - jnp.abs(s)) ** 2)
        cpx = jnp.sum((y - s) ** 2) if need_cpx else jnp.float32(0.0)
    return mag, cpx


# ------------------------------ kernel wrapper ------------------------------
def _spec_loss_partials(yfr, sfr, basis, gamma: float, need_cpx: bool):
    """Run the fused STFT+loss kernel; return scalar (sum_mag_sq, sum_cplx_sq)."""
    m, n_fft = yfr.shape
    two_nfp = basis.shape[1]
    ebytes = jnp.dtype(yfr.dtype).itemsize

    # Per-regime M tile (multiple of 16 keeps the bf16 sublane concat aligned).
    tm_max = 128 if two_nfp >= 512 else 256
    n_tiles = -(-m // tm_max)
    tm = max(16, _round_up(-(-m // n_tiles), 16))
    mp = tm * n_tiles
    if mp != m:
        yfr = jnp.pad(yfr, ((0, mp - m), (0, 0)))
        sfr = jnp.pad(sfr, ((0, mp - m), (0, 0)))

    # VMEM budget: single-buffered basis scratch + double-buffered frame tiles
    # + in-kernel concat temp + f32 matmul output & elementwise temporaries.
    vmem_need = (n_fft * two_nfp * ebytes
                 + 2 * 2 * tm * n_fft * ebytes
                 + 2 * tm * n_fft * ebytes
                 + 4 * (2 * tm * two_nfp * 4)
                 + (1 << 20))
    cp = dict(dimension_semantics=("arbitrary",))
    if vmem_need > (14 << 20):          # v5e scoped default is only 16 MiB
        try:
            phys = getattr(pltpu.get_tpu_info(), "vmem_capacity_bytes", None) \
                or (64 << 20)
        except Exception:
            phys = 64 << 20             # v7x physical VMEM (smallest case)
        cp["vmem_limit_bytes"] = int(min(vmem_need + (8 << 20), phys * 3 // 4))
    # TODO(synk): for very large n_fft (>=2048) add a frequency grid axis so
    # the basis block / elementwise temporaries stay bounded on v7x, and a
    # leading parallel axis to shard M tiles across v7x's 2 TensorCores.

    mag, cpx = pl.pallas_call(
        _make_specloss_kernel(gamma, need_cpx),
        out_shape=(jax.ShapeDtypeStruct((1, 1), jnp.float32),
                   jax.ShapeDtypeStruct((1, 1), jnp.float32)),
        grid_spec=pltpu.PrefetchScalarGridSpec(
            num_scalar_prefetch=0,
            grid=(mp // tm,),
            in_specs=[
                pl.BlockSpec((tm, n_fft), lambda i: (i, 0)),   # input frames
                pl.BlockSpec((tm, n_fft), lambda i: (i, 0)),   # target frames
                pl.BlockSpec(memory_space=pl.ANY),             # basis (stays in HBM)
            ],
            out_specs=[
                pl.BlockSpec((1, 1), lambda i: (0, 0)),        # sum (|Y|^g-|S|^g)^2
                pl.BlockSpec((1, 1), lambda i: (0, 0)),        # sum |Y'-S'|^2
            ],
            scratch_shapes=[
                pltpu.VMEM(basis.shape, basis.dtype),          # single-buffered basis
                pltpu.SemaphoreType.DMA,
            ],
        ),
        compiler_params=pltpu.CompilerParams(**cp),
    )(yfr, sfr, basis)
    return mag[0, 0], cpx[0, 0]


# --------------------------------- module -----------------------------------
class MultResSpecLoss:
    """JAX/Pallas port of the PyTorch MultResSpecLoss forward pass."""

    def __init__(self, n_ffts, gamma=1.0, factor=1.0, f_complex=None,
                 dtype=jnp.bfloat16):
        self.n_ffts = list(n_ffts)
        self.gamma = float(gamma)
        self.f = float(factor)
        self.dtype = dtype
        if f_complex is None or f_complex == 0:
            self.f_complex = None
        elif isinstance(f_complex, (list, tuple)):
            self.f_complex = [float(v) for v in f_complex]
        else:
            self.f_complex = [float(f_complex)] * len(self.n_ffts)

        self._cfg = []
        for n_fft in self.n_ffts:
            nvec = jnp.arange(n_fft, dtype=jnp.float32)
            # periodic hann window (torch.hann_window default)
            win = 0.5 * (1.0 - jnp.cos(2.0 * math.pi * nvec / n_fft))
            basis, _ = _make_basis(n_fft, win, dtype)
            alt = jnp.where(jnp.arange(n_fft) % 2 == 0, 1.0, -1.0)
            nyq_vec = (win * alt / math.sqrt(n_fft)).astype(jnp.float32)
            self._cfg.append((n_fft, n_fft // 4, basis, nyq_vec))

    def __call__(self, input, target):
        *sh, t = input.shape
        y2 = input.reshape(-1, t).astype(jnp.float32)
        s2 = target.reshape(-1, t).astype(jnp.float32)
        need_cpx = self.f_complex is not None
        loss = jnp.float32(0.0)
        for i, (n_fft, hop, basis, nyq_vec) in enumerate(self._cfg):
            assert t > n_fft // 2, "reflect padding requires t > n_fft//2"
            yp = _reflect_pad(y2, n_fft)
            sp = _reflect_pad(s2, n_fft)
            yfr, _ = _frames_from_padded(yp, n_fft, hop, self.dtype)
            sfr, _ = _frames_from_padded(sp, n_fft, hop, self.dtype)
            mag_sum, cpx_sum = _spec_loss_partials(yfr, sfr, basis,
                                                   self.gamma, need_cpx)
            nyq_mag, nyq_cpx = _nyquist_terms(yp, sp, nyq_vec, hop,
                                              self.gamma, need_cpx)
            n_elems = yfr.shape[0] * (n_fft // 2 + 1)   # frames * onesided freqs
            loss = loss + self.f * (mag_sum + nyq_mag) / n_elems
            if need_cpx:
                loss = loss + self.f_complex[i] * (cpx_sum + nyq_cpx) / (2 * n_elems)
        return loss


# ------------------------- pure-JAX reference ------------------------------
def _ref_stft(x, n_fft, hop, win):
    *sh, t = x.shape
    x2 = x.reshape(-1, t)
    pad = n_fft // 2
    xp = jnp.pad(x2, ((0, 0), (pad, pad)), mode="reflect")
    nfr = 1 + (xp.shape[-1] - n_fft) // hop
    idx = jnp.arange(nfr)[:, None] * hop + jnp.arange(n_fft)[None, :]
    fr = xp[:, idx] * win[None, None, :]
    X = jnp.fft.rfft(fr, axis=-1) / jnp.sqrt(jnp.float32(n_fft))
    return jnp.swapaxes(X, -1, -2)


def _ref_loss(x, y, n_ffts, gamma, factor, f_complex):
    loss = jnp.float32(0.0)
    for i, n_fft in enumerate(n_ffts):
        hop = n_fft // 4
        n = jnp.arange(n_fft, dtype=jnp.float32)
        win = 0.5 * (1.0 - jnp.cos(2.0 * jnp.pi * n / n_fft))
        Y = _ref_stft(x, n_fft, hop, win)
        S = _ref_stft(y, n_fft, hop, win)
        Ya, Sa = jnp.abs(Y), jnp.abs(S)
        if gamma != 1.0:
            Ya = jnp.maximum(Ya, 1e-12) ** gamma
            Sa = jnp.maximum(Sa, 1e-12) ** gamma
        loss = loss + factor * jnp.mean((Ya - Sa) ** 2)
        if f_complex is not None:
            if gamma != 1.0:
                Yc = Ya * jnp.exp(1j * jnp.angle(Y))
                Sc = Sa * jnp.exp(1j * jnp.angle(S))
            else:
                Yc, Sc = Y, S
            loss = loss + f_complex[i] * jnp.mean(jnp.abs(Yc - Sc) ** 2) / 2.0
    return loss


if __name__ == "__main__":
    key = jax.random.PRNGKey(0)
    k1, k2 = jax.random.split(key)
    x = jax.random.normal(k1, (2, 4, 512), dtype=jnp.float32)
    y = jax.random.normal(k2, (2, 4, 512), dtype=jnp.float32)

    n_ffts = [64, 128, 256]
    gamma, factor, f_complex = 0.3, 1.0, 0.5

    loss_mod = MultResSpecLoss(n_ffts, gamma=gamma, factor=factor,
                               f_complex=f_complex)
    loss = jax.block_until_ready(jax.jit(loss_mod)(x, y))

    ref = jax.block_until_ready(
        _ref_loss(x, y, n_ffts, gamma, factor, [f_complex] * len(n_ffts)))

    assert loss.shape == () and jnp.isfinite(loss)
    # bf16 MXU operands (f32 accumulation) -> slightly looser tolerance than f32.
    assert jnp.allclose(loss, ref, rtol=1e-2, atol=1e-5), (float(loss), float(ref))

    print("KERNEL_OK")
</pallas_src>

<mosaic_0001>
module attributes {stable_mosaic.version = 11 : i64} {
  func.func @kernel(%arg0: i32, %arg1: memref<144x64xbf16, #tpu.memory_space<vmem>>, %arg2: memref<144x64xbf16, #tpu.memory_space<vmem>>, %arg3: memref<64x256xbf16, #tpu.memory_space<any>>, %arg4: memref<1x1xf32, #tpu.memory_space<vmem>>, %arg5: memref<1x1xf32, #tpu.memory_space<vmem>>, %arg6: memref<64x256xbf16, #tpu.memory_space<vmem>>, %arg7: memref<!tpu.dma_semaphore, #tpu.memory_space<semaphore_mem>>) attributes {dimension_semantics = [#tpu.dimension_semantics<arbitrary>], iteration_bounds = array<i64: 2>, scalar_prefetch = 0 : i64, scratch_operands = 2 : i64, tpu.core_type = #tpu.core_type<tc>, window_params = [{transform_indices = @transform_0, window_bounds = array<i64: 144, 64>}, {transform_indices = @transform_1, window_bounds = array<i64: 144, 64>}, {}, {pipeline_mode = #tpu.pipeline_mode<synchronous>, transform_indices = @transform_3, window_bounds = array<i64: 1, 1>}, {pipeline_mode = #tpu.pipeline_mode<synchronous>, transform_indices = @transform_4, window_bounds = array<i64: 1, 1>}]} {
    %c0_i32 = arith.constant 0 : i32
    %0 = arith.cmpi eq, %arg0, %c0_i32 : i32
    %1 = arith.extui %0 : i1 to i32
    %c0_i32_0 = arith.constant 0 : i32
    %2 = arith.cmpi ne, %1, %c0_i32_0 : i32
    scf.if %2 {
      tpu.enqueue_dma source(%arg3 : memref<64x256xbf16, #tpu.memory_space<any>>) target(%arg6 : memref<64x256xbf16, #tpu.memory_space<vmem>>) target_semaphore(%arg7 : memref<!tpu.dma_semaphore, #tpu.memory_space<semaphore_mem>>)
      tpu.wait_dma2 semaphore(%arg7 : memref<!tpu.dma_semaphore, #tpu.memory_space<semaphore_mem>>) src(%arg3 : memref<64x256xbf16, #tpu.memory_space<any>>) dst(%arg6 : memref<64x256xbf16, #tpu.memory_space<vmem>>)
      %cst_22 = arith.constant 0.000000e+00 : f32
      %59 = vector.broadcast %cst_22 : f32 to vector<1x1xf32>
      %c0_23 = arith.constant 0 : index
      %c0_24 = arith.constant 0 : index
      %60 = vector.load %arg4[%c0_23, %c0_24] : memref<1x1xf32, #tpu.memory_space<vmem>>, vector<1x1xf32>
      tpu.vector_store %arg4[%c0_23, %c0_24], %59 {strides = array<i32>} : memref<1x1xf32, #tpu.memory_space<vmem>>, vector<1x1xf32>,
      %cst_25 = arith.constant 0.000000e+00 : f32
      %61 = vector.broadcast %cst_25 : f32 to vector<1x1xf32>
      %c0_26 = arith.constant 0 : index
      %c0_27 = arith.constant 0 : index
      %62 = vector.load %arg5[%c0_26, %c0_27] : memref<1x1xf32, #tpu.memory_space<vmem>>, vector<1x1xf32>
      tpu.vector_store %arg5[%c0_26, %c0_27], %61 {strides = array<i32>} : memref<1x1xf32, #tpu.memory_space<vmem>>, vector<1x1xf32>,
    } else {
    }
    %c0 = arith.constant 0 : index
    %c0_1 = arith.constant 0 : index
    %3 = vector.load %arg6[%c0, %c0_1] : memref<64x256xbf16, #tpu.memory_space<vmem>>, vector<64x256xbf16>
    %c0_2 = arith.constant 0 : index
    %c0_3 = arith.constant 0 : index
    %4 = vector.load %arg1[%c0_2, %c0_3] : memref<144x64xbf16, #tpu.memory_space<vmem>>, vector<144x64xbf16>
    %c0_4 = arith.constant 0 : index
    %c0_5 = arith.constant 0 : index
    %5 = vector.load %arg2[%c0_4, %c0_5] : memref<144x64xbf16, #tpu.memory_space<vmem>>, vector<144x64xbf16>
    %6 = tpu.concatenate %4, %5 in 0 : vector<144x64xbf16>, vector<144x64xbf16> -> vector<288x64xbf16>
    %cst = arith.constant dense<0.000000e+00> : vector<288x256xf32>
    %7 = tpu.matmul %6, %3, %cst {dimension_numbers = #tpu.dot_dimension_numbers<[1], [0], [0], [1], [0, 0, 1, 1], [], []>} : vector<288x64xbf16>, vector<64x256xbf16>, vector<288x256xf32> -> vector<288x256xf32>
    %8 = vector.extract_strided_slice %7 {offsets = [0, 0], sizes = [144, 128], strides = [1, 1]} : vector<288x256xf32> to vector<144x128xf32>
    %9 = vector.extract_strided_slice %7 {offsets = [0, 128], sizes = [144, 128], strides = [1, 1]} : vector<288x256xf32> to vector<144x128xf32>
    %10 = vector.extract_strided_slice %7 {offsets = [144, 0], sizes = [144, 128], strides = [1, 1]} : vector<288x256xf32> to vector<144x128xf32>
    %11 = vector.extract_strided_slice %7 {offsets = [144, 128], sizes = [144, 128], strides = [1, 1]} : vector<288x256xf32> to vector<144x128xf32>
    %12 = arith.mulf %8, %8 : vector<144x128xf32>
    %13 = arith.mulf %9, %9 : vector<144x128xf32>
    %14 = arith.addf %12, %13 : vector<144x128xf32>
    %cst_6 = arith.constant 1.000000e-24 : f32
    %15 = vector.broadcast %cst_6 : f32 to vector<144x128xf32>
    %16 = arith.maximumf %14, %15 : vector<144x128xf32>
    %17 = arith.mulf %10, %10 : vector<144x128xf32>
    %18 = arith.mulf %11, %11 : vector<144x128xf32>
    %19 = arith.addf %17, %18 : vector<144x128xf32>
    %cst_7 = arith.constant 1.000000e-24 : f32
    %20 = vector.broadcast %cst_7 : f32 to vector<144x128xf32>
    %21 = arith.maximumf %19, %20 : vector<144x128xf32>
    %22 = math.log %16 : vector<144x128xf32>
    %cst_8 = arith.constant 1.500000e-01 : f32
    %23 = vector.broadcast %cst_8 : f32 to vector<144x128xf32>
    %24 = arith.mulf %23, %22 : vector<144x128xf32>
    %25 = math.exp %24 : vector<144x128xf32>
    %26 = math.log %21 : vector<144x128xf32>
    %cst_9 = arith.constant 1.500000e-01 : f32
    %27 = vector.broadcast %cst_9 : f32 to vector<144x128xf32>
    %28 = arith.mulf %27, %26 : vector<144x128xf32>
    %29 = math.exp %28 : vector<144x128xf32>
    %30 = arith.subf %25, %29 : vector<144x128xf32>
    %31 = arith.mulf %30, %30 : vector<144x128xf32>
    %cst_10 = arith.constant dense<0.000000e+00> : vector<144xf32>
    %32 = vector.multi_reduction <add>, %31, %cst_10 [1] : vector<144x128xf32> to vector<144xf32>
    %33 = vector.shape_cast %32 : vector<144xf32> to vector<144x1xf32>
    %c0_11 = arith.constant 0 : index
    %c0_12 = arith.constant 0 : index
    %34 = vector.load %arg4[%c0_11, %c0_12] : memref<1x1xf32, #tpu.memory_space<vmem>>, vector<1x1xf32>
    %cst_13 = arith.constant dense<0.000000e+00> : vector<1xf32>
    %35 = vector.multi_reduction <add>, %33, %cst_13 [0] : vector<144x1xf32> to vector<1xf32>
    %36 = vector.shape_cast %35 : vector<1xf32> to vector<1x1xf32>
    %37 = arith.addf %34, %36 : vector<1x1xf32>
    %c0_14 = arith.constant 0 : index
    %c0_15 = arith.constant 0 : index
    %38 = vector.load %arg4[%c0_14, %c0_15] : memref<1x1xf32, #tpu.memory_space<vmem>>, vector<1x1xf32>
    tpu.vector_store %arg4[%c0_14, %c0_15], %37 {strides = array<i32>} : memref<1x1xf32, #tpu.memory_space<vmem>>, vector<1x1xf32>,
    %39 = math.rsqrt %16 : vector<144x128xf32>
    %40 = arith.mulf %25, %39 : vector<144x128xf32>
    %41 = math.rsqrt %21 : vector<144x128xf32>
    %42 = arith.mulf %29, %41 : vector<144x128xf32>
    %43 = arith.mulf %8, %40 : vector<144x128xf32>
    %44 = arith.mulf %10, %42 : vector<144x128xf32>
    %45 = arith.subf %43, %44 : vector<144x128xf32>
    %46 = arith.mulf %9, %40 : vector<144x128xf32>
    %47 = arith.mulf %11, %42 : vector<144x128xf32>
    %48 = arith.subf %46, %47 : vector<144x128xf32>
    %49 = arith.mulf %45, %45 : vector<144x128xf32>
    %50 = arith.mulf %48, %48 : vector<144x128xf32>
    %51 = arith.addf %49, %50 : vector<144x128xf32>
    %cst_16 = arith.constant dense<0.000000e+00> : vector<144xf32>
    %52 = vector.multi_reduction <add>, %51, %cst_16 [1] : vector<144x128xf32> to vector<144xf32>
    %53 = vector.shape_cast %52 : vector<144xf32> to vector<144x1xf32>
    %c0_17 = arith.constant 0 : index
    %c0_18 = arith.constant 0 : index
    %54 = vector.load %arg5[%c0_17, %c0_18] : memref<1x1xf32, #tpu.memory_space<vmem>>, vector<1x1xf32>
    %cst_19 = arith.constant dense<0.000000e+00> : vector<1xf32>
    %55 = vector.multi_reduction <add>, %53, %cst_19 [0] : vector<144x1xf32> to vector<1xf32>
    %56 = vector.shape_cast %55 : vector<1xf32> to vector<1x1xf32>
    %57 = arith.addf %54, %56 : vector<1x1xf32>
    %c0_20 = arith.constant 0 : index
    %c0_21 = arith.constant 0 : index
    %58 = vector.load %arg5[%c0_20, %c0_21] : memref<1x1xf32, #tpu.memory_space<vmem>>, vector<1x1xf32>
    tpu.vector_store %arg5[%c0_20, %c0_21], %57 {strides = array<i32>} : memref<1x1xf32, #tpu.memory_space<vmem>>, vector<1x1xf32>,
    return
  }
  func.func @transform_0(%arg0: i32) -> (i32, i32) {
    %c0_i32 = arith.constant 0 : i32
    %c0_i32_0 = arith.constant 0 : i32
    return %arg0, %c0_i32 : i32, i32
  }
  func.func @transform_1(%arg0: i32) -> (i32, i32) {
    %c0_i32 = arith.constant 0 : i32
    %c0_i32_0 = arith.constant 0 : i32
    return %arg0, %c0_i32 : i32, i32
  }
  func.func @transform_3(%arg0: i32) -> (i32, i32) {
    %c0_i32 = arith.constant 0 : i32
    %c0_i32_0 = arith.constant 0 : i32
    %c0_i32_1 = arith.constant 0 : i32
    return %c0_i32, %c0_i32_0 : i32, i32
  }
  func.func @transform_4(%arg0: i32) -> (i32, i32) {
    %c0_i32 = arith.constant 0 : i32
    %c0_i32_0 = arith.constant 0 : i32
    %c0_i32_1 = arith.constant 0 : i32
    return %c0_i32, %c0_i32_0 : i32, i32
  }
}

module attributes {stable_mosaic.version = 11 : i64} {
  func.func @kernel(%arg0: i32, %arg1: memref<144x128xbf16, #tpu.memory_space<vmem>>, %arg2: memref<144x128xbf16, #tpu.memory_space<vmem>>, %arg3: memref<128x256xbf16, #tpu.memory_space<any>>, %arg4: memref<1x1xf32, #tpu.memory_space<vmem>>, %arg5: memref<1x1xf32, #tpu.memory_space<vmem>>, %arg6: memref<128x256xbf16, #tpu.memory_space<vmem>>, %arg7: memref<!tpu.dma_semaphore, #tpu.memory_space<semaphore_mem>>) attributes {dimension_semantics = [#tpu.dimension_semantics<arbitrary>], iteration_bounds = array<i64: 1>, scalar_prefetch = 0 : i64, scratch_operands = 2 : i64, tpu.core_type = #tpu.core_type<tc>, window_params = [{transform_indices = @transform_0, window_bounds = array<i64: 144, 128>}, {transform_indices = @transform_1, window_bounds = array<i64: 144, 128>}, {}, {pipeline_mode = #tpu.pipeline_mode<synchronous>, transform_indices = @transform_3, window_bounds = array<i64: 1, 1>}, {pipeline_mode = #tpu.pipeline_mode<synchronous>, transform_indices = @transform_4, window_bounds = array<i64: 1, 1>}]} {
    %c0_i32 = arith.constant 0 : i32
    %0 = arith.cmpi eq, %arg0, %c0_i32 : i32
    %1 = arith.extui %0 : i1 to i32
    %c0_i32_0 = arith.constant 0 : i32
    %2 = arith.cmpi ne, %1, %c0_i32_0 : i32
    scf.if %2 {
      tpu.enqueue_dma source(%arg3 : memref<128x256xbf16, #tpu.memory_space<any>>) target(%arg6 : memref<128x256xbf16, #tpu.memory_space<vmem>>) target_semaphore(%arg7 : memref<!tpu.dma_semaphore, #tpu.memory_space<semaphore_mem>>)
      tpu.wait_dma2 semaphore(%arg7 : memref<!tpu.dma_semaphore, #tpu.memory_space<semaphore_mem>>) src(%arg3 : memref<128x256xbf16, #tpu.memory_space<any>>) dst(%arg6 : memref<128x256xbf16, #tpu.memory_space<vmem>>)
      %cst_22 = arith.constant 0.000000e+00 : f32
      %59 = vector.broadcast %cst_22 : f32 to vector<1x1xf32>
      %c0_23 = arith.constant 0 : index
      %c0_24 = arith.constant 0 : index
      %60 = vector.load %arg4[%c0_23, %c0_24] : memref<1x1xf32, #tpu.memory_space<vmem>>, vector<1x1xf32>
      tpu.vector_store %arg4[%c0_23, %c0_24], %59 {strides = array<i32>} : memref<1x1xf32, #tpu.memory_space<vmem>>, vector<1x1xf32>,
      %cst_25 = arith.constant 0.000000e+00 : f32
      %61 = vector.broadcast %cst_25 : f32 to vector<1x1xf32>
      %c0_26 = arith.constant 0 : index
      %c0_27 = arith.constant 0 : index
      %62 = vector.load %arg5[%c0_26, %c0_27] : memref<1x1xf32, #tpu.memory_space<vmem>>, vector<1x1xf32>
      tpu.vector_store %arg5[%c0_26, %c0_27], %61 {strides = array<i32>} : memref<1x1xf32, #tpu.memory_space<vmem>>, vector<1x1xf32>,
    } else {
    }
    %c0 = arith.constant 0 : index
    %c0_1 = arith.constant 0 : index
    %3 = vector.load %arg6[%c0, %c0_1] : memref<128x256xbf16, #tpu.memory_space<vmem>>, vector<128x256xbf16>
    %c0_2 = arith.constant 0 : index
    %c0_3 = arith.constant 0 : index
    %4 = vector.load %arg1[%c0_2, %c0_3] : memref<144x128xbf16, #tpu.memory_space<vmem>>, vector<144x128xbf16>
    %c0_4 = arith.constant 0 : index
    %c0_5 = arith.constant 0 : index
    %5 = vector.load %arg2[%c0_4, %c0_5] : memref<144x128xbf16, #tpu.memory_space<vmem>>, vector<144x128xbf16>
    %6 = tpu.concatenate %4, %5 in 0 : vector<144x128xbf16>, vector<144x128xbf16> -> vector<288x128xbf16>
    %cst = arith.constant dense<0.000000e+00> : vector<288x256xf32>
    %7 = tpu.matmul %6, %3, %cst {dimension_numbers = #tpu.dot_dimension_numbers<[1], [0], [0], [1], [0, 0, 1, 1], [], []>} : vector<288x128xbf16>, vector<128x256xbf16>, vector<288x256xf32> -> vector<288x256xf32>
    %8 = vector.extract_strided_slice %7 {offsets = [0, 0], sizes = [144, 128], strides = [1, 1]} : vector<288x256xf32> to vector<144x128xf32>
    %9 = vector.extract_strided_slice %7 {offsets = [0, 128], sizes = [144, 128], strides = [1, 1]} : vector<288x256xf32> to vector<144x128xf32>
    %10 = vector.extract_strided_slice %7 {offsets = [144, 0], sizes = [144, 128], strides = [1, 1]} : vector<288x256xf32> to vector<144x128xf32>
    %11 = vector.extract_strided_slice %7 {offsets = [144, 128], sizes = [144, 128], strides = [1, 1]} : vector<288x256xf32> to vector<144x128xf32>
    %12 = arith.mulf %8, %8 : vector<144x128xf32>
    %13 = arith.mulf %9, %9 : vector<144x128xf32>
    %14 = arith.addf %12, %13 : vector<144x128xf32>
    %cst_6 = arith.constant 1.000000e-24 : f32
    %15 = vector.broadcast %cst_6 : f32 to vector<144x128xf32>
    %16 = arith.maximumf %14, %15 : vector<144x128xf32>
    %17 = arith.mulf %10, %10 : vector<144x128xf32>
    %18 = arith.mulf %11, %11 : vector<144x128xf32>
    %19 = arith.addf %17, %18 : vector<144x128xf32>
    %cst_7 = arith.constant 1.000000e-24 : f32
    %20 = vector.broadcast %cst_7 : f32 to vector<144x128xf32>
    %21 = arith.maximumf %19, %20 : vector<144x128xf32>
    %22 = math.log %16 : vector<144x128xf32>
    %cst_8 = arith.constant 1.500000e-01 : f32
    %23 = vector.broadcast %cst_8 : f32 to vector<144x128xf32>
    %24 = arith.mulf %23, %22 : vector<144x128xf32>
    %25 = math.exp %24 : vector<144x128xf32>
    %26 = math.log %21 : vector<144x128xf32>
    %cst_9 = arith.constant 1.500000e-01 : f32
    %27 = vector.broadcast %cst_9 : f32 to vector<144x128xf32>
    %28 = arith.mulf %27, %26 : vector<144x128xf32>
    %29 = math.exp %28 : vector<144x128xf32>
    %30 = arith.subf %25, %29 : vector<144x128xf32>
    %31 = arith.mulf %30, %30 : vector<144x128xf32>
    %cst_10 = arith.constant dense<0.000000e+00> : vector<144xf32>
    %32 = vector.multi_reduction <add>, %31, %cst_10 [1] : vector<144x128xf32> to vector<144xf32>
    %33 = vector.shape_cast %32 : vector<144xf32> to vector<144x1xf32>
    %c0_11 = arith.constant 0 : index
    %c0_12 = arith.constant 0 : index
    %34 = vector.load %arg4[%c0_11, %c0_12] : memref<1x1xf32, #tpu.memory_space<vmem>>, vector<1x1xf32>
    %cst_13 = arith.constant dense<0.000000e+00> : vector<1xf32>
    %35 = vector.multi_reduction <add>, %33, %cst_13 [0] : vector<144x1xf32> to vector<1xf32>
    %36 = vector.shape_cast %35 : vector<1xf32> to vector<1x1xf32>
    %37 = arith.addf %34, %36 : vector<1x1xf32>
    %c0_14 = arith.constant 0 : index
    %c0_15 = arith.constant 0 : index
    %38 = vector.load %arg4[%c0_14, %c0_15] : memref<1x1xf32, #tpu.memory_space<vmem>>, vector<1x1xf32>
    tpu.vector_store %arg4[%c0_14, %c0_15], %37 {strides = array<i32>} : memref<1x1xf32, #tpu.memory_space<vmem>>, vector<1x1xf32>,
    %39 = math.rsqrt %16 : vector<144x128xf32>
    %40 = arith.mulf %25, %39 : vector<144x128xf32>
    %41 = math.rsqrt %21 : vector<144x128xf32>
    %42 = arith.mulf %29, %41 : vector<144x128xf32>
    %43 = arith.mulf %8, %40 : vector<144x128xf32>
    %44 = arith.mulf %10, %42 : vector<144x128xf32>
    %45 = arith.subf %43, %44 : vector<144x128xf32>
    %46 = arith.mulf %9, %40 : vector<144x128xf32>
    %47 = arith.mulf %11, %42 : vector<144x128xf32>
    %48 = arith.subf %46, %47 : vector<144x128xf32>
    %49 = arith.mulf %45, %45 : vector<144x128xf32>
    %50 = arith.mulf %48, %48 : vector<144x128xf32>
    %51 = arith.addf %49, %50 : vector<144x128xf32>
    %cst_16 = arith.constant dense<0.000000e+00> : vector<144xf32>
    %52 = vector.multi_reduction <add>, %51, %cst_16 [1] : vector<144x128xf32> to vector<144xf32>
    %53 = vector.shape_cast %52 : vector<144xf32> to vector<144x1xf32>
    %c0_17 = arith.constant 0 : index
    %c0_18 = arith.constant 0 : index
    %54 = vector.load %arg5[%c0_17, %c0_18] : memref<1x1xf32, #tpu.memory_space<vmem>>, vector<1x1xf32>
    %cst_19 = arith.constant dense<0.000000e+00> : vector<1xf32>
    %55 = vector.multi_reduction <add>, %53, %cst_19 [0] : vector<144x1xf32> to vector<1xf32>
    %56 = vector.shape_cast %55 : vector<1xf32> to vector<1x1xf32>
    %57 = arith.addf %54, %56 : vector<1x1xf32>
    %c0_20 = arith.constant 0 : index
    %c0_21 = arith.constant 0 : index
    %58 = vector.load %arg5[%c0_20, %c0_21] : memref<1x1xf32, #tpu.memory_space<vmem>>, vector<1x1xf32>
    tpu.vector_store %arg5[%c0_20, %c0_21], %57 {strides = array<i32>} : memref<1x1xf32, #tpu.memory_space<vmem>>, vector<1x1xf32>,
    return
  }
  func.func @transform_0(%arg0: i32) -> (i32, i32) {
    %c0_i32 = arith.constant 0 : i32
    %c0_i32_0 = arith.constant 0 : i32
    return %arg0, %c0_i32 : i32, i32
  }
  func.func @transform_1(%arg0: i32) -> (i32, i32) {
    %c0_i32 = arith.constant 0 : i32
    %c0_i32_0 = arith.constant 0 : i32
    return %arg0, %c0_i32 : i32, i32
  }
  func.func @transform_3(%arg0: i32) -> (i32, i32) {
    %c0_i32 = arith.constant 0 : i32
    %c0_i32_0 = arith.constant 0 : i32
    %c0_i32_1 = arith.constant 0 : i32
    return %c0_i32, %c0_i32_0 : i32, i32
  }
  func.func @transform_4(%arg0: i32) -> (i32, i32) {
    %c0_i32 = arith.constant 0 : i32
    %c0_i32_0 = arith.constant 0 : i32
    %c0_i32_1 = arith.constant 0 : i32
    return %c0_i32, %c0_i32_0 : i32, i32
  }
}

module attributes {stable_mosaic.version = 11 : i64} {
  func.func @kernel(%arg0: i32, %arg1: memref<80x256xbf16, #tpu.memory_space<vmem>>, %arg2: memref<80x256xbf16, #tpu.memory_space<vmem>>, %arg3: memref<256x256xbf16, #tpu.memory_space<any>>, %arg4: memref<1x1xf32, #tpu.memory_space<vmem>>, %arg5: memref<1x1xf32, #tpu.memory_space<vmem>>, %arg6: memref<256x256xbf16, #tpu.memory_space<vmem>>, %arg7: memref<!tpu.dma_semaphore, #tpu.memory_space<semaphore_mem>>) attributes {dimension_semantics = [#tpu.dimension_semantics<arbitrary>], iteration_bounds = array<i64: 1>, scalar_prefetch = 0 : i64, scratch_operands = 2 : i64, tpu.core_type = #tpu.core_type<tc>, window_params = [{transform_indices = @transform_0, window_bounds = array<i64: 80, 256>}, {transform_indices = @transform_1, window_bounds = array<i64: 80, 256>}, {}, {pipeline_mode = #tpu.pipeline_mode<synchronous>, transform_indices = @transform_3, window_bounds = array<i64: 1, 1>}, {pipeline_mode = #tpu.pipeline_mode<synchronous>, transform_indices = @transform_4, window_bounds = array<i64: 1, 1>}]} {
    %c0_i32 = arith.constant 0 : i32
    %0 = arith.cmpi eq, %arg0, %c0_i32 : i32
    %1 = arith.extui %0 : i1 to i32
    %c0_i32_0 = arith.constant 0 : i32
    %2 = arith.cmpi ne, %1, %c0_i32_0 : i32
    scf.if %2 {
      tpu.enqueue_dma source(%arg3 : memref<256x256xbf16, #tpu.memory_space<any>>) target(%arg6 : memref<256x256xbf16, #tpu.memory_space<vmem>>) target_semaphore(%arg7 : memref<!tpu.dma_semaphore, #tpu.memory_space<semaphore_mem>>)
      tpu.wait_dma2 semaphore(%arg7 : memref<!tpu.dma_semaphore, #tpu.memory_space<semaphore_mem>>) src(%arg3 : memref<256x256xbf16, #tpu.memory_space<any>>) dst(%arg6 : memref<256x256xbf16, #tpu.memory_space<vmem>>)
      %cst_22 = arith.constant 0.000000e+00 : f32
      %59 = vector.broadcast %cst_22 : f32 to vector<1x1xf32>
      %c0_23 = arith.constant 0 : index
      %c0_24 = arith.constant 0 : index
      %60 = vector.load %arg4[%c0_23, %c0_24] : memref<1x1xf32, #tpu.memory_space<vmem>>, vector<1x1xf32>
      tpu.vector_store %arg4[%c0_23, %c0_24], %59 {strides = array<i32>} : memref<1x1xf32, #tpu.memory_space<vmem>>, vector<1x1xf32>,
      %cst_25 = arith.constant 0.000000e+00 : f32
      %61 = vector.broadcast %cst_25 : f32 to vector<1x1xf32>
      %c0_26 = arith.constant 0 : index
      %c0_27 = arith.constant 0 : index
      %62 = vector.load %arg5[%c0_26, %c0_27] : memref<1x1xf32, #tpu.memory_space<vmem>>, vector<1x1xf32>
      tpu.vector_store %arg5[%c0_26, %c0_27], %61 {strides = array<i32>} : memref<1x1xf32, #tpu.memory_space<vmem>>, vector<1x1xf32>,
    } else {
    }
    %c0 = arith.constant 0 : index
    %c0_1 = arith.constant 0 : index
    %3 = vector.load %arg6[%c0, %c0_1] : memref<256x256xbf16, #tpu.memory_space<vmem>>, vector<256x256xbf16>
    %c0_2 = arith.constant 0 : index
    %c0_3 = arith.constant 0 : index
    %4 = vector.load %arg1[%c0_2, %c0_3] : memref<80x256xbf16, #tpu.memory_space<vmem>>, vector<80x256xbf16>
    %c0_4 = arith.constant 0 : index
    %c0_5 = arith.constant 0 : index
    %5 = vector.load %arg2[%c0_4, %c0_5] : memref<80x256xbf16, #tpu.memory_space<vmem>>, vector<80x256xbf16>
    %6 = tpu.concatenate %4, %5 in 0 : vector<80x256xbf16>, vector<80x256xbf16> -> vector<160x256xbf16>
    %cst = arith.constant dense<0.000000e+00> : vector<160x256xf32>
    %7 = tpu.matmul %6, %3, %cst {dimension_numbers = #tpu.dot_dimension_numbers<[1], [0], [0], [1], [0, 0, 1, 1], [], []>} : vector<160x256xbf16>, vector<256x256xbf16>, vector<160x256xf32> -> vector<160x256xf32>
    %8 = vector.extract_strided_slice %7 {offsets = [0, 0], sizes = [80, 128], strides = [1, 1]} : vector<160x256xf32> to vector<80x128xf32>
    %9 = vector.extract_strided_slice %7 {offsets = [0, 128], sizes = [80, 128], strides = [1, 1]} : vector<160x256xf32> to vector<80x128xf32>
    %10 = vector.extract_strided_slice %7 {offsets = [80, 0], sizes = [80, 128], strides = [1, 1]} : vector<160x256xf32> to vector<80x128xf32>
    %11 = vector.extract_strided_slice %7 {offsets = [80, 128], sizes = [80, 128], strides = [1, 1]} : vector<160x256xf32> to vector<80x128xf32>
    %12 = arith.mulf %8, %8 : vector<80x128xf32>
    %13 = arith.mulf %9, %9 : vector<80x128xf32>
    %14 = arith.addf %12, %13 : vector<80x128xf32>
    %cst_6 = arith.constant 1.000000e-24 : f32
    %15 = vector.broadcast %cst_6 : f32 to vector<80x128xf32>
    %16 = arith.maximumf %14, %15 : vector<80x128xf32>
    %17 = arith.mulf %10, %10 : vector<80x128xf32>
    %18 = arith.mulf %11, %11 : vector<80x128xf32>
    %19 = arith.addf %17, %18 : vector<80x128xf32>
    %cst_7 = arith.constant 1.000000e-24 : f32
    %20 = vector.broadcast %cst_7 : f32 to vector<80x128xf32>
    %21 = arith.maximumf %19, %20 : vector<80x128xf32>
    %22 = math.log %16 : vector<80x128xf32>
    %cst_8 = arith.constant 1.500000e-01 : f32
    %23 = vector.broadcast %cst_8 : f32 to vector<80x128xf32>
    %24 = arith.mulf %23, %22 : vector<80x128xf32>
    %25 = math.exp %24 : vector<80x128xf32>
    %26 = math.log %21 : vector<80x128xf32>
    %cst_9 = arith.constant 1.500000e-01 : f32
    %27 = vector.broadcast %cst_9 : f32 to vector<80x128xf32>
    %28 = arith.mulf %27, %26 : vector<80x128xf32>
    %29 = math.exp %28 : vector<80x128xf32>
    %30 = arith.subf %25, %29 : vector<80x128xf32>
    %31 = arith.mulf %30, %30 : vector<80x128xf32>
    %cst_10 = arith.constant dense<0.000000e+00> : vector<80xf32>
    %32 = vector.multi_reduction <add>, %31, %cst_10 [1] : vector<80x128xf32> to vector<80xf32>
    %33 = vector.shape_cast %32 : vector<80xf32> to vector<80x1xf32>
    %c0_11 = arith.constant 0 : index
    %c0_12 = arith.constant 0 : index
    %34 = vector.load %arg4[%c0_11, %c0_12] : memref<1x1xf32, #tpu.memory_space<vmem>>, vector<1x1xf32>
    %cst_13 = arith.constant dense<0.000000e+00> : vector<1xf32>
    %35 = vector.multi_reduction <add>, %33, %cst_13 [0] : vector<80x1xf32> to vector<1xf32>
    %36 = vector.shape_cast %35 : vector<1xf32> to vector<1x1xf32>
    %37 = arith.addf %34, %36 : vector<1x1xf32>
    %c0_14 = arith.constant 0 : index
    %c0_15 = arith.constant 0 : index
    %38 = vector.load %arg4[%c0_14, %c0_15] : memref<1x1xf32, #tpu.memory_space<vmem>>, vector<1x1xf32>
    tpu.vector_store %arg4[%c0_14, %c0_15], %37 {strides = array<i32>} : memref<1x1xf32, #tpu.memory_space<vmem>>, vector<1x1xf32>,
    %39 = math.rsqrt %16 : vector<80x128xf32>
    %40 = arith.mulf %25, %39 : vector<80x128xf32>
    %41 = math.rsqrt %21 : vector<80x128xf32>
    %42 = arith.mulf %29, %41 : vector<80x128xf32>
    %43 = arith.mulf %8, %40 : vector<80x128xf32>
    %44 = arith.mulf %10, %42 : vector<80x128xf32>
    %45 = arith.subf %43, %44 : vector<80x128xf32>
    %46 = arith.mulf %9, %40 : vector<80x128xf32>
    %47 = arith.mulf %11, %42 : vector<80x128xf32>
    %48 = arith.subf %46, %47 : vector<80x128xf32>
    %49 = arith.mulf %45, %45 : vector<80x128xf32>
    %50 = arith.mulf %48, %48 : vector<80x128xf32>
    %51 = arith.addf %49, %50 : vector<80x128xf32>
    %cst_16 = arith.constant dense<0.000000e+00> : vector<80xf32>
    %52 = vector.multi_reduction <add>, %51, %cst_16 [1] : vector<80x128xf32> to vector<80xf32>
    %53 = vector.shape_cast %52 : vector<80xf32> to vector<80x1xf32>
    %c0_17 = arith.constant 0 : index
    %c0_18 = arith.constant 0 : index
    %54 = vector.load %arg5[%c0_17, %c0_18] : memref<1x1xf32, #tpu.memory_space<vmem>>, vector<1x1xf32>
    %cst_19 = arith.constant dense<0.000000e+00> : vector<1xf32>
    %55 = vector.multi_reduction <add>, %53, %cst_19 [0] : vector<80x1xf32> to vector<1xf32>
    %56 = vector.shape_cast %55 : vector<1xf32> to vector<1x1xf32>
    %57 = arith.addf %54, %56 : vector<1x1xf32>
    %c0_20 = arith.constant 0 : index
    %c0_21 = arith.constant 0 : index
    %58 = vector.load %arg5[%c0_20, %c0_21] : memref<1x1xf32, #tpu.memory_space<vmem>>, vector<1x1xf32>
    tpu.vector_store %arg5[%c0_20, %c0_21], %57 {strides = array<i32>} : memref<1x1xf32, #tpu.memory_space<vmem>>, vector<1x1xf32>,
    return
  }
  func.func @transform_0(%arg0: i32) -> (i32, i32) {
    %c0_i32 = arith.constant 0 : i32
    %c0_i32_0 = arith.constant 0 : i32
    return %arg0, %c0_i32 : i32, i32
  }
  func.func @transform_1(%arg0: i32) -> (i32, i32) {
    %c0_i32 = arith.constant 0 : i32
    %c0_i32_0 = arith.constant 0 : i32
    return %arg0, %c0_i32 : i32, i32
  }
  func.func @transform_3(%arg0: i32) -> (i32, i32) {
    %c0_i32 = arith.constant 0 : i32
    %c0_i32_0 = arith.constant 0 : i32
    %c0_i32_1 = arith.constant 0 : i32
    return %c0_i32, %c0_i32_0 : i32, i32
  }
  func.func @transform_4(%arg0: i32) -> (i32, i32) {
    %c0_i32 = arith.constant 0 : i32
    %c0_i32_0 = arith.constant 0 : i32
    %c0_i32_1 = arith.constant 0 : i32
    return %c0_i32, %c0_i32_0 : i32, i32
  }
}

</mosaic_0001>

<bundles_post_ra>
// kernel: _unnamed_function_.3
= control target key start
LH: loop header
LB: loop body
LE: loop exit
PB: predicated region body
PF: predicated region fallthrough
CT: control target
= control target key end

     0   :  { %10 = vsyncpa [#allocation5], 0  ;;  %s3678_s0 = inlined_call_operand.vmem [shape: bf16[288,64], index: 0, kind: input, shape index: {}]   ;;  %s3679_s1 = inlined_call_operand.vmem [shape: bf16[288,64], index: 1, kind: input, shape index: {}]   ;;  %s3680_s2 = inlined_call_operand.vmem [shape: bf16[64,256], index: 2, kind: input, shape index: {}]   ;;  %s3681_s3 = inlined_call_operand.hbm [shape: f32[1,1], index: 3, kind: output, shape index: {0}]   ;;  %s3682_s4 = inlined_call_operand.hbm [shape: f32[1,1], index: 4, kind: output, shape index: {1}]  }
   0x1   :  { %11 = vsyncpa [#allocation7], 0  ;;  %s2318_s15 = smov 0  }
   0x2 LB: > { %s2324_s16 = sadd.s32 4294967295, %s2288_s15   ;;  %p1792_p0 = scmp.ge.s32.totalorder %s2288_s15, 1  ;;  %s2288_s15 = sphi %s2318_s15, %s17_s15  }
   0x3   : > { %p145_p1 = scmp.lt.s32.totalorder %s2288_s15, 3 }
   0x5   : > { %p146_p2 = pnand %p1792_p0, %p145_p1 }
   0x6   : > { %s169_s17 = smul.u32 (!%p146_p2), 18, %s2324_s16  ;;  %p1795_p4 = scmp.ne.s32.totalorder (!%p146_p2), %s2324_s16, 0 }
   0x7   : > { %149 = sbr.rel (%p146_p2) target bundleno = 557 (0x22d), region = 28 }
   0x8   : > { %p170_p3 = scmp.lt.s32.totalorder (!%p146_p2), %s169_s17, 35 }
   0xc   : > { %s3702_s17 = smov (!%p170_p3, %s169_s17), 35  ;;  %185 = sbr.rel (%p1795_p4) target bundleno = 31 (0x1f), region = 32 }
   0xd   : > { %s1793_s18 = sshll.u32 %s3702_s17, 2 }
   0xe   : > { %s2332_s21 = scalar_lea.vmem %s3678_s0, %s1793_s18  ;;  %s2337_s24 = scalar_lea.vmem %s3679_s1, %s1793_s18 }
  0x11   : > { %v196_v0 = vld [vmem:[%s3680_s2] sm:$0xff]  ;;  %v198_v1 = vld [vmem:[%s3680_s2 + $0x8] sm:$0xff]  ;;  %v200_v2 = vld [vmem:[%s3680_s2 + $0x10] sm:$0xff] }
  0x12   : > { %197 = vst [vmem:[#allocation2] sm:$0xff] %v196_v0  ;;  %v202_v3 = vld [vmem:[%s3680_s2 + $0x18] sm:$0xff]  ;;  %v204_v4 = vld [vmem:[%s3680_s2 + $0x20] sm:$0xff]  ;;  %v206_v5 = vld [vmem:[%s3680_s2 + $0x28] sm:$0xff] }
  0x13   : > { %199 = vst [vmem:[#allocation2 + $0x8] sm:$0xff] %v198_v1  ;;  %v208_v6 = vld [vmem:[%s3680_s2 + $0x30] sm:$0xff]  ;;  %v210_v7 = vld [vmem:[%s3680_s2 + $0x38] sm:$0xff] }
  0x14   : > { %201 = vst [vmem:[#allocation2 + $0x10] sm:$0xff] %v200_v2 }
  0x15   : > { %203 = vst [vmem:[#allocation2 + $0x18] sm:$0xff] %v202_v3 }
  0x16   : > { %205 = vst [vmem:[#allocation2 + $0x20] sm:$0xff] %v204_v4 }
  0x17   : > { %207 = vst [vmem:[#allocation2 + $0x28] sm:$0xff] %v206_v5 }
  0x18   : > { %209 = vst [vmem:[#allocation2 + $0x30] sm:$0xff] %v208_v6 }
  0x19   : > { %211 = vst [vmem:[#allocation2 + $0x38] sm:$0xff] %v210_v7 }
  0x1a   : > { %217 = vsyncadd [#allocation3], 1024 }
  0x1b   : > { %2276 = dma.done.wait [#allocation3], 1024 }
  0x1c   : > { %2277 = vsyncadd [#allocation3], 4294966272  ;;  %vm222_vm0 = vcmask 0   ;;  %v2290_v8 = vmov 0.0  }
  0x1d   : > { %223 = vst.msk [vmem:[#allocation4] sm:$0x1] %vm222_vm0, %v2290_v8 }
  0x1e   : > { %224 = vst.msk [vmem:[#allocation6] sm:$0x1] %vm222_vm0, %v2290_v8 }
  0x1f PF: > { %v1894_v9 = vld [vmem:[#allocation2 + $0x30] sm:$0xf]  ;;  %v1949_v11 = vld [vmem:[#allocation2 + $0x34] sm:$0xf]  ;;  %v1886_v14 = vld [vmem:[#allocation2 + $0x20] sm:$0xf] }
  0x20   : > { %v1950_v10 = vld [vmem:[#allocation2 + $0x34] sm:$0xf0]  ;;  %v1896_v13 = vld [vmem:[#allocation2 + $0x38] sm:$0xf0]  ;;  %v1948_v15 = vld [vmem:[#allocation2 + $0x24] sm:$0xf0] }
  0x21   : > { %v1895_v12 = vor.u32 %v1950_v10, %v1894_v9  ;;  %v1899_v16 = vor.u32 %v1949_v11, %v1896_v13  ;;  %v1947_v17 = vld [vmem:[#allocation2 + $0x24] sm:$0xf]  ;;  %v1888_v18 = vld [vmem:[#allocation2 + $0x28] sm:$0xf0]  ;;  %v1887_v19 = vor.u32 %v1948_v15, %v1886_v14  ;;  %v1878_v21 = vld [vmem:[#allocation2 + $0x10] sm:$0xf] }
  0x22   : > { %v1891_v20 = vor.u32 %v1947_v17, %v1888_v18  ;;  %v1946_v22 = vld [vmem:[#allocation2 + $0x14] sm:$0xf0]  ;;  %v1945_v23 = vld [vmem:[#allocation2 + $0x14] sm:$0xf]  ;;  %v1880_v24 = vld [vmem:[#allocation2 + $0x18] sm:$0xf0] }
  0x23   : > { %458 = vmatpush.bf16.msra.mxu0 %v1895_v12  ;;  %1969 = vmatpush.bf16.msra.mxu2 %v1895_v12  ;;  %v1879_v25 = vor.u32 %v1946_v22, %v1878_v21  ;;  %v1883_v26 = vor.u32 %v1945_v23, %v1880_v24  ;;  %v1870_v27 = vld [vmem:[#allocation2] sm:$0xf]  ;;  %v1944_v28 = vld [vmem:[#allocation2 + $0x4] sm:$0xf0]  ;;  %v1943_v29 = vld [vmem:[#allocation2 + $0x4] sm:$0xf] }
  0x24   : > { %557 = vmatpush.bf16.msra.mxu1 %v1899_v16  ;;  %1973 = vmatpush.bf16.msra.mxu3 %v1899_v16  ;;  %v1872_v30 = vld [vmem:[#allocation2 + $0x8] sm:$0xf0]  ;;  %v1871_v31 = vor.u32 %v1944_v28, %v1870_v27  ;;  %v1951_v33 = vld [vmem:[%s2332_s21] sm:$0xff]  ;;  %vm399_vm1 = vcmask 523264   ;;  %v1953_v37 = vld [vmem:[%s2332_s21 + $0x10] sm:$0xff]  ;;  %s2291_s17 = smov [#allocation4]  }
  0x25   : > { %v1875_v32 = vor.u32 %v1943_v29, %v1872_v30  ;;  %v1960_v34 = vld [vmem:[%s2337_s24] sm:$0xff]  ;;  %v1952_v35 = vld [vmem:[%s2332_s21 + $0x8] sm:$0xff]  ;;  %v1962_v38 = vld [vmem:[%s2337_s24 + $0x10] sm:$0xff]  ;;  %s1701_s18 = sshll.u32 %s2291_s17, 4  ;;  %p1985_p5 = scmp.eq.s32.totalorder %s2324_s16, 1  ;;  %s1702_s18 = int_to_ptr.vmem [resolvable:$true] %s1701_s18 }
  0x26   : > { %v1961_v36 = vld [vmem:[%s2337_s24 + $0x8] sm:$0xff]  ;;  %v1954_v39 = vld [vmem:[%s2332_s21 + $0x18] sm:$0xff]  ;;  %v1955_v41 = vld [vmem:[%s2332_s21 + $0x20] sm:$0xff]  ;;  %s2292_s22 = smov [#allocation6]   ;;  %s1715_s26 = sshll.u32 %s3682_s4, 4  ;;  %s1716_s26 = int_to_ptr.hbm [resolvable:$true] %s1715_s26 }
  0x27   : > { %459 = vmatpush.bf16.msra.mxu0 %v1887_v19  ;;  %1970 = vmatpush.bf16.msra.mxu2 %v1887_v19  ;;  %v1963_v40 = vld [vmem:[%s2337_s24 + $0x18] sm:$0xff]  ;;  %v1964_v42 = vld [vmem:[%s2337_s24 + $0x20] sm:$0xff]  ;;  %v1956_v43 = vld [vmem:[%s2332_s21 + $0x28] sm:$0xff]  ;;  %s1713_s23 = sshll.u32 %s2292_s22, 4  ;;  %s1714_s23 = int_to_ptr.vmem [resolvable:$true] %s1713_s23 }
  0x28   : > { %558 = vmatpush.bf16.msra.mxu1 %v1891_v20  ;;  %1974 = vmatpush.bf16.msra.mxu3 %v1891_v20  ;;  %v1965_v44 = vld [vmem:[%s2337_s24 + $0x28] sm:$0xff]  ;;  %v1957_v45 = vld [vmem:[%s2332_s21 + $0x30] sm:$0xff]  ;;  %v1958_v47 = vld [vmem:[%s2332_s21 + $0x38] sm:$0xff] }
  0x29   : > { %v1966_v46 = vld [vmem:[%s2337_s24 + $0x30] sm:$0xff]  ;;  %v1967_v48 = vld [vmem:[%s2337_s24 + $0x38] sm:$0xff]  ;;  %v1959_v49 = vld [vmem:[%s2332_s21 + $0x40] sm:$0xff]  ;;  %s1703_s21 = sshll.u32 %s3681_s3, 4  ;;  %s1704_s21 = int_to_ptr.hbm [resolvable:$true] %s1703_s21 }
  0x2a   : > { %v1968_v50 = vld [vmem:[%s2337_s24 + $0x40] sm:$0xff] }
  0x2b   : > { %460 = vmatpush.bf16.msra.mxu0 %v1879_v25  ;;  %1971 = vmatpush.bf16.msra.mxu2 %v1879_v25 }
  0x2c   : > { %559 = vmatpush.bf16.msra.mxu1 %v1883_v26  ;;  %1975 = vmatpush.bf16.msra.mxu3 %v1883_v26 }
  0x2f   : > { %461 = vmatpush.bf16.msra.mxu0 %v1871_v31  ;;  %1972 = vmatpush.bf16.msra.mxu2 %v1871_v31 }
  0x30   : > { %560 = vmatpush.bf16.msra.mxu1 %v1875_v32  ;;  %1976 = vmatpush.bf16.msra.mxu3 %v1875_v32 }
  0x32   : > { %1900 = vmatmul.msk.bf16.vlgmr.msra.gmra.mxu0 %vm399_vm1, %v1951_v33  ;;  %1909 = vmatmul.msk.bf16.vlgmr.msra.gmra.mxu2 %vm399_vm1, %v1960_v34 }
  0x33   : > { %1918 = vmatmul.msk.bf16.vlgmr.msra.gmra.mxu1 %vm399_vm1, %v1951_v33  ;;  %1927 = vmatmul.msk.bf16.vlgmr.msra.gmra.mxu3 %vm399_vm1, %v1960_v34 }
  0x42   : > { %1901 = vmatmul.msk.bf16.gmra.mxu0 %vm399_vm1, %v1952_v35  ;;  %1910 = vmatmul.msk.bf16.gmra.mxu2 %vm399_vm1, %v1961_v36 }
  0x43   : > { %1919 = vmatmul.msk.bf16.gmra.mxu1 %vm399_vm1, %v1952_v35  ;;  %1928 = vmatmul.msk.bf16.gmra.mxu3 %vm399_vm1, %v1961_v36 }
  0x52   : > { %1902 = vmatmul.msk.bf16.gmra.mxu0 %vm399_vm1, %v1953_v37  ;;  %1911 = vmatmul.msk.bf16.gmra.mxu2 %vm399_vm1, %v1962_v38 }
  0x53   : > { %1920 = vmatmul.msk.bf16.gmra.mxu1 %vm399_vm1, %v1953_v37  ;;  %1929 = vmatmul.msk.bf16.gmra.mxu3 %vm399_vm1, %v1962_v38 }
  0x62   : > { %1903 = vmatmul.msk.bf16.gmra.mxu0 %vm399_vm1, %v1954_v39  ;;  %1912 = vmatmul.msk.bf16.gmra.mxu2 %vm399_vm1, %v1963_v40 }
  0x63   : > { %1921 = vmatmul.msk.bf16.gmra.mxu1 %vm399_vm1, %v1954_v39  ;;  %1930 = vmatmul.msk.bf16.gmra.mxu3 %vm399_vm1, %v1963_v40 }
  0x72   : > { %1904 = vmatmul.msk.bf16.gmra.mxu0 %vm399_vm1, %v1955_v41  ;;  %1913 = vmatmul.msk.bf16.gmra.mxu2 %vm399_vm1, %v1964_v42 }
  0x73   : > { %1922 = vmatmul.msk.bf16.gmra.mxu1 %vm399_vm1, %v1955_v41  ;;  %1931 = vmatmul.msk.bf16.gmra.mxu3 %vm399_vm1, %v1964_v42 }
  0x82   : > { %1905 = vmatmul.msk.bf16.gmra.mxu0 %vm399_vm1, %v1956_v43  ;;  %1914 = vmatmul.msk.bf16.gmra.mxu2 %vm399_vm1, %v1965_v44 }
  0x83   : > { %1923 = vmatmul.msk.bf16.gmra.mxu1 %vm399_vm1, %v1956_v43  ;;  %1932 = vmatmul.msk.bf16.gmra.mxu3 %vm399_vm1, %v1965_v44 }
  0x92   : > { %1906 = vmatmul.msk.bf16.gmra.mxu0 %vm399_vm1, %v1957_v45  ;;  %1915 = vmatmul.msk.bf16.gmra.mxu2 %vm399_vm1, %v1966_v46 }
  0x93   : > { %1924 = vmatmul.msk.bf16.gmra.mxu1 %vm399_vm1, %v1957_v45  ;;  %1933 = vmatmul.msk.bf16.gmra.mxu3 %vm399_vm1, %v1966_v46 }
  0xa2   : > { %1907 = vmatmul.msk.bf16.gmra.mxu0 %vm399_vm1, %v1958_v47  ;;  %1916 = vmatmul.msk.bf16.gmra.mxu2 %vm399_vm1, %v1967_v48 }
  0xa3   : > { %1925 = vmatmul.msk.bf16.gmra.mxu1 %vm399_vm1, %v1958_v47  ;;  %1934 = vmatmul.msk.bf16.gmra.mxu3 %vm399_vm1, %v1967_v48 }
  0xaf   : > { %v2414_v51 = vpop.f32.mrf.mxu0 }
  0xb0   : > { %v652_v52 = vmul.f32 %v2414_v51, %v2414_v51  ;;  %v2418_v53 = vpop.f32.mrf.mxu1 }
  0xb1   : > { %v670_v54 = vmul.f32 %v2418_v53, %v2418_v53 }
  0xb2   : > { %1908 = vmatmul.msk.bf16.gmra.mxu0 %vm399_vm1, %v1959_v49  ;;  %1917 = vmatmul.msk.bf16.gmra.mxu2 %vm399_vm1, %v1968_v50 }
  0xb3   : > { %v688_v55 = vadd.f32 %v670_v54, %v652_v52  ;;  %1926 = vmatmul.msk.bf16.gmra.mxu1 %vm399_vm1, %v1959_v49  ;;  %1935 = vmatmul.msk.bf16.gmra.mxu3 %vm399_vm1, %v1968_v50 }
  0xb5   : > { %v2426_v56 = vmax.f32 %v688_v55, 1e-24  ;;  %v2428_v57 = vpop.f32.mrf.mxu2 }
  0xb6   : > { %v724_v58 = vmul.f32 %v2428_v57, %v2428_v57  ;;  %v2432_v59 = vpop.f32.mrf.mxu3 }
  0xb7   : > { %2000 = vlog2.f32 %v2426_v56  ;;  %v742_v60 = vmul.f32 %v2432_v59, %v2432_v59  ;;  %v2437_v61 = vpop.f32.mrf.mxu0  ;;  %vm1081_vm2 = vweird.f32 %v2426_v56 }
  0xb8   : > { %2002 = vrsqrt.f32 %v2426_v56  ;;  %v653_v62 = vmul.f32 %v2437_v61, %v2437_v61  ;;  %v2442_v63 = vpop.f32.mrf.mxu1 }
  0xb9   : > { %v760_v0 = vadd.f32 %v742_v60, %v724_v58  ;;  %v671_v1 = vmul.f32 %v2442_v63, %v2442_v63 }
  0xbb   : > { %v2446_v2 = vmax.f32 %v760_v0, 1e-24  ;;  %v689_v3 = vadd.f32 %v671_v1, %v653_v62 }
  0xbd   : > { %v2001_v4 = vpop.eup %2000  ;;  %2004 = vlog2.f32 %v2446_v2  ;;  %v2449_v5 = vmax.f32 %v689_v3, 1e-24  ;;  %v2451_v6 = vpop.f32.mrf.mxu2  ;;  %vm1279_vm5 = vweird.f32 %v2446_v2 }
  0xbe   : > { %v2003_v7 = vpop.eup %2002  ;;  %v797_v8 = vmul.f32 0.6931472, %v2001_v4  ;;  %2006 = vrsqrt.f32 %v2446_v2  ;;  %v725_v9 = vmul.f32 %v2451_v6, %v2451_v6  ;;  %v2456_v10 = vpop.f32.mrf.mxu3 }
  0xbf   : > { %v1076_v11 = vmul.f32 %v2003_v7, %v2426_v56  ;;  %2008 = vlog2.f32 %v2449_v5  ;;  %v2460_v12 = vpop.f32.mrf.mxu0  ;;  %v743_v14 = vmul.f32 %v2456_v10, %v2456_v10  ;;  %vm1082_vm3 = vweird.f32 %v2003_v7 }
  0xc0   : > { %v832_v13 = vmul.f32 0.15, %v797_v8  ;;  %2010 = vrsqrt.f32 %v2449_v5  ;;  %v654_v15 = vmul.f32 %v2460_v12, %v2460_v12  ;;  %v2467_v16 = vpop.f32.mrf.mxu1  ;;  %vm1083_vm4 = vmor %vm1081_vm2, %vm1082_vm3  ;;  %vm1091_vm7 = vweird.f32 %v2449_v5 }
  0xc1   : > { %v1077_v17 = vmul.f32 %v2003_v7, %v1076_v11  ;;  %v672_v18 = vmul.f32 %v2467_v16, %v2467_v16  ;;  %v761_v20 = vadd.f32 %v743_v14, %v725_v9 }
  0xc2   : > { %v850_v19 = vmul.f32 1.442695, %v832_v13 }
  0xc3   : > { %v2005_v21 = vpop.eup %2004  ;;  %v1078_v22 = vmul.f32 0.5, %v1077_v17  ;;  %v2473_v25 = vmax.f32 %v761_v20, 1e-24  ;;  %v690_v26 = vadd.f32 %v672_v18, %v654_v15 }
  0xc4   : > { %v2471_v23 = vpop.eup %2006  ;;  %v887_v24 = vmul.f32 0.6931472, %v2005_v21  ;;  %2012 = vpow2.f32 %v850_v19 }
  0xc5   : > { %v2009_v27 = vpop.eup %2008  ;;  %v2475_v28 = vpop.f32.mrf.mxu2  ;;  %v1079_v30 = vsub.f32 1.5, %v1078_v22  ;;  %v1274_v32 = vmul.f32 %v2471_v23, %v2446_v2  ;;  %2014 = vlog2.f32 %v2473_v25  ;;  %v2484_v35 = vmax.f32 %v690_v26, 1e-24 }
  0xc6   : > { %v2477_v29 = vpop.eup %2010  ;;  %v922_v31 = vmul.f32 0.15, %v887_v24  ;;  %v799_v33 = vmul.f32 0.6931472, %v2009_v27  ;;  %v2481_v34 = vpop.f32.mrf.mxu3  ;;  %2016 = vrsqrt.f32 %v2473_v25  ;;  %v726_v39 = vmul.f32 %v2475_v28, %v2475_v28 }
  0xc7   : > { %v2486_v36 = vpop.f32.mrf.mxu0  ;;  %v1086_v38 = vmul.f32 %v2477_v29, %v2449_v5  ;;  %v744_v40 = vmul.f32 %v2481_v34, %v2481_v34  ;;  %v1080_v41 = vmul.f32 %v2003_v7, %v1079_v30  ;;  %v1275_v43 = vmul.f32 %v2471_v23, %v1274_v32 }
  0xc8   : > { %v2488_v37 = vpop.f32.mrf.mxu1  ;;  %v940_v42 = vmul.f32 1.442695, %v922_v31  ;;  %v833_v44 = vmul.f32 0.15, %v799_v33  ;;  %2018 = vlog2.f32 %v2484_v35  ;;  %v655_v47 = vmul.f32 %v2486_v36, %v2486_v36 }
  0xc9   : > { %v762_v46 = vadd.f32 %v744_v40, %v726_v39  ;;  %v673_v48 = vmul.f32 %v2488_v37, %v2488_v37  ;;  %v1087_v49 = vmul.f32 %v2477_v29, %v1086_v38  ;;  %2020 = vrsqrt.f32 %v2484_v35 }
  0xca   : > { %v2013_v45 = vpop.eup %2012  ;;  %v1084_v55 = vsel %vm1083_vm4, %v2003_v7, %v1080_v41  ;;  %2022 = vpow2.f32 %v940_v42  ;;  %v1276_v58 = vmul.f32 0.5, %v1275_v43  ;;  %v852_v0 = vmul.f32 1.442695, %v833_v44 }
  0xcb   : > { %v2015_v50 = vpop.eup %2014  ;;  %v2509_v52 = vmax.f32 %v762_v46, 1e-24  ;;  %v1255_v62 = vmul.f32 %v2013_v45, %v1084_v55  ;;  %v691_v1 = vadd.f32 %v673_v48, %v655_v47  ;;  %v1088_v3 = vmul.f32 0.5, %v1087_v49 }
  0xcc   : > { %v2511_v54 = vpop.eup %2016  ;;  %v889_v4 = vmul.f32 0.6931472, %v2015_v50  ;;  %v1277_v15 = vsub.f32 1.5, %v1276_v58  ;;  %vm1280_vm6 = vweird.f32 %v2471_v23  ;;  %vm1092_vm8 = vweird.f32 %v2477_v29 }
  0xcd   : > { %v2513_v60 = vpop.f32.mrf.mxu2  ;;  %2024 = vlog2.f32 %v2509_v52  ;;  %v1284_v9 = vmul.f32 %v2511_v54, %v2473_v25  ;;  %v2534_v17 = vmul.f32 %v1255_v62, %v2418_v53  ;;  %v2536_v18 = vmax.f32 %v691_v1, 1e-24  ;;  %vm1281_vm9 = vmor %vm1279_vm5, %vm1280_vm6 }
  0xce   : > { %v2516_v8 = vpop.f32.mrf.mxu3  ;;  %v2019_v56 = vpop.eup %2018  ;;  %2026 = vrsqrt.f32 %v2509_v52  ;;  %v727_v7 = vmul.f32 %v2513_v60, %v2513_v60  ;;  %v1089_v21 = vsub.f32 1.5, %v1088_v3  ;;  %v923_v22 = vmul.f32 0.15, %v889_v4  ;;  %vm2581_vm10 = vmor %vm1091_vm7, %vm1092_vm8 }
  0xcf   : > { %v2524_v11 = vpop.f32.mrf.mxu0  ;;  %v2528_v14 = vpop.eup %2020  ;;  %2028 = vpow2.f32 %v852_v0  ;;  %v745_v19 = vmul.f32 %v2516_v8, %v2516_v8  ;;  %v1285_v30 = vmul.f32 %v2511_v54, %v1284_v9  ;;  %v801_v53 = vmul.f32 0.6931472, %v2019_v56 }
  0xd0   : > { %v2526_v13 = vpop.f32.mrf.mxu1  ;;  %v2023_v20 = vpop.eup %2022  ;;  %v656_v24 = vmul.f32 %v2524_v11, %v2524_v11  ;;  %v1096_v31 = vmul.f32 %v2528_v14, %v2484_v35  ;;  %v1278_v33 = vmul.f32 %v2471_v23, %v1277_v15  ;;  %2030 = vlog2.f32 %v2536_v18 }
  0xd1   : > { %v674_v26 = vmul.f32 %v2526_v13, %v2526_v13  ;;  %v763_v32 = vadd.f32 %v745_v19, %v727_v7  ;;  %2032 = vrsqrt.f32 %v2536_v18  ;;  %v976_v42 = vsub.f32 %v2013_v45, %v2023_v20 }
  0xd2   : > { %v2555_v43 = vmul.f32 %v1255_v62, %v2414_v51  ;;  %v1090_v44 = vmul.f32 %v2477_v29, %v1089_v21  ;;  %v942_v46 = vmul.f32 1.442695, %v923_v22  ;;  %v1286_v55 = vmul.f32 0.5, %v1285_v30 }
  0xd3   : > { %v2025_v27 = vpop.eup %2024  ;;  %v692_v39 = vadd.f32 %v674_v26, %v656_v24  ;;  %v2552_v41 = vmax.f32 %v763_v32, 1e-24  ;;  %v834_v58 = vmul.f32 0.15, %v801_v53  ;;  %v1097_v0 = vmul.f32 %v2528_v14, %v1096_v31 }
  0xd4   : > { %v891_v38 = vmul.f32 0.6931472, %v2025_v27  ;;  %v2549_v40 = vpop.eup %2026  ;;  %v1282_v3 = vsel %vm1281_vm9, %v2471_v23, %v1278_v33  ;;  %vm1290_vm11 = vweird.f32 %v2511_v54  ;;  %v994_v2 = vmul.f32 %v976_v42, %v976_v42 }
  0xd5   : > { %v1294_v48 = vmul.f32 %v2549_v40, %v2509_v52  ;;  %v2560_v49 = vpop.f32.mrf.mxu2  ;;  %v2562_v50 = vpop.eup %2028  ;;  %2034 = vlog2.f32 %v2552_v41  ;;  %v2572_v62 = vmax.f32 %v692_v39, 1e-24  ;;  %v2588_v7 = vmul.f32 %v2023_v20, %v1282_v3 }
  0xd6   : > { %v924_v47 = vmul.f32 0.15, %v891_v38  ;;  %2036 = vrsqrt.f32 %v2552_v41  ;;  %v2574_v1 = vpop.f32.mrf.mxu3  ;;  %v728_v56 = vmul.f32 %v2560_v49, %v2560_v49  ;;  %v2031_v9 = vpop.eup %2030  ;;  %v1094_v23 = vsel %vm2581_vm10, %v2477_v29, %v1090_v44  ;;  %1012 = vadd.xlane.f32.xlu0 %v994_v2 }
  0xd7   : > { %v1295_v45 = vmul.f32 %v2549_v40, %v1294_v48  ;;  %2038 = vpow2.f32 %v942_v46  ;;  %vm1289_vm12 = vweird.f32 %v2473_v25  ;;  %v2594_v15 = vpop.f32.mrf.mxu0  ;;  %v2596_v19 = vpop.eup %2032  ;;  %v1098_v21 = vmul.f32 0.5, %v1097_v0 }
  0xd8   : > { %v944_v51 = vmul.f32 1.442695, %v924_v47  ;;  %vm1101_vm13 = vweird.f32 %v2484_v35  ;;  %v803_v22 = vmul.f32 0.6931472, %v2031_v9  ;;  %2040 = vlog2.f32 %v2572_v62  ;;  %v2602_v24 = vpop.f32.mrf.mxu1  ;;  %vm1291_vm1 = vmor %vm1289_vm12, %vm1290_vm11 }
  0xd9   : > { %v1296_v5 = vmul.f32 0.5, %v1295_v45  ;;  %v746_v20 = vmul.f32 %v2574_v1, %v2574_v1  ;;  %v1287_v29 = vsub.f32 1.5, %v1286_v55  ;;  %v854_v26 = vmul.f32 1.442695, %v834_v58 }
  0xda   : > { %2042 = vpow2.f32 %v944_v51  ;;  %v1106_v27 = vmul.f32 %v2596_v19, %v2536_v18  ;;  %v835_v53 = vmul.f32 0.15, %v803_v22  ;;  %v657_v32 = vmul.f32 %v2594_v15, %v2594_v15 }
  0xdb   : > { %v2035_v30 = vpop.eup %2034  ;;  %2044 = vrsqrt.f32 %v2572_v62  ;;  %v764_v31 = vadd.f32 %v746_v20, %v728_v56  ;;  %v1297_v38 = vsub.f32 1.5, %v1296_v5  ;;  %v675_v44 = vmul.f32 %v2602_v24, %v2602_v24 }
  0xdc   : > { %v2609_v33 = vpop.eup %2036  ;;  %v1107_v39 = vmul.f32 %v2596_v19, %v1106_v27  ;;  %v893_v42 = vmul.f32 0.6931472, %v2035_v30  ;;  %v2615_v46 = vmul.f32 %v2562_v50, %v1094_v23  ;;  %v1099_v47 = vsub.f32 1.5, %v1098_v21 }
  0xdd   : > { %v1304_v48 = vmul.f32 %v2609_v33, %v2552_v41  ;;  %v2619_v55 = vmax.f32 %v764_v31, 1e-24  ;;  %v2621_v58 = vpop.eup %2038  ;;  %v1288_v0 = vmul.f32 %v2511_v54, %v1287_v29  ;;  %vm1102_vm14 = vweird.f32 %v2528_v14 }
  0xde   : > { %vm1299_vm15 = vweird.f32 %v2509_v52  ;;  %v1108_v51 = vmul.f32 0.5, %v1107_v39  ;;  %v2041_v45 = vpop.eup %2040  ;;  %2046 = vpow2.f32 %v854_v26  ;;  %v856_v3 = vmul.f32 1.442695, %v835_v53  ;;  %vm2659_vm4 = vmor %vm1101_vm13, %vm1102_vm14 }
  0xdf   : > { %v1305_v4 = vmul.f32 %v2609_v33, %v1304_v48  ;;  %v693_v2 = vadd.f32 %v675_v44, %v657_v32  ;;  %v1298_v9 = vmul.f32 %v2549_v40, %v1297_v38  ;;  %vm1300_vm0 = vweird.f32 %v2549_v40 }
  0xe0   : > { %v2627_v56 = vpop.eup %2042  ;;  %v925_v23 = vmul.f32 0.15, %v893_v42  ;;  %2048 = vlog2.f32 %v2619_v55  ;;  %v1543_v21 = vmul.f32 %v2588_v7, %v2432_v59  ;;  %v2638_v22 = vmul.f32 %v2615_v46, %v2442_v63  ;;  %vm1301_vm3 = vmor %vm1299_vm15, %vm1300_vm0 }
  0xe1   : > { %v2632_v5 = vpop.eup %2044  ;;  %v1100_v20 = vmul.f32 %v2528_v14, %v1099_v47  ;;  %vm1111_vm2 = vweird.f32 %v2536_v18  ;;  %v1292_v29 = vsel %vm1291_vm1, %v2511_v54, %v1288_v0  ;;  %v1109_v26 = vsub.f32 1.5, %v1108_v51 }
  0xe2   : > { %v805_v27 = vmul.f32 0.6931472, %v2041_v45  ;;  %2050 = vrsqrt.f32 %v2619_v55  ;;  %v2649_v59 = vmul.f32 %v2621_v58, %v1292_v29  ;;  %v1306_v63 = vmul.f32 0.5, %v1305_v4  ;;  %v2686_v45 = vpop.f32.mrf.mxu2 }
  0xe3   : > { %2052 = vpow2.f32 %v856_v3  ;;  %v2653_v25 = vmax.f32 %v693_v2, 1e-24  ;;  %v1302_v30 = vsel %vm1301_vm3, %v2549_v40, %v1298_v9  ;;  %v946_v53 = vmul.f32 1.442695, %v925_v23  ;;  %v2688_v3 = vpop.f32.mrf.mxu3 }
  0xe4   : > { %v1116_v31 = vmul.f32 %v2632_v5, %v2572_v62  ;;  %v1489_v52 = vmul.f32 %v2588_v7, %v2428_v57  ;;  %v2668_v32 = vpop.eup %2046  ;;  %v1104_v38 = vsel %vm2659_vm4, %v2528_v14, %v1100_v20  ;;  %v1455_v35 = vmul.f32 %v2627_v56, %v1302_v30 }
  0xe5   : > { %vm1309_vm5 = vweird.f32 %v2552_v41  ;;  %v1561_v39 = vsub.f32 %v2534_v17, %v1543_v21  ;;  %v1110_v42 = vmul.f32 %v2596_v19, %v1109_v26  ;;  %vm1112_vm6 = vweird.f32 %v2596_v19  ;;  %v2707_v26 = vpop.f32.mrf.mxu0 }
  0xe6   : > { %v2049_v40 = vpop.eup %2048  ;;  %v836_v44 = vmul.f32 0.15, %v805_v27  ;;  %v1507_v57 = vsub.f32 %v2555_v43, %v1489_v52  ;;  %v1307_v7 = vsub.f32 1.5, %v1306_v63  ;;  %2054 = vrsqrt.f32 %v2653_v25  ;;  %vm1113_vm7 = vmor %vm1111_vm2, %vm1112_vm6  ;;  %v2709_v27 = vpop.f32.mrf.mxu1 }
  0xe7   : > { %v895_v47 = vmul.f32 0.6931472, %v2049_v40  ;;  %v1597_v48 = vmul.f32 %v1561_v39, %v1561_v39  ;;  %v1544_v0 = vmul.f32 %v2649_v59, %v2456_v10  ;;  %v1257_v17 = vmul.f32 %v2668_v32, %v1104_v38 }
  0xe8   : > { %v2680_v14 = vpop.eup %2050  ;;  %2056 = vpow2.f32 %v946_v53  ;;  %v1117_v51 = vmul.f32 %v2632_v5, %v1116_v31  ;;  %v1545_v4 = vmul.f32 %v1455_v35, %v2481_v34  ;;  %vm1310_vm8 = vweird.f32 %v2609_v33 }
  0xe9   : > { %v2690_v43 = vpop.eup %2052  ;;  %2058 = vlog2.f32 %v2653_v25  ;;  %v1579_v10 = vmul.f32 %v1507_v57, %v1507_v57  ;;  %v1114_v2 = vsel %vm1113_vm7, %v2596_v19, %v1110_v42  ;;  %v858_v9 = vmul.f32 1.442695, %v836_v44  ;;  %vm2732_vm10 = vmor %vm1309_vm5, %vm1310_vm8 }
  0xea   : > { %v926_v23 = vmul.f32 0.15, %v895_v47  ;;  %v977_v21 = vsub.f32 %v2562_v50, %v2621_v58  ;;  %v1308_v20 = vmul.f32 %v2609_v33, %v1307_v7  ;;  %v1314_v34 = vmul.f32 %v2680_v14, %v2619_v55 }
  0xeb   : > { %v1615_v29 = vadd.f32 %v1597_v48, %v1579_v10  ;;  %v729_v18 = vmul.f32 %v2686_v45, %v2686_v45  ;;  %v1527_v19 = vmul.f32 %v1257_v17, %v2467_v16  ;;  %v1258_v63 = vmul.f32 %v2690_v43, %v1114_v2  ;;  %v2758_v10 = vpop.f32.mrf.mxu2  ;;  %v2760_v2 = vpop.f32.mrf.mxu3 }
  0xec   : > { %v1118_v54 = vmul.f32 0.5, %v1117_v51  ;;  %v995_v30 = vmul.f32 %v977_v21, %v977_v21  ;;  %v2713_v50 = vpop.eup %2054  ;;  %v2716_v58 = vmul.f32 %v1257_v17, %v2460_v12  ;;  %v2719_v53 = vmul.f32 %v1455_v35, %v2475_v28 }
  0xed   : > { %vm1121_vm9 = vweird.f32 %v2572_v62  ;;  %1633 = vadd.xlane.f32.xlu1 %v1615_v29  ;;  %v747_v31 = vmul.f32 %v2688_v3, %v2688_v3  ;;  %v2726_v16 = vsub.f32 %v1527_v19, %v1545_v4  ;;  %2060 = vpow2.f32 %v858_v9  ;;  %v2777_v29 = vpop.f32.mrf.mxu0 }
  0xee   : > { %v2724_v52 = vpop.eup %2056  ;;  %vm1122_vm11 = vweird.f32 %v2632_v5  ;;  %v948_v28 = vmul.f32 1.442695, %v926_v23  ;;  %1014 = vadd.xlane.f32.xlu0 %v995_v30  ;;  %v1312_v35 = vsel %vm2732_vm10, %v2609_v33, %v1308_v20  ;;  %v1315_v39 = vmul.f32 %v2680_v14, %v1314_v34 }
  0xef   : > { %v2059_v38 = vpop.eup %2058  ;;  %v765_v40 = vadd.f32 %v747_v31, %v729_v18  ;;  %v658_v41 = vmul.f32 %v2707_v26, %v2707_v26  ;;  %v2744_v42 = vmul.f32 %v1258_v63, %v2486_v36  ;;  %v1119_v44 = vsub.f32 1.5, %v1118_v54  ;;  %v2779_v18 = vpop.f32.mrf.mxu1  ;;  %vm2794_vm13 = vmor %vm1121_vm9, %vm1122_vm11 }
  0xf0   : > { %v1126_v57 = vmul.f32 %v2713_v50, %v2653_v25  ;;  %v676_v7 = vmul.f32 %v2709_v27, %v2709_v27  ;;  %v1472_v33 = vmul.f32 %v2615_v46, %v2437_v61  ;;  %v1490_v48 = vmul.f32 %v2649_v59, %v2451_v6 }
  0xf1   : > { %v2750_v47 = vmax.f32 %v765_v40, 1e-24  ;;  %v1562_v17 = vsub.f32 %v2638_v22, %v1544_v0  ;;  %v1456_v36 = vmul.f32 %v2724_v52, %v1312_v35  ;;  %2062 = vpow2.f32 %v948_v28 }
  0xf2   : > { %v807_v51 = vmul.f32 0.6931472, %v2059_v38  ;;  %v694_v4 = vadd.f32 %v676_v7, %v658_v41  ;;  %v1316_v9 = vmul.f32 0.5, %v1315_v39  ;;  %v1508_v23 = vsub.f32 %v1472_v33, %v1490_v48 }
  0xf3   : > { %2064 = vlog2.f32 %v2750_v47  ;;  %v1598_v21 = vmul.f32 %v1562_v17, %v1562_v17  ;;  %v2763_v61 = vpop.eup %2060  ;;  %v1120_v6 = vmul.f32 %v2632_v5, %v1119_v44  ;;  %v1127_v46 = vmul.f32 %v2713_v50, %v1126_v57 }
  0xf4   : > { %2066 = vrsqrt.f32 %v2750_v47  ;;  %v2768_v22 = vmax.f32 %v694_v4, 1e-24  ;;  %vm1319_vm12 = vweird.f32 %v2619_v55  ;;  %v1580_v59 = vmul.f32 %v1508_v23, %v1508_v23 }
  0xf5   : > { %v978_v0 = vsub.f32 %v2668_v32, %v2627_v56  ;;  %v730_v20 = vmul.f32 %v2758_v10, %v2758_v10  ;;  %v748_v34 = vmul.f32 %v2760_v2, %v2760_v2  ;;  %v1528_v19 = vmul.f32 %v1258_v63, %v2488_v37 }
  0xf6   : > { %v1546_v54 = vmul.f32 %v1456_v36, %v2516_v8  ;;  %v837_v30 = vmul.f32 0.15, %v807_v51  ;;  %2068 = vlog2.f32 %v2768_v22  ;;  %v1317_v31 = vsub.f32 1.5, %v1316_v9 }
  0xf7   : > { %2070 = vrsqrt.f32 %v2768_v22  ;;  %v1616_v56 = vadd.f32 %v1598_v21, %v1580_v59  ;;  %v996_v32 = vmul.f32 %v978_v0, %v978_v0  ;;  %v2785_v12 = vpop.eup %2062  ;;  %v2788_v28 = vmul.f32 %v1456_v36, %v2513_v60  ;;  %v2828_v21 = vpop.f32.mrf.mxu2 }
  0xf8   : > { %v1128_v8 = vmul.f32 0.5, %v1127_v46  ;;  %v766_v63 = vadd.f32 %v748_v34, %v730_v20  ;;  %v659_v38 = vmul.f32 %v2777_v29, %v2777_v29  ;;  %v1124_v39 = vsel %vm2794_vm13, %v2632_v5, %v1120_v6  ;;  %v2838_v46 = vpop.f32.mrf.mxu3  ;;  %v2842_v34 = vpop.f32.mrf.mxu0 }
  0xf9   : > { %v2065_v35 = vpop.eup %2064  ;;  %vm1320_vm14 = vweird.f32 %v2680_v14  ;;  %1635 = vadd.xlane.f32.xlu2 %v1616_v56  ;;  %1016 = vadd.xlane.f32.xlu1 %v996_v32  ;;  %v677_v60 = vmul.f32 %v2779_v18, %v2779_v18  ;;  %v1509_v62 = vsub.f32 %v2716_v58, %v2719_v53  ;;  %v2810_v41 = vsub.f32 %v1528_v19, %v1546_v54  ;;  %v2844_v19 = vpop.f32.mrf.mxu1 }
  0xfa   : > { %v2808_v40 = vpop.eup %2066  ;;  %v860_v44 = vmul.f32 1.442695, %v837_v30  ;;  %v897_v57 = vmul.f32 0.6931472, %v2065_v35  ;;  %v2812_v7 = vmax.f32 %v766_v63, 1e-24  ;;  %v1318_v5 = vmul.f32 %v2680_v14, %v1317_v31  ;;  %vm1321_vm0 = vmor %vm1319_vm12, %vm1320_vm14 }
  0xfb   : > { %v1324_v33 = vmul.f32 %v2808_v40, %v2750_v47  ;;  %v1599_v48 = vmul.f32 %v2726_v16, %v2726_v16  ;;  %v979_v17 = vsub.f32 %v2690_v43, %v2724_v52  ;;  %v1259_v53 = vmul.f32 %v2763_v61, %v1124_v39 }
  0xfc   : > { %v2069_v58 = vpop.eup %2068  ;;  %v1129_v36 = vsub.f32 1.5, %v1128_v8  ;;  %vm1131_vm15 = vweird.f32 %v2653_v25  ;;  %2072 = vlog2.f32 %v2812_v7  ;;  %v695_v51 = vadd.f32 %v677_v60, %v659_v38 }
  0xfd   : > { %v2824_v4 = vpop.eup %2070  ;;  %v927_v9 = vmul.f32 0.15, %v897_v57  ;;  %v1325_v23 = vmul.f32 %v2808_v40, %v1324_v33  ;;  %2074 = vrsqrt.f32 %v2812_v7  ;;  %v1581_v16 = vmul.f32 %v1509_v62, %v1509_v62 }
  0xfe   : > { %2076 = vpow2.f32 %v860_v44  ;;  %v809_v43 = vmul.f32 0.6931472, %v2069_v58  ;;  %v1136_v52 = vmul.f32 %v2824_v4, %v2768_v22  ;;  %v2836_v6 = vmax.f32 %v695_v51, 1e-24 }
  0xff   : > { %v1322_v59 = vsel %vm1321_vm0, %v2680_v14, %v1318_v5  ;;  %vm1132_vm1 = vweird.f32 %v2713_v50  ;;  %v1617_v0 = vadd.f32 %v1599_v48, %v1581_v16  ;;  %v997_v20 = vmul.f32 %v979_v17, %v979_v17 }
 0x100   : > { %v1457_v55 = vmul.f32 %v2785_v12, %v1322_v59  ;;  %v1130_v54 = vmul.f32 %v2713_v50, %v1129_v36  ;;  %v1326_v30 = vmul.f32 0.5, %v1325_v23  ;;  %v731_v31 = vmul.f32 %v2828_v21, %v2828_v21  ;;  %vm1133_vm3 = vmor %vm1131_vm15, %vm1132_vm1 }
 0x101   : > { %v950_v56 = vmul.f32 1.442695, %v927_v9  ;;  %v1137_v32 = vmul.f32 %v2824_v4, %v1136_v52  ;;  %2078 = vlog2.f32 %v2836_v6  ;;  %1637 = vadd.xlane.f32.xlu0 %v1617_v0  ;;  %1018 = vadd.xlane.f32.xlu1 %v997_v20  ;;  %v749_v14 = vmul.f32 %v2838_v46, %v2838_v46 }
 0x102   : > { %v2073_v37 = vpop.eup %2072  ;;  %v838_v8 = vmul.f32 0.15, %v809_v43  ;;  %2080 = vrsqrt.f32 %v2836_v6  ;;  %v660_v63 = vmul.f32 %v2842_v34, %v2842_v34  ;;  %v678_v38 = vmul.f32 %v2844_v19, %v2844_v19 }
 0x103   : > { %v2859_v35 = vpop.eup %2074  ;;  %v2862_v39 = vmul.f32 %v1259_v53, %v2524_v11  ;;  %v1529_v60 = vmul.f32 %v1259_v53, %v2526_v13  ;;  %v899_v62 = vmul.f32 0.6931472, %v2073_v37  ;;  %v767_v44 = vadd.f32 %v749_v14, %v731_v31 }
 0x104   : > { %v2865_v57 = vpop.eup %2076  ;;  %v1327_v5 = vsub.f32 1.5, %v1326_v30  ;;  %vm1329_vm2 = vweird.f32 %v2750_v47  ;;  %v1334_v33 = vmul.f32 %v2859_v35, %v2812_v7  ;;  %v696_v48 = vadd.f32 %v678_v38, %v660_v63  ;;  %v2918_v47 = vpop.f32.mrf.mxu2 }
 0x105   : > { %v1547_v17 = vmul.f32 %v1457_v55, %v2574_v1  ;;  %2082 = vpow2.f32 %v950_v56  ;;  %v1138_v11 = vmul.f32 0.5, %v1137_v32  ;;  %v2875_v13 = vmax.f32 %v767_v44, 1e-24  ;;  %v2931_v44 = vpop.f32.mrf.mxu1 }
 0x106   : > { %v1134_v58 = vsel %vm1133_vm3, %v2713_v50, %v1130_v54  ;;  %v862_v53 = vmul.f32 1.442695, %v838_v8  ;;  %v928_v36 = vmul.f32 0.15, %v899_v62  ;;  %v1335_v51 = vmul.f32 %v2859_v35, %v1334_v33  ;;  %v2929_v62 = vpop.f32.mrf.mxu0 }
 0x107   : > { %v2079_v9 = vpop.eup %2078  ;;  %v2880_v23 = vmul.f32 %v1457_v55, %v2560_v49  ;;  %v1260_v1 = vmul.f32 %v2865_v57, %v1134_v58  ;;  %2084 = vlog2.f32 %v2875_v13  ;;  %v2884_v25 = vmax.f32 %v696_v48, 1e-24 }
 0x108   : > { %v2886_v16 = vpop.eup %2080  ;;  %v1328_v43 = vmul.f32 %v2808_v40, %v1327_v5  ;;  %vm1330_vm4 = vweird.f32 %v2808_v40  ;;  %v811_v50 = vmul.f32 0.6931472, %v2079_v9  ;;  %2086 = vrsqrt.f32 %v2875_v13 }
 0x109   : > { %v1139_v52 = vsub.f32 1.5, %v1138_v11  ;;  %vm1141_vm5 = vweird.f32 %v2768_v22  ;;  %v1146_v49 = vmul.f32 %v2886_v16, %v2836_v6  ;;  %v1510_v59 = vsub.f32 %v2744_v42, %v2788_v28  ;;  %vm2905_vm6 = vmor %vm1329_vm2, %vm1330_vm4 }
 0x10a   : > { %v2896_v0 = vsub.f32 %v1529_v60, %v1547_v17  ;;  %2088 = vpow2.f32 %v862_v53  ;;  %v952_v20 = vmul.f32 1.442695, %v928_v36  ;;  %v1336_v55 = vmul.f32 0.5, %v1335_v51 }
 0x10b   : > { %v2898_v54 = vpop.eup %2082  ;;  %v2901_v30 = vmul.f32 %v1260_v1, %v2594_v15  ;;  %v839_v56 = vmul.f32 0.15, %v811_v50  ;;  %2090 = vlog2.f32 %v2884_v25  ;;  %v1600_v42 = vmul.f32 %v2810_v41, %v2810_v41 }
 0x10c   : > { %v1530_v28 = vmul.f32 %v1260_v1, %v2602_v24  ;;  %v1332_v32 = vsel %vm2905_vm6, %v2808_v40, %v1328_v43  ;;  %vm1142_vm7 = vweird.f32 %v2824_v4  ;;  %v1147_v15 = vmul.f32 %v2886_v16, %v1146_v49  ;;  %v2924_v24 = vpop.f32.mrf.mxu3 }
 0x10d   : > { %v2085_v14 = vpop.eup %2084  ;;  %v1140_v37 = vmul.f32 %v2824_v4, %v1139_v52  ;;  %2092 = vrsqrt.f32 %v2884_v25  ;;  %v1582_v8 = vmul.f32 %v1510_v59, %v1510_v59  ;;  %v980_v41 = vsub.f32 %v2763_v61, %v2785_v12  ;;  %vm1143_vm8 = vmor %vm1141_vm5, %vm1142_vm7 }
 0x10e   : > { %v2926_v63 = vpop.eup %2086  ;;  %v1458_v40 = vmul.f32 %v2898_v54, %v1332_v32  ;;  %2094 = vpow2.f32 %v952_v20  ;;  %v1337_v38 = vsub.f32 1.5, %v1336_v55  ;;  %v901_v60 = vmul.f32 0.6931472, %v2085_v14 }
 0x10f   : > { %v864_v5 = vmul.f32 1.442695, %v839_v56  ;;  %v1344_v33 = vmul.f32 %v2926_v63, %v2875_v13  ;;  %v1618_v48 = vadd.f32 %v1600_v42, %v1582_v8  ;;  %v732_v61 = vmul.f32 %v2918_v47, %v2918_v47 }
 0x110   : > { %v2937_v12 = vpop.eup %2088  ;;  %v1148_v17 = vmul.f32 0.5, %v1147_v15  ;;  %v929_v11 = vmul.f32 0.15, %v901_v60  ;;  %v998_v58 = vmul.f32 %v980_v41, %v980_v41  ;;  %v750_v53 = vmul.f32 %v2924_v24, %v2924_v24 }
 0x111   : > { %v2091_v36 = vpop.eup %2090  ;;  %vm1339_vm9 = vweird.f32 %v2812_v7  ;;  %v1345_v51 = vmul.f32 %v2926_v63, %v1344_v33  ;;  %1639 = vadd.xlane.f32.xlu1 %v1618_v48  ;;  %v661_v9 = vmul.f32 %v2929_v62, %v2929_v62  ;;  %v679_v1 = vmul.f32 %v2931_v44, %v2931_v44  ;;  %v2986_v48 = vpop.f32.mrf.mxu0 }
 0x112   : > { %v1548_v43 = vmul.f32 %v1458_v40, %v2688_v3  ;;  %v1144_v50 = vsel %vm1143_vm8, %v2824_v4, %v1140_v37  ;;  %vm1340_vm10 = vweird.f32 %v2859_v35  ;;  %v813_v52 = vmul.f32 0.6931472, %v2091_v36  ;;  %1020 = vadd.xlane.f32.xlu2 %v998_v58 }
 0x113   : > { %v2954_v22 = vpop.eup %2092  ;;  %v1261_v49 = vmul.f32 %v2937_v12, %v1144_v50  ;;  %v1338_v59 = vmul.f32 %v2859_v35, %v1337_v38  ;;  %v768_v20 = vadd.f32 %v750_v53, %v732_v61  ;;  %v697_v55 = vadd.f32 %v679_v1, %v661_v9  ;;  %vm1341_vm12 = vmor %vm1339_vm9, %vm1340_vm10  ;;  %v2980_v38 = vpop.f32.mrf.mxu2 }
 0x114   : > { %v2958_v31 = vpop.eup %2094  ;;  %2096 = vpow2.f32 %v864_v5  ;;  %v1149_v56 = vsub.f32 1.5, %v1148_v17  ;;  %v954_v42 = vmul.f32 1.442695, %v929_v11  ;;  %v1346_v3 = vmul.f32 0.5, %v1345_v51  ;;  %v2982_v7 = vpop.f32.mrf.mxu3 }
 0x115   : > { %v1494_v4 = vmul.f32 %v1458_v40, %v2686_v45  ;;  %vm1151_vm11 = vweird.f32 %v2836_v6  ;;  %v1156_v32 = vmul.f32 %v2954_v22, %v2884_v25  ;;  %v2964_v15 = vmax.f32 %v768_v20, 1e-24 }
 0x116   : > { %vm1152_vm13 = vweird.f32 %v2886_v16  ;;  %v840_v14 = vmul.f32 0.15, %v813_v52  ;;  %v2971_v37 = vmax.f32 %v697_v55, 1e-24  ;;  %v1511_v45 = vsub.f32 %v2862_v39, %v2880_v23  ;;  %v2993_v23 = vpop.f32.mrf.mxu1 }
 0x117   : > { %v1566_v8 = vsub.f32 %v1530_v28, %v1548_v43  ;;  %v2976_v41 = vmul.f32 %v1261_v49, %v2707_v26  ;;  %v1342_v40 = vsel %vm1341_vm12, %v2859_v35, %v1338_v59  ;;  %2098 = vlog2.f32 %v2964_v15  ;;  %vm1153_vm15 = vmor %vm1151_vm11, %vm1152_vm13 }
 0x118   : > { %v1459_v60 = vmul.f32 %v2958_v31, %v1342_v40  ;;  %v1150_v5 = vmul.f32 %v2886_v16, %v1149_v56  ;;  %2100 = vpow2.f32 %v954_v42  ;;  %v1347_v33 = vsub.f32 1.5, %v1346_v3 }
 0x119   : > { %vm1349_vm14 = vweird.f32 %v2875_v13  ;;  %v1157_v26 = vmul.f32 %v2954_v22, %v1156_v32  ;;  %2102 = vrsqrt.f32 %v2964_v15  ;;  %v1583_v35 = vmul.f32 %v1511_v45, %v1511_v45 }
 0x11a   : > { %v1601_v39 = vmul.f32 %v2896_v0, %v2896_v0  ;;  %v2995_v28 = vpop.eup %2096  ;;  %v866_v61 = vmul.f32 1.442695, %v840_v14  ;;  %2104 = vlog2.f32 %v2971_v37  ;;  %v733_v17 = vmul.f32 %v2980_v38, %v2980_v38 }
 0x11b   : > { %v751_v11 = vmul.f32 %v2982_v7, %v2982_v7  ;;  %v1531_v58 = vmul.f32 %v1261_v49, %v2709_v27  ;;  %2106 = vrsqrt.f32 %v2971_v37  ;;  %v662_v53 = vmul.f32 %v2986_v48, %v2986_v48 }
 0x11c   : > { %v1619_v0 = vadd.f32 %v1601_v39, %v1583_v35  ;;  %v1154_v36 = vsel %vm1153_vm15, %v2886_v16, %v1150_v5  ;;  %v680_v9 = vmul.f32 %v2993_v23, %v2993_v23  ;;  %v1512_v1 = vsub.f32 %v2901_v30, %v1494_v4  ;;  %v3049_v5 = vpop.f32.mrf.mxu3 }
 0x11d   : > { %v769_v51 = vadd.f32 %v751_v11, %v733_v17  ;;  %v2099_v27 = vpop.eup %2098  ;;  %v1549_v43 = vmul.f32 %v1459_v60, %v2760_v2  ;;  %v1262_v6 = vmul.f32 %v2995_v28, %v1154_v36  ;;  %vm1350_vm0 = vweird.f32 %v2926_v63 }
 0x11e   : > { %v1158_v50 = vmul.f32 0.5, %v1157_v26  ;;  %vm1161_vm1 = vweird.f32 %v2884_v25  ;;  %1641 = vadd.xlane.f32.xlu2 %v1619_v0  ;;  %v3018_v52 = vpop.eup %2100  ;;  %v1348_v16 = vmul.f32 %v2926_v63, %v1347_v33  ;;  %2108 = vpow2.f32 %v866_v61  ;;  %vm1351_vm3 = vmor %vm1349_vm14, %vm1350_vm0  ;;  %v3061_v0 = vpop.f32.mrf.mxu1 }
 0x11f   : > { %v903_v49 = vmul.f32 0.6931472, %v2099_v27  ;;  %v3021_v59 = vmax.f32 %v769_v51, 1e-24  ;;  %v3023_v30 = vpop.eup %2102  ;;  %v698_v20 = vadd.f32 %v680_v9, %v662_v53  ;;  %v1584_v2 = vmul.f32 %v1512_v1, %v1512_v1 }
 0x120   : > { %v1602_v55 = vmul.f32 %v1566_v8, %v1566_v8  ;;  %v981_v56 = vsub.f32 %v2865_v57, %v2898_v54  ;;  %v2105_v42 = vpop.eup %2104  ;;  %v1495_v3 = vmul.f32 %v1459_v60, %v2758_v10  ;;  %v1354_v32 = vmul.f32 %v3023_v30, %v2964_v15  ;;  %v3037_v8 = vpop.f32.mrf.mxu2 }
 0x121   : > { %v930_v4 = vmul.f32 0.15, %v903_v49  ;;  %2110 = vlog2.f32 %v3021_v59  ;;  %v3031_v14 = vpop.eup %2106  ;;  %v3033_v45 = vsub.f32 %v1531_v58, %v1549_v43  ;;  %v1159_v40 = vsub.f32 1.5, %v1158_v50  ;;  %v3059_v58 = vpop.f32.mrf.mxu0 }
 0x122   : > { %vm1162_vm2 = vweird.f32 %v2954_v22  ;;  %2112 = vrsqrt.f32 %v3021_v59  ;;  %v3040_v57 = vmul.f32 %v1262_v6, %v2777_v29  ;;  %v1355_v10 = vmul.f32 %v3023_v30, %v1354_v32 }
 0x123   : > { %v815_v54 = vmul.f32 0.6931472, %v2105_v42  ;;  %v1166_v60 = vmul.f32 %v3031_v14, %v2971_v37  ;;  %v1352_v33 = vsel %vm1351_vm3, %v2926_v63, %v1348_v16  ;;  %v3052_v26 = vmax.f32 %v698_v20, 1e-24  ;;  %vm1163_vm4 = vmor %vm1161_vm1, %vm1162_vm2 }
 0x124   : > { %v1620_v35 = vadd.f32 %v1602_v55, %v1584_v2  ;;  %v999_v29 = vmul.f32 %v981_v56, %v981_v56  ;;  %v3054_v39 = vpop.eup %2108  ;;  %v1460_v61 = vmul.f32 %v3018_v52, %v1352_v33  ;;  %v956_v13 = vmul.f32 1.442695, %v930_v4 }
 0x125   : > { %v1356_v17 = vmul.f32 0.5, %v1355_v10  ;;  %v734_v11 = vmul.f32 %v3037_v8, %v3037_v8  ;;  %v1160_v53 = vmul.f32 %v2954_v22, %v1159_v40  ;;  %v1167_v63 = vmul.f32 %v3031_v14, %v1166_v60 }
 0x126   : > { %2114 = vlog2.f32 %v3052_v26  ;;  %1643 = vadd.xlane.f32.xlu0 %v1620_v35  ;;  %1022 = vadd.xlane.f32.xlu2 %v999_v29  ;;  %v752_v36 = vmul.f32 %v3049_v5, %v3049_v5  ;;  %v1532_v9 = vmul.f32 %v1262_v6, %v2779_v18  ;;  %v841_v27 = vmul.f32 0.15, %v815_v54 }
 0x127   : > { %v2111_v51 = vpop.eup %2110  ;;  %v1357_v1 = vsub.f32 1.5, %v1356_v17  ;;  %2116 = vrsqrt.f32 %v3052_v26  ;;  %v663_v49 = vmul.f32 %v3059_v58, %v3059_v58  ;;  %v681_v20 = vmul.f32 %v3061_v0, %v3061_v0 }
 0x128   : > { %v3070_v43 = vpop.eup %2112  ;;  %v905_v50 = vmul.f32 0.6931472, %v2111_v51  ;;  %v770_v16 = vadd.f32 %v752_v36, %v734_v11  ;;  %v1550_v2 = vmul.f32 %v1460_v61, %v2838_v46  ;;  %2118 = vpow2.f32 %v956_v13 }
 0x129   : > { %vm1359_vm5 = vweird.f32 %v2964_v15  ;;  %v1364_v18 = vmul.f32 %v3070_v43, %v3021_v59  ;;  %v1164_v6 = vsel %vm1163_vm4, %v2954_v22, %v1160_v53  ;;  %v1168_v55 = vmul.f32 0.5, %v1167_v63 }
 0x12a   : > { %v931_v56 = vmul.f32 0.15, %v905_v50  ;;  %v3085_v42 = vmax.f32 %v770_v16, 1e-24  ;;  %v1263_v4 = vmul.f32 %v3054_v39, %v1164_v6  ;;  %vm1360_vm6 = vweird.f32 %v3023_v30 }
 0x12b   : > { %v868_v46 = vmul.f32 1.442695, %v841_v27  ;;  %v1365_v25 = vmul.f32 %v3070_v43, %v1364_v18  ;;  %v1358_v40 = vmul.f32 %v3023_v30, %v1357_v1  ;;  %vm1171_vm7 = vweird.f32 %v2971_v37  ;;  %vm1361_vm8 = vmor %vm1359_vm5, %vm1360_vm6  ;;  %v3126_v27 = vpop.f32.mrf.mxu2 }
 0x12c   : > { %v2115_v32 = vpop.eup %2114  ;;  %2120 = vlog2.f32 %v3085_v42  ;;  %v699_v10 = vadd.f32 %v681_v20, %v663_v49  ;;  %v1513_v22 = vsub.f32 %v2976_v41, %v1495_v3  ;;  %v958_v60 = vmul.f32 1.442695, %v931_v56  ;;  %v3134_v20 = vpop.f32.mrf.mxu3 }
 0x12d   : > { %v3094_v54 = vpop.eup %2116  ;;  %v1366_v33 = vmul.f32 0.5, %v1365_v25  ;;  %v817_v35 = vmul.f32 0.6931472, %v2115_v32  ;;  %2122 = vrsqrt.f32 %v3085_v42  ;;  %v3098_v29 = vmul.f32 %v1460_v61, %v2828_v21  ;;  %v3155_v25 = vpop.f32.mrf.mxu1 }
 0x12e   : > { %v1169_v13 = vsub.f32 1.5, %v1168_v55  ;;  %v1176_v17 = vmul.f32 %v3094_v54, %v3052_v26  ;;  %v1603_v11 = vmul.f32 %v3033_v45, %v3033_v45  ;;  %v3104_v53 = vpop.eup %2118  ;;  %v3106_v41 = vsub.f32 %v1532_v9, %v1550_v2 }
 0x12f   : > { %v3109_v3 = vmul.f32 %v1263_v4, %v2842_v34  ;;  %v3112_v63 = vmul.f32 %v1263_v4, %v2844_v19  ;;  %2124 = vpow2.f32 %v868_v46  ;;  %v1367_v21 = vsub.f32 1.5, %v1366_v33  ;;  %v3153_v46 = vpop.f32.mrf.mxu0 }
 0x130   : > { %v1177_v61 = vmul.f32 %v3094_v54, %v1176_v17  ;;  %v3119_v45 = vmax.f32 %v699_v10, 1e-24  ;;  %v1585_v36 = vmul.f32 %v1513_v22, %v1513_v22  ;;  %v1362_v51 = vsel %vm1361_vm8, %v3023_v30, %v1358_v40 }
 0x131   : > { %vm1172_vm9 = vweird.f32 %v3031_v14  ;;  %2126 = vpow2.f32 %v958_v60  ;;  %v842_v34 = vmul.f32 0.15, %v817_v35  ;;  %v1461_v9 = vmul.f32 %v3104_v53, %v1362_v51 }
 0x132   : > { %v2121_v19 = vpop.eup %2120  ;;  %v1170_v1 = vmul.f32 %v3031_v14, %v1169_v13  ;;  %vm1369_vm10 = vweird.f32 %v3021_v59  ;;  %v1621_v15 = vadd.f32 %v1603_v11, %v1585_v36  ;;  %v1178_v16 = vmul.f32 0.5, %v1177_v61  ;;  %vm3147_vm13 = vmor %vm1171_vm7, %vm1172_vm9 }
 0x133   : > { %v3128_v50 = vpop.eup %2122  ;;  %vm1181_vm11 = vweird.f32 %v3052_v26  ;;  %v907_v30 = vmul.f32 0.6931472, %v2121_v19  ;;  %2128 = vlog2.f32 %v3119_v45  ;;  %v982_v49 = vsub.f32 %v2937_v12, %v2958_v31 }
 0x134   : > { %v1368_v2 = vmul.f32 %v3070_v43, %v1367_v21  ;;  %vm1370_vm12 = vweird.f32 %v3070_v43  ;;  %v1374_v18 = vmul.f32 %v3128_v50, %v3085_v42  ;;  %2130 = vrsqrt.f32 %v3119_v45  ;;  %1645 = vadd.xlane.f32.xlu1 %v1621_v15 }
 0x135   : > { %v3141_v6 = vpop.eup %2124  ;;  %v870_v31 = vmul.f32 1.442695, %v842_v34  ;;  %v932_v55 = vmul.f32 0.15, %v907_v30  ;;  %v1000_v56 = vmul.f32 %v982_v49, %v982_v49  ;;  %v983_v4 = vsub.f32 %v2995_v28, %v3018_v52  ;;  %vm1371_vm14 = vmor %vm1369_vm10, %vm1370_vm12 }
 0x136   : > { %v1174_v32 = vsel %vm3147_vm13, %v3031_v14, %v1170_v1  ;;  %v1375_v37 = vmul.f32 %v3128_v50, %v1374_v18  ;;  %v735_v40 = vmul.f32 %v3126_v27, %v3126_v27  ;;  %v753_v10 = vmul.f32 %v3134_v20, %v3134_v20 }
 0x137   : > { %v3165_v22 = vpop.eup %2126  ;;  %v3168_v28 = vmul.f32 %v1461_v9, %v2918_v47  ;;  %v1179_v52 = vsub.f32 1.5, %v1178_v16  ;;  %v960_v60 = vmul.f32 1.442695, %v932_v55  ;;  %1024 = vadd.xlane.f32.xlu0 %v1000_v56  ;;  %v1001_v33 = vmul.f32 %v983_v4, %v983_v4  ;;  %v3195_v16 = vpop.f32.mrf.mxu2 }
 0x138   : > { %v1551_v35 = vmul.f32 %v1461_v9, %v2924_v24  ;;  %v1376_v14 = vmul.f32 0.5, %v1375_v37  ;;  %v771_v13 = vadd.f32 %v753_v10, %v735_v40  ;;  %v664_v17 = vmul.f32 %v3153_v46, %v3153_v46  ;;  %v3228_v56 = vpop.f32.mrf.mxu0  ;;  %v3230_v4 = vpop.f32.mrf.mxu1 }
 0x139   : > { %v2129_v11 = vpop.eup %2128  ;;  %v1264_v47 = vmul.f32 %v3141_v6, %v1174_v32  ;;  %v1372_v21 = vsel %vm1371_vm14, %v3070_v43, %v1368_v2  ;;  %2132 = vpow2.f32 %v870_v31  ;;  %1026 = vadd.xlane.f32.xlu2 %v1001_v33  ;;  %v682_v24 = vmul.f32 %v3155_v25, %v3155_v25  ;;  %v3216_v2 = vpop.f32.mrf.mxu3 }
 0x13a   : > { %v3181_v61 = vpop.eup %2130  ;;  %v1462_v59 = vmul.f32 %v3165_v22, %v1372_v21  ;;  %vm1182_vm15 = vweird.f32 %v3094_v54  ;;  %vm1379_vm0 = vweird.f32 %v3085_v42  ;;  %v3186_v36 = vmax.f32 %v771_v13, 1e-24 }
 0x13b   : > { %v1514_v51 = vsub.f32 %v3040_v57, %v3098_v29  ;;  %v1180_v43 = vmul.f32 %v3094_v54, %v1179_v52  ;;  %2134 = vpow2.f32 %v960_v60  ;;  %v1186_v34 = vmul.f32 %v3181_v61, %v3119_v45  ;;  %vm3207_vm1 = vmor %vm1181_vm11, %vm1182_vm15 }
 0x13c   : > { %v700_v19 = vadd.f32 %v682_v24, %v664_v17  ;;  %v1569_v9 = vsub.f32 %v3112_v63, %v1551_v35  ;;  %v1377_v1 = vsub.f32 1.5, %v1376_v14  ;;  %v819_v15 = vmul.f32 0.6931472, %v2129_v11 }
 0x13d   : > { %2136 = vlog2.f32 %v3186_v36  ;;  %v3198_v30 = vmul.f32 %v1264_v47, %v2929_v62  ;;  %v1534_v57 = vmul.f32 %v1264_v47, %v2931_v44  ;;  %v1187_v29 = vmul.f32 %v3181_v61, %v1186_v34 }
 0x13e   : > { %2138 = vrsqrt.f32 %v3186_v36  ;;  %vm1380_vm2 = vweird.f32 %v3128_v50  ;;  %v3212_v49 = vmax.f32 %v700_v19, 1e-24  ;;  %v1586_v62 = vmul.f32 %v1514_v51, %v1514_v51 }
 0x13f   : > { %v1604_v44 = vmul.f32 %v3106_v41, %v3106_v41  ;;  %v3218_v18 = vpop.eup %2132  ;;  %v1552_v12 = vmul.f32 %v1462_v59, %v2982_v7  ;;  %v1184_v26 = vsel %vm3207_vm1, %v3094_v54, %v1180_v43  ;;  %v984_v31 = vsub.f32 %v3054_v39, %v3104_v53  ;;  %vm1381_vm3 = vmor %vm1379_vm0, %vm1380_vm2 }
 0x140   : > { %v736_v55 = vmul.f32 %v3195_v16, %v3195_v16  ;;  %v1378_v41 = vmul.f32 %v3128_v50, %v1377_v1  ;;  %v843_v32 = vmul.f32 0.15, %v819_v15  ;;  %2140 = vlog2.f32 %v3212_v49 }
 0x141   : > { %v1622_v7 = vadd.f32 %v1604_v44, %v1586_v62  ;;  %v3234_v37 = vpop.eup %2134  ;;  %v1188_v40 = vmul.f32 0.5, %v1187_v29  ;;  %2142 = vrsqrt.f32 %v3212_v49  ;;  %v1002_v54 = vmul.f32 %v984_v31, %v984_v31  ;;  %v3277_v44 = vpop.f32.mrf.mxu2 }
 0x142   : > { %v754_v39 = vmul.f32 %v3216_v2, %v3216_v2  ;;  %v3240_v10 = vmul.f32 %v1462_v59, %v2980_v38  ;;  %v1265_v52 = vmul.f32 %v3218_v18, %v1184_v26  ;;  %v665_v60 = vmul.f32 %v3228_v56, %v3228_v56  ;;  %v3281_v31 = vpop.f32.mrf.mxu3 }
 0x143   : > { %v2137_v53 = vpop.eup %2136  ;;  %1647 = vadd.xlane.f32.xlu0 %v1622_v7  ;;  %v683_v33 = vmul.f32 %v3230_v4, %v3230_v4  ;;  %v3249_v14 = vsub.f32 %v1534_v57, %v1552_v12  ;;  %1028 = vadd.xlane.f32.xlu1 %v1002_v54  ;;  %v1515_v17 = vsub.f32 %v3109_v3, %v3168_v28  ;;  %v872_v47 = vmul.f32 1.442695, %v843_v32  ;;  %v3285_v32 = vpop.f32.mrf.mxu0 }
 0x144   : > { %v3247_v35 = vpop.eup %2138  ;;  %v909_v38 = vmul.f32 0.6931472, %v2137_v53  ;;  %v772_v13 = vadd.f32 %v754_v39, %v736_v55  ;;  %v1382_v11 = vsel %vm1381_vm3, %v3128_v50, %v1378_v41  ;;  %vm1192_vm4 = vweird.f32 %v3181_v61  ;;  %v3287_v7 = vpop.f32.mrf.mxu1 }
 0x145   : > { %v1384_v21 = vmul.f32 %v3247_v35, %v3186_v36  ;;  %v701_v24 = vadd.f32 %v683_v33, %v665_v60  ;;  %v1463_v59 = vmul.f32 %v3234_v37, %v1382_v11  ;;  %v1189_v51 = vsub.f32 1.5, %v1188_v40 }
 0x146   : > { %v933_v42 = vmul.f32 0.15, %v909_v38  ;;  %v3262_v43 = vmax.f32 %v772_v13, 1e-24  ;;  %v2141_v34 = vpop.eup %2140  ;;  %v3265_v19 = vmul.f32 %v1265_v52, %v2986_v48  ;;  %vm1191_vm5 = vweird.f32 %v3119_v45 }
 0x147   : > { %v1385_v3 = vmul.f32 %v3247_v35, %v1384_v21  ;;  %v1587_v50 = vmul.f32 %v1515_v17, %v1515_v17  ;;  %v1605_v28 = vmul.f32 %v1569_v9, %v1569_v9  ;;  %v3269_v1 = vpop.eup %2142  ;;  %v821_v57 = vmul.f32 0.6931472, %v2141_v34  ;;  %vm1193_vm7 = vmor %vm1191_vm5, %vm1192_vm4 }
 0x148   : > { %v962_v15 = vmul.f32 1.442695, %v933_v42  ;;  %2144 = vlog2.f32 %v3262_v43  ;;  %v3272_v29 = vmax.f32 %v701_v24, 1e-24  ;;  %v1535_v63 = vmul.f32 %v1265_v52, %v2993_v23 }
 0x149   : > { %2146 = vpow2.f32 %v872_v47  ;;  %v1386_v62 = vmul.f32 0.5, %v1385_v3  ;;  %v1196_v48 = vmul.f32 %v3269_v1, %v3212_v49  ;;  %v1553_v12 = vmul.f32 %v1463_v59, %v3049_v5 }
 0x14a   : > { %v1190_v9 = vmul.f32 %v3181_v61, %v1189_v51  ;;  %2148 = vpow2.f32 %v962_v15  ;;  %v844_v26 = vmul.f32 0.15, %v821_v57  ;;  %v1623_v23 = vadd.f32 %v1605_v28, %v1587_v50 }
 0x14b   : > { %v1387_v55 = vsub.f32 1.5, %v1386_v62  ;;  %v1197_v41 = vmul.f32 %v3269_v1, %v1196_v48  ;;  %2150 = vrsqrt.f32 %v3262_v43  ;;  %v985_v5 = vsub.f32 %v3141_v6, %v3165_v22 }
 0x14c   : > { %v874_v40 = vmul.f32 1.442695, %v844_v26  ;;  %2152 = vlog2.f32 %v3272_v29  ;;  %v737_v54 = vmul.f32 %v3277_v44, %v3277_v44  ;;  %vm1390_vm6 = vweird.f32 %v3247_v35  ;;  %1649 = vadd.xlane.f32.xlu2 %v1623_v23 }
 0x14d   : > { %v1198_v39 = vmul.f32 0.5, %v1197_v41  ;;  %2154 = vrsqrt.f32 %v3272_v29  ;;  %v755_v53 = vmul.f32 %v3281_v31, %v3281_v31  ;;  %v1388_v60 = vmul.f32 %v3247_v35, %v1387_v55 }
 0x14e   : > { %v2145_v52 = vpop.eup %2144  ;;  %v1003_v33 = vmul.f32 %v985_v5, %v985_v5  ;;  %v666_v38 = vmul.f32 %v3285_v32, %v3285_v32  ;;  %v684_v6 = vmul.f32 %v3287_v7, %v3287_v7  ;;  %2156 = vpow2.f32 %v874_v40  ;;  %v3351_v40 = vpop.f32.mrf.mxu2 }
 0x14f   : > { %v3303_v22 = vpop.eup %2146  ;;  %v1199_v13 = vsub.f32 1.5, %v1198_v39  ;;  %v911_v17 = vmul.f32 0.6931472, %v2145_v52  ;;  %v773_v11 = vadd.f32 %v755_v53, %v737_v54  ;;  %v3308_v21 = vmul.f32 %v1463_v59, %v3037_v8  ;;  %v3364_v53 = vpop.f32.mrf.mxu0 }
 0x150   : > { %v3305_v47 = vpop.eup %2148  ;;  %vm1389_vm8 = vweird.f32 %v3186_v36  ;;  %vm1201_vm9 = vweird.f32 %v3212_v49  ;;  %1030 = vadd.xlane.f32.xlu0 %v1003_v33  ;;  %v702_v24 = vadd.f32 %v684_v6, %v666_v38  ;;  %v3318_v42 = vsub.f32 %v1535_v63, %v1553_v12  ;;  %v3360_v49 = vpop.f32.mrf.mxu3 }
 0x151   : > { %v3316_v51 = vpop.eup %2150  ;;  %v1194_v34 = vsel %vm1193_vm7, %v3181_v61, %v1190_v9  ;;  %vm1391_vm10 = vmor %vm1389_vm8, %vm1390_vm6  ;;  %v934_v8 = vmul.f32 0.15, %v911_v17  ;;  %v1516_v45 = vsub.f32 %v3198_v30, %v3240_v10  ;;  %v3329_v28 = vmax.f32 %v773_v11, 1e-24 }
 0x152   : > { %v2153_v59 = vpop.eup %2152  ;;  %v1266_v36 = vmul.f32 %v3303_v22, %v1194_v34  ;;  %v1392_v3 = vsel %vm1391_vm10, %v3247_v35, %v1388_v60  ;;  %v1394_v50 = vmul.f32 %v3316_v51, %v3262_v43  ;;  %v1200_v57 = vmul.f32 %v3269_v1, %v1199_v13 }
 0x153   : > { %v3331_v15 = vpop.eup %2154  ;;  %v1464_v61 = vmul.f32 %v3305_v47, %v1392_v3  ;;  %vm1202_vm11 = vweird.f32 %v3269_v1  ;;  %v964_v63 = vmul.f32 1.442695, %v934_v8  ;;  %v823_v10 = vmul.f32 0.6931472, %v2153_v59 }
 0x154   : > { %v1395_v30 = vmul.f32 %v3316_v51, %v1394_v50  ;;  %v1206_v35 = vmul.f32 %v3331_v15, %v3272_v29  ;;  %v3339_v62 = vmax.f32 %v702_v24, 1e-24  ;;  %v3341_v48 = vpop.eup %2156  ;;  %v1588_v12 = vmul.f32 %v1516_v45, %v1516_v45  ;;  %vm1203_vm12 = vmor %vm1201_vm9, %vm1202_vm11 }
 0x155   : > { %2158 = vpow2.f32 %v964_v63  ;;  %v1606_v9 = vmul.f32 %v3249_v14, %v3249_v14  ;;  %v986_v26 = vsub.f32 %v3218_v18, %v3234_v37  ;;  %v845_v41 = vmul.f32 0.15, %v823_v10 }
 0x156   : > { %v1396_v55 = vmul.f32 0.5, %v1395_v30  ;;  %v1207_v23 = vmul.f32 %v3331_v15, %v1206_v35  ;;  %2160 = vlog2.f32 %v3329_v28  ;;  %v3354_v5 = vmul.f32 %v1266_v36, %v3059_v58  ;;  %v3366_v58 = vpop.f32.mrf.mxu1 }
 0x157   : > { %v1554_v54 = vmul.f32 %v1464_v61, %v3134_v20  ;;  %v1204_v14 = vsel %vm1203_vm12, %v3269_v1, %v1200_v57  ;;  %vm1399_vm13 = vweird.f32 %v3262_v43  ;;  %2162 = vrsqrt.f32 %v3329_v28 }
 0x158   : > { %v1267_v18 = vmul.f32 %v3341_v48, %v1204_v14  ;;  %v1397_v37 = vsub.f32 1.5, %v1396_v55  ;;  %v1208_v39 = vmul.f32 0.5, %v1207_v23  ;;  %2164 = vlog2.f32 %v3339_v62 }
 0x159   : > { %2166 = vrsqrt.f32 %v3339_v62  ;;  %v1624_v20 = vadd.f32 %v1606_v9, %v1588_v12  ;;  %v1004_v1 = vmul.f32 %v986_v26, %v986_v26  ;;  %v738_v52 = vmul.f32 %v3351_v40, %v3351_v40 }
 0x15a   : > { %v1536_v60 = vmul.f32 %v1266_v36, %v3061_v0  ;;  %v876_v33 = vmul.f32 1.442695, %v845_v41  ;;  %v1209_v38 = vsub.f32 1.5, %v1208_v39  ;;  %v756_v6 = vmul.f32 %v3360_v49, %v3360_v49 }
 0x15b   : > { %v3374_v13 = vpop.eup %2158  ;;  %vm1400_vm14 = vweird.f32 %v3316_v51  ;;  %vm1211_vm15 = vweird.f32 %v3272_v29  ;;  %1651 = vadd.xlane.f32.xlu1 %v1624_v20  ;;  %1032 = vadd.xlane.f32.xlu2 %v1004_v1  ;;  %v667_v17 = vmul.f32 %v3364_v53, %v3364_v53  ;;  %v685_v11 = vmul.f32 %v3366_v58, %v3366_v58 }
 0x15c   : > { %v2161_v0 = vpop.eup %2160  ;;  %v3383_v24 = vmul.f32 %v1464_v61, %v3126_v27  ;;  %vm1212_vm0 = vweird.f32 %v3331_v15  ;;  %v774_v34 = vadd.f32 %v756_v6, %v738_v52  ;;  %v1517_v8 = vsub.f32 %v3265_v19, %v3308_v21  ;;  %vm1401_vm1 = vmor %vm1399_vm13, %vm1400_vm14 }
 0x15d   : > { %v3388_v45 = vpop.eup %2162  ;;  %v3390_v59 = vsub.f32 %v1536_v60, %v1554_v54  ;;  %v3393_v36 = vmul.f32 %v1267_v18, %v3153_v46  ;;  %v1398_v3 = vmul.f32 %v3316_v51, %v1397_v37  ;;  %v913_v50 = vmul.f32 0.6931472, %v2161_v0  ;;  %vm3421_vm3 = vmor %vm1211_vm15, %vm1212_vm0 }
 0x15e   : > { %v2165_v57 = vpop.eup %2164  ;;  %2168 = vpow2.f32 %v876_v33  ;;  %v1210_v27 = vmul.f32 %v3331_v15, %v1209_v38  ;;  %v1404_v61 = vmul.f32 %v3388_v45, %v3329_v28  ;;  %v3399_v63 = vmax.f32 %v774_v34, 1e-24  ;;  %v3446_v38 = vpop.f32.mrf.mxu0 }
 0x15f   : > { %v3401_v19 = vpop.eup %2166  ;;  %v935_v21 = vmul.f32 0.15, %v913_v50  ;;  %v825_v30 = vmul.f32 0.6931472, %v2165_v57  ;;  %v703_v10 = vadd.f32 %v685_v11, %v667_v17  ;;  %v1607_v46 = vmul.f32 %v3318_v42, %v3318_v42  ;;  %v3448_v6 = vpop.f32.mrf.mxu1 }
 0x160   : > { %v1405_v35 = vmul.f32 %v3388_v45, %v1404_v61  ;;  %vm1409_vm2 = vweird.f32 %v3329_v28  ;;  %v1216_v12 = vmul.f32 %v3401_v19, %v3339_v62  ;;  %2170 = vlog2.f32 %v3399_v63 }
 0x161   : > { %v1589_v9 = vmul.f32 %v1517_v8, %v1517_v8  ;;  %v1537_v26 = vmul.f32 %v1267_v18, %v3155_v25  ;;  %v1402_v55 = vsel %vm1401_vm1, %v3316_v51, %v1398_v3  ;;  %v966_v42 = vmul.f32 1.442695, %v935_v21  ;;  %v3428_v25 = vpop.f32.mrf.mxu2  ;;  %v3430_v51 = vpop.f32.mrf.mxu3 }
 0x162   : > { %v846_v41 = vmul.f32 0.15, %v825_v30  ;;  %v1465_v23 = vmul.f32 %v3374_v13, %v1402_v55  ;;  %v1406_v54 = vmul.f32 0.5, %v1405_v35  ;;  %v1217_v14 = vmul.f32 %v3401_v19, %v1216_v12 }
 0x163   : > { %vm1221_vm4 = vweird.f32 %v3339_v62  ;;  %2172 = vrsqrt.f32 %v3399_v63  ;;  %v1214_v18 = vsel %vm3421_vm3, %v3331_v15, %v1210_v27  ;;  %vm1410_vm5 = vweird.f32 %v3388_v45 }
 0x164   : > { %2174 = vpow2.f32 %v966_v42  ;;  %v878_v29 = vmul.f32 1.442695, %v846_v41  ;;  %v3436_v37 = vpop.eup %2168  ;;  %v1407_v39 = vsub.f32 1.5, %v1406_v54  ;;  %v1218_v20 = vmul.f32 0.5, %v1217_v14  ;;  %vm1411_vm6 = vmor %vm1409_vm2, %vm1410_vm5 }
 0x165   : > { %v3438_v1 = vmax.f32 %v703_v10, 1e-24  ;;  %v1625_v52 = vadd.f32 %v1607_v46, %v1589_v9  ;;  %v987_v60 = vsub.f32 %v3303_v22, %v3305_v47  ;;  %v739_v33 = vmul.f32 %v3428_v25, %v3428_v25 }
 0x166   : > { %2176 = vpow2.f32 %v878_v29  ;;  %v757_v15 = vmul.f32 %v3430_v51, %v3430_v51  ;;  %v2171_v17 = vpop.eup %2170  ;;  %v1555_v11 = vmul.f32 %v1465_v23, %v3216_v2  ;;  %v1408_v0 = vmul.f32 %v3388_v45, %v1407_v39 }
 0x167   : > { %v1219_v34 = vsub.f32 1.5, %v1218_v20  ;;  %2178 = vlog2.f32 %v3438_v1  ;;  %1653 = vadd.xlane.f32.xlu0 %v1625_v52  ;;  %v915_v22 = vmul.f32 0.6931472, %v2171_v17  ;;  %v1005_v47 = vmul.f32 %v987_v60, %v987_v60 }
 0x168   : > { %2180 = vrsqrt.f32 %v3438_v1  ;;  %v775_v8 = vadd.f32 %v757_v15, %v739_v33  ;;  %v3457_v50 = vmul.f32 %v1465_v23, %v3195_v16  ;;  %v1268_v57 = vmul.f32 %v3436_v37, %v1214_v18 }
 0x169   : > { %v3454_v3 = vpop.eup %2172  ;;  %v668_v2 = vmul.f32 %v3446_v38, %v3446_v38  ;;  %v686_v27 = vmul.f32 %v3448_v6, %v3448_v6  ;;  %vm1222_vm7 = vweird.f32 %v3401_v19  ;;  %v936_v21 = vmul.f32 0.15, %v915_v22  ;;  %1034 = vadd.xlane.f32.xlu1 %v1005_v47  ;;  %v3506_v62 = vpop.f32.mrf.mxu2 }
 0x16a   : > { %v3464_v61 = vpop.eup %2174  ;;  %v1414_v16 = vmul.f32 %v3454_v3, %v3399_v63  ;;  %v3473_v30 = vmax.f32 %v775_v8, 1e-24  ;;  %v3475_v10 = vsub.f32 %v1537_v26, %v1555_v11  ;;  %v1412_v46 = vsel %vm1411_vm6, %v3388_v45, %v1408_v0  ;;  %vm1223_vm9 = vmor %vm1221_vm4, %vm1222_vm7  ;;  %v3508_v39 = vpop.f32.mrf.mxu3 }
 0x16b   : > { %v1220_v35 = vmul.f32 %v3401_v19, %v1219_v34  ;;  %v704_v12 = vadd.f32 %v686_v27, %v668_v2  ;;  %v1466_v28 = vmul.f32 %v3464_v61, %v1412_v46  ;;  %v968_v55 = vmul.f32 1.442695, %v936_v21 }
 0x16c   : > { %v3479_v9 = vpop.eup %2176  ;;  %v1415_v42 = vmul.f32 %v3454_v3, %v1414_v16  ;;  %2182 = vlog2.f32 %v3473_v30  ;;  %v3485_v23 = vmul.f32 %v1268_v57, %v3228_v56  ;;  %vm1419_vm8 = vweird.f32 %v3399_v63 }
 0x16d   : > { %v2179_v41 = vpop.eup %2178  ;;  %2184 = vrsqrt.f32 %v3473_v30  ;;  %v1518_v45 = vsub.f32 %v3354_v5, %v3383_v24  ;;  %v1538_v43 = vmul.f32 %v1268_v57, %v3230_v4  ;;  %v3498_v56 = vmax.f32 %v704_v12, 1e-24  ;;  %v3543_v12 = vpop.f32.mrf.mxu0 }
 0x16e   : > { %v3491_v26 = vpop.eup %2180  ;;  %v1416_v54 = vmul.f32 0.5, %v1415_v42  ;;  %v827_v14 = vmul.f32 0.6931472, %v2179_v41  ;;  %v1224_v18 = vsel %vm1223_vm9, %v3401_v19, %v1220_v35  ;;  %2186 = vpow2.f32 %v968_v55 }
 0x16f   : > { %vm1420_vm10 = vweird.f32 %v3454_v3  ;;  %v1226_v5 = vmul.f32 %v3491_v26, %v3438_v1  ;;  %v1556_v24 = vmul.f32 %v1466_v28, %v3281_v31  ;;  %2188 = vlog2.f32 %v3498_v56 }
 0x170   : > { %v1417_v4 = vsub.f32 1.5, %v1416_v54  ;;  %v847_v29 = vmul.f32 0.15, %v827_v14  ;;  %v1269_v20 = vmul.f32 %v3479_v9, %v1224_v18  ;;  %2190 = vrsqrt.f32 %v3498_v56  ;;  %vm1421_vm13 = vmor %vm1419_vm8, %vm1420_vm10 }
 0x171   : > { %v1227_v19 = vmul.f32 %v3491_v26, %v1226_v5  ;;  %v1590_v52 = vmul.f32 %v1518_v45, %v1518_v45  ;;  %v1608_v31 = vmul.f32 %v3390_v59, %v3390_v59  ;;  %v988_v17 = vsub.f32 %v3341_v48, %v3374_v13 }
 0x172   : > { %v2183_v60 = vpop.eup %2182  ;;  %v1418_v33 = vmul.f32 %v3454_v3, %v1417_v4  ;;  %v880_v15 = vmul.f32 1.442695, %v847_v29  ;;  %vm1231_vm11 = vweird.f32 %v3438_v1  ;;  %v740_v22 = vmul.f32 %v3506_v62, %v3506_v62 }
 0x173   : > { %v3518_v11 = vpop.eup %2184  ;;  %v1228_v0 = vmul.f32 0.5, %v1227_v19  ;;  %v917_v34 = vmul.f32 0.6931472, %v2183_v60  ;;  %v758_v47 = vmul.f32 %v3508_v39, %v3508_v39  ;;  %v3526_v8 = vmul.f32 %v1466_v28, %v3277_v44 }
 0x174   : > { %v3528_v57 = vsub.f32 %v1538_v43, %v1556_v24  ;;  %v1424_v48 = vmul.f32 %v3518_v11, %v3473_v30  ;;  %vm1429_vm12 = vweird.f32 %v3473_v30  ;;  %v3533_v13 = vpop.eup %2186  ;;  %2192 = vpow2.f32 %v880_v15 }
 0x175   : > { %v1229_v59 = vsub.f32 1.5, %v1228_v0  ;;  %v937_v2 = vmul.f32 0.15, %v917_v34  ;;  %v1626_v27 = vadd.f32 %v1608_v31, %v1590_v52  ;;  %v2189_v21 = vpop.eup %2188  ;;  %v3536_v16 = vmul.f32 %v1269_v20, %v3285_v32  ;;  %v3550_v32 = vpop.f32.mrf.mxu1 }
 0x176   : > { %v1425_v44 = vmul.f32 %v3518_v11, %v1424_v48  ;;  %v1006_v46 = vmul.f32 %v988_v17, %v988_v17  ;;  %v776_v35 = vadd.f32 %v758_v47, %v740_v22  ;;  %v3545_v28 = vpop.eup %2190  ;;  %v1422_v55 = vsel %vm1421_vm13, %v3454_v3, %v1418_v33  ;;  %v3576_v31 = vpop.f32.mrf.mxu2 }
 0x177   : > { %vm1232_vm14 = vweird.f32 %v3491_v26  ;;  %v970_v42 = vmul.f32 1.442695, %v937_v2  ;;  %vm1430_vm15 = vweird.f32 %v3518_v11  ;;  %1655 = vadd.xlane.f32.xlu2 %v1626_v27  ;;  %v1467_v63 = vmul.f32 %v3533_v13, %v1422_v55 }
 0x178   : > { %v1426_v41 = vmul.f32 0.5, %v1425_v44  ;;  %v829_v45 = vmul.f32 0.6931472, %v2189_v21  ;;  %v1236_v43 = vmul.f32 %v3545_v28, %v3498_v56  ;;  %1036 = vadd.xlane.f32.xlu0 %v1006_v46  ;;  %v1230_v54 = vmul.f32 %v3491_v26, %v1229_v59  ;;  %vm1233_vm1 = vmor %vm1231_vm11, %vm1232_vm14 }
 0x179   : > { %2194 = vpow2.f32 %v970_v42  ;;  %v3556_v3 = vmax.f32 %v776_v35, 1e-24  ;;  %v669_v14 = vmul.f32 %v3543_v12, %v3543_v12  ;;  %v687_v4 = vmul.f32 %v3550_v32, %v3550_v32  ;;  %vm1431_vm2 = vmor %vm1429_vm12, %vm1430_vm15 }
 0x17a   : > { %v1427_v18 = vsub.f32 1.5, %v1426_v41  ;;  %v848_v5 = vmul.f32 0.15, %v829_v45  ;;  %v1237_v24 = vmul.f32 %v3545_v28, %v1236_v43  ;;  %v3563_v29 = vpop.eup %2192  ;;  %v1539_v19 = vmul.f32 %v1269_v20, %v3287_v7  ;;  %v3578_v7 = vpop.f32.mrf.mxu3 }
 0x17b   : > { %vm1241_vm0 = vweird.f32 %v3498_v56  ;;  %2196 = vlog2.f32 %v3556_v3  ;;  %v1519_v52 = vsub.f32 %v3393_v36, %v3457_v50  ;;  %v1557_v20 = vmul.f32 %v1467_v63, %v3360_v49 }
 0x17c   : > { %v1428_v60 = vmul.f32 %v3518_v11, %v1427_v18  ;;  %v882_v33 = vmul.f32 1.442695, %v848_v5  ;;  %v1238_v15 = vmul.f32 0.5, %v1237_v24  ;;  %2198 = vrsqrt.f32 %v3556_v3 }
 0x17d   : > { %v1234_v17 = vsel %vm1233_vm1, %v3491_v26, %v1230_v54  ;;  %v705_v36 = vadd.f32 %v687_v4, %v669_v14  ;;  %v1591_v1 = vmul.f32 %v1519_v52, %v1519_v52  ;;  %v1609_v22 = vmul.f32 %v3475_v10, %v3475_v10 }
 0x17e   : > { %v1270_v50 = vmul.f32 %v3563_v29, %v1234_v17  ;;  %v1432_v0 = vsel %vm1431_vm2, %v3518_v11, %v1428_v60  ;;  %v1239_v34 = vsub.f32 1.5, %v1238_v15  ;;  %v989_v49 = vsub.f32 %v3436_v37, %v3464_v61 }
 0x17f   : > { %v2195_v47 = vpop.eup %2194  ;;  %v3590_v48 = vmax.f32 %v705_v36, 1e-24  ;;  %v741_v30 = vmul.f32 %v3576_v31, %v3576_v31  ;;  %v759_v26 = vmul.f32 %v3578_v7, %v3578_v7  ;;  %2200 = vpow2.f32 %v882_v33 }
 0x180   : > { %v1468_v59 = vmul.f32 %v2195_v47, %v1432_v0  ;;  %v1627_v2 = vadd.f32 %v1609_v22, %v1591_v1  ;;  %v1520_v11 = vsub.f32 %v3485_v23, %v3526_v8  ;;  %v1503_v10 = vmul.f32 %v1467_v63, %v3351_v40 }
 0x181   : > { %v2197_v27 = vpop.eup %2196  ;;  %2202 = vlog2.f32 %v3590_v48  ;;  %v1007_v21 = vmul.f32 %v989_v49, %v989_v49  ;;  %v777_v44 = vadd.f32 %v759_v26, %v741_v30  ;;  %v1575_v61 = vsub.f32 %v1539_v19, %v1557_v20 }
 0x182   : > { %v3602_v37 = vpop.eup %2198  ;;  %v1240_v46 = vmul.f32 %v3545_v28, %v1239_v34  ;;  %vm1242_vm3 = vweird.f32 %v3545_v28  ;;  %v919_v35 = vmul.f32 0.6931472, %v2197_v27  ;;  %1657 = vadd.xlane.f32.xlu1 %v1627_v2  ;;  %v1558_v55 = vmul.f32 %v1468_v59, %v3430_v51 }
 0x183   : > { %v1434_v23 = vmul.f32 %v3602_v37, %v3556_v3  ;;  %vm1439_vm4 = vweird.f32 %v3556_v3  ;;  %2204 = vrsqrt.f32 %v3590_v48  ;;  %1038 = vadd.xlane.f32.xlu2 %v1007_v21  ;;  %v3611_v40 = vmax.f32 %v777_v44, 1e-24  ;;  %vm3624_vm5 = vmor %vm1241_vm0, %vm1242_vm3 }
 0x184   : > { %v1486_v8 = vmul.f32 %v1270_v50, %v3364_v53  ;;  %v938_v42 = vmul.f32 0.15, %v919_v35  ;;  %v1592_v63 = vmul.f32 %v1520_v11, %v1520_v11  ;;  %v1610_v41 = vmul.f32 %v3528_v57, %v3528_v57 }
 0x185   : > { %v1540_v45 = vmul.f32 %v1270_v50, %v3366_v58  ;;  %v1504_v51 = vmul.f32 %v1468_v59, %v3428_v25  ;;  %v1435_v43 = vmul.f32 %v3602_v37, %v1434_v23  ;;  %2206 = vlog2.f32 %v3611_v40  ;;  %v2201_v54 = vpop.eup %2200 }
 0x186   : > { %v972_v14 = vmul.f32 1.442695, %v938_v42  ;;  %2208 = vrsqrt.f32 %v3611_v40  ;;  %v1628_v57 = vadd.f32 %v1610_v41, %v1592_v63  ;;  %v990_v58 = vsub.f32 %v3479_v9, %v3533_v13 }
 0x187   : > { %v2203_v25 = vpop.eup %2202  ;;  %v1576_v18 = vsub.f32 %v1540_v45, %v1558_v55  ;;  %v1244_v5 = vsel %vm3624_vm5, %v3545_v28, %v1240_v46  ;;  %v1436_v24 = vmul.f32 0.5, %v1435_v43  ;;  %v1521_v56 = vsub.f32 %v3536_v16, %v1503_v10 }
 0x188   : > { %2210 = vpow2.f32 %v972_v14  ;;  %v831_v4 = vmul.f32 0.6931472, %v2203_v25  ;;  %1659 = vadd.xlane.f32.xlu0 %v1628_v57  ;;  %v1008_v19 = vmul.f32 %v990_v58, %v990_v58  ;;  %v1611_v52 = vmul.f32 %v1575_v61, %v1575_v61 }
 0x189   : > { %v2205_v60 = vpop.eup %2204  ;;  %v1437_v33 = vsub.f32 1.5, %v1436_v24  ;;  %vm1440_vm6 = vweird.f32 %v3602_v37  ;;  %v1593_v15 = vmul.f32 %v1521_v56, %v1521_v56  ;;  %v991_v9 = vsub.f32 %v3563_v29, %v2195_v47 }
 0x18a   : > { %v1271_v13 = vmul.f32 %v2201_v54, %v1244_v5  ;;  %v849_v20 = vmul.f32 0.15, %v831_v4  ;;  %v1246_v17 = vmul.f32 %v2205_v60, %v3590_v48  ;;  %1040 = vadd.xlane.f32.xlu1 %v1008_v19  ;;  %v1522_v28 = vsub.f32 %v1486_v8, %v1504_v51  ;;  %vm1441_vm7 = vmor %vm1439_vm4, %vm1440_vm6 }
 0x18b   : > { %v2207_v36 = vpop.eup %2206  ;;  %v1438_v16 = vmul.f32 %v3602_v37, %v1437_v33  ;;  %v1629_v1 = vadd.f32 %v1611_v52, %v1593_v15  ;;  %v1009_v50 = vmul.f32 %v991_v9, %v991_v9  ;;  %v1612_v0 = vmul.f32 %v1576_v18, %v1576_v18  ;;  %v1634_v33 = vpop.xlane.xlu1 %1633 }
 0x18c   : > { %v2209_v34 = vpop.eup %2208  ;;  %v884_v22 = vmul.f32 1.442695, %v849_v20  ;;  %v1247_v49 = vmul.f32 %v2205_v60, %v1246_v17  ;;  %v921_v30 = vmul.f32 0.6931472, %v2207_v36  ;;  %v1594_v29 = vmul.f32 %v1522_v28, %v1522_v28  ;;  %v1636_v15 = vpop.xlane.xlu2 %1635 }
 0x18d   : > { %v1442_v47 = vsel %vm1441_vm7, %v3602_v37, %v1438_v16  ;;  %v1444_v26 = vmul.f32 %v2209_v34, %v3611_v40  ;;  %1661 = vadd.xlane.f32.xlu2 %v1629_v1  ;;  %v1487_v10 = vmul.f32 %v1271_v13, %v3446_v38  ;;  %v1541_v61 = vmul.f32 %v1271_v13, %v3448_v6 }
 0x18e   : > { %v2211_v59 = vpop.eup %2210  ;;  %2212 = vpow2.f32 %v884_v22  ;;  %v1248_v2 = vmul.f32 0.5, %v1247_v49  ;;  %v939_v11 = vmul.f32 0.15, %v921_v30  ;;  %v1630_v27 = vadd.f32 %v1612_v0, %v1594_v29 }
 0x18f   : > { %v1469_v21 = vmul.f32 %v2211_v59, %v1442_v47  ;;  %v1445_v44 = vmul.f32 %v2209_v34, %v1444_v26  ;;  %v992_v3 = vsub.f32 %v2201_v54, %v2211_v59  ;;  %vm1252_vm8 = vweird.f32 %v2205_v60 }
 0x190   : > { %v1249_v46 = vsub.f32 1.5, %v1248_v2  ;;  %v974_v35 = vmul.f32 1.442695, %v939_v11  ;;  %1042 = vadd.xlane.f32.xlu0 %v1009_v50  ;;  %vm1251_vm9 = vweird.f32 %v3590_v48  ;;  %vm1450_vm11 = vweird.f32 %v2209_v34 }
 0x191   : > { %v1505_v37 = vmul.f32 %v1469_v21, %v3506_v62  ;;  %v1559_v55 = vmul.f32 %v1469_v21, %v3508_v39  ;;  %v1446_v23 = vmul.f32 0.5, %v1445_v44  ;;  %v1010_v8 = vmul.f32 %v992_v3, %v992_v3  ;;  %vm1253_vm10 = vmor %vm1251_vm9, %vm1252_vm8 }
 0x192   : > { %v1250_v42 = vmul.f32 %v2205_v60, %v1249_v46  ;;  %2214 = vpow2.f32 %v974_v35  ;;  %1663 = vadd.xlane.f32.xlu1 %v1630_v27  ;;  %vm1449_vm12 = vweird.f32 %v3611_v40  ;;  %vm1073_vm14 = vcmask 0  }
 0x193   : > { %v1577_v63 = vsub.f32 %v1541_v61, %v1559_v55  ;;  %v1447_v38 = vsub.f32 1.5, %v1446_v23  ;;  %v1523_v41 = vsub.f32 %v1487_v10, %v1505_v37  ;;  %vm1451_vm13 = vmor %vm1449_vm12, %vm1450_vm11  ;;  %v1017_v9 = vpop.xlane.xlu1 %1016  ;;  %v1670_v10 = vadd.f32 %v1636_v15, %v1634_v33 }
 0x194   : > { %v2213_v45 = vpop.eup %2212  ;;  %v1254_v6 = vsel %vm1253_vm10, %v2205_v60, %v1250_v42  ;;  %v1013_v60 = vpop.xlane.xlu0 %1012 }
 0x195   : > { %v1448_v51 = vmul.f32 %v2209_v34, %v1447_v38  ;;  %1044 = vadd.xlane.f32.xlu2 %v1010_v8  ;;  %v1595_v62 = vmul.f32 %v1523_v41, %v1523_v41  ;;  %v1613_v43 = vmul.f32 %v1577_v63, %v1577_v63  ;;  %v1272_v39 = vmul.f32 %v2213_v45, %v1254_v6 }
 0x197   : > { %v1631_v54 = vadd.f32 %v1613_v43, %v1595_v62  ;;  %v1452_v14 = vsel %vm1451_vm13, %v2209_v34, %v1448_v51  ;;  %v1488_v58 = vmul.f32 %v1272_v39, %v3543_v12  ;;  %v1542_v25 = vmul.f32 %v1272_v39, %v3550_v32  ;;  %v1021_v12 = vpop.xlane.xlu2 %1020 }
 0x198   : > { %v2215_v53 = vpop.eup %2214 }
 0x199   : > { %v1470_v57 = vmul.f32 %v2215_v53, %v1452_v14  ;;  %1665 = vadd.xlane.f32.xlu0 %v1631_v54  ;;  %v993_v48 = vsub.f32 %v2213_v45, %v2215_v53 }
 0x19b   : > { %v1506_v18 = vmul.f32 %v1470_v57, %v3576_v31  ;;  %v1560_v5 = vmul.f32 %v1470_v57, %v3578_v7  ;;  %v1011_v24 = vmul.f32 %v993_v48, %v993_v48  ;;  %v1019_v32 = vpop.xlane.xlu1 %1018 }
 0x19c   : > { %v1015_v13 = vpop.xlane.xlu0 %1014 }
 0x19d   : > { %v1578_v56 = vsub.f32 %v1542_v25, %v1560_v5  ;;  %1046 = vadd.xlane.f32.xlu1 %v1011_v24  ;;  %v1524_v4 = vsub.f32 %v1488_v58, %v1506_v18  ;;  %v1049_v29 = vadd.f32 %v1015_v13, %v1013_v60 }
 0x19f   : > { %v1614_v40 = vmul.f32 %v1578_v56, %v1578_v56  ;;  %v1596_v19 = vmul.f32 %v1524_v4, %v1524_v4  ;;  %v1642_v17 = vpop.xlane.xlu2 %1641  ;;  %v1050_v26 = vadd.f32 %v1049_v29, %v1017_v9 }
 0x1a1   : > { %v1632_v52 = vadd.f32 %v1614_v40, %v1596_v19  ;;  %v1051_v2 = vadd.f32 %v1050_v26, %v1019_v32 }
 0x1a3   : > { %1667 = vadd.xlane.f32.xlu2 %v1632_v52  ;;  %v1640_v28 = vpop.xlane.xlu1 %1639  ;;  %v1052_v27 = vadd.f32 %v1051_v2, %v1021_v12 }
 0x1a4   : > { %v1638_v20 = vpop.xlane.xlu0 %1637 }
 0x1a5   : > { %v1671_v3 = vadd.f32 %v1670_v10, %v1638_v20 }
 0x1a7   : > { %v1023_v7 = vpop.xlane.xlu2 %1022  ;;  %v1672_v35 = vadd.f32 %v1671_v3, %v1640_v28 }
 0x1a8   : > { %v1053_v21 = vadd.f32 %v1052_v27, %v1023_v7 }
 0x1a9   : > { %v1673_v55 = vadd.f32 %v1672_v35, %v1642_v17 }
 0x1ab   : > { %v1646_v36 = vpop.xlane.xlu1 %1645 }
 0x1ac   : > { %v1644_v31 = vpop.xlane.xlu0 %1643 }
 0x1ad   : > { %v1674_v8 = vadd.f32 %v1673_v55, %v1644_v31 }
 0x1af   : > { %v1027_v1 = vpop.xlane.xlu2 %1026  ;;  %v1675_v38 = vadd.f32 %v1674_v8, %v1646_v36 }
 0x1b4   : > { %v1025_v16 = vpop.xlane.xlu0 %1024 }
 0x1b5   : > { %v1054_v61 = vadd.f32 %v1053_v21, %v1025_v16  ;;  %v1048_v16 = vld [vmem:[#allocation4] sm:$0x1] }
 0x1b6   : > { %v1029_v50 = vpop.xlane.xlu1 %1028 }
 0x1b7   : > { %v1055_v23 = vadd.f32 %v1054_v61, %v1027_v1 }
 0x1b9   : > { %v1056_v42 = vadd.f32 %v1055_v23, %v1029_v50 }
 0x1bc   : > { %v1648_v0 = vpop.xlane.xlu0 %1647 }
 0x1bd   : > { %v1676_v6 = vadd.f32 %v1675_v38, %v1648_v0 }
 0x1bf   : > { %v1650_v34 = vpop.xlane.xlu2 %1649 }
 0x1c0   : > { %v1677_v43 = vadd.f32 %v1676_v6, %v1650_v34 }
 0x1c4   : > { %v1031_v49 = vpop.xlane.xlu0 %1030 }
 0x1c5   : > { %v1057_v41 = vadd.f32 %v1056_v42, %v1031_v49  ;;  %v1669_v49 = vld [vmem:[#allocation6] sm:$0x1] }
 0x1ce   : > { %v1652_v22 = vpop.xlane.xlu1 %1651  ;;  %v1033_v30 = vpop.xlane.xlu2 %1032 }
 0x1cf   : > { %v1058_v51 = vadd.f32 %v1057_v41, %v1033_v30  ;;  %v1678_v54 = vadd.f32 %v1677_v43, %v1652_v22 }
 0x1da   : > { %v1654_v59 = vpop.xlane.xlu0 %1653 }
 0x1db   : > { %v1679_v57 = vadd.f32 %v1678_v54, %v1654_v59 }
 0x1dc   : > { %v1035_v47 = vpop.xlane.xlu1 %1034 }
 0x1dd   : > { %v1059_v39 = vadd.f32 %v1058_v51, %v1035_v47 }
 0x1ea   : > { %v1656_v11 = vpop.xlane.xlu2 %1655 }
 0x1eb   : > { %v1037_v46 = vpop.xlane.xlu0 %1036  ;;  %v1680_v25 = vadd.f32 %v1679_v57, %v1656_v11 }
 0x1ec   : > { %v1060_v53 = vadd.f32 %v1059_v39, %v1037_v46 }
 0x1f5   : > { %v1658_v44 = vpop.xlane.xlu1 %1657 }
 0x1f6   : > { %v1039_v37 = vpop.xlane.xlu2 %1038  ;;  %v1681_v24 = vadd.f32 %v1680_v25, %v1658_v44 }
 0x1f7   : > { %v1061_v48 = vadd.f32 %v1060_v53, %v1039_v37 }
 0x1fb   : > { %v1660_v45 = vpop.xlane.xlu0 %1659 }
 0x1fc   : > { %v1682_v4 = vadd.f32 %v1681_v24, %v1660_v45 }
 0x1fd   : > { %v1041_v63 = vpop.xlane.xlu1 %1040 }
 0x1fe   : > { %v1062_v18 = vadd.f32 %v1061_v48, %v1041_v63 }
 0x200   : > { %v1662_v62 = vpop.xlane.xlu2 %1661 }
 0x201   : > { %v1683_v52 = vadd.f32 %v1682_v4, %v1662_v62 }
 0x203   : > { %v1043_v58 = vpop.xlane.xlu0 %1042 }
 0x204   : > { %v1063_v56 = vadd.f32 %v1062_v18, %v1043_v58 }
 0x205   : > { %v1664_v14 = vpop.xlane.xlu1 %1663 }
 0x206   : > { %v1684_v15 = vadd.f32 %v1683_v52, %v1664_v14 }
 0x208   : > { %v1045_v5 = vpop.xlane.xlu2 %1044 }
 0x209   : > { %v1064_v40 = vadd.f32 %v1063_v56, %v1045_v5 }
 0x20c   : > { %v1666_v33 = vpop.xlane.xlu0 %1665 }
 0x20d   : > { %v1685_v13 = vadd.f32 %v1684_v15, %v1666_v33 }
 0x210   : > { %v1047_v19 = vpop.xlane.xlu1 %1046 }
 0x211   : > { %v1065_v60 = vadd.f32 %v1064_v40, %v1047_v19 }
 0x213   : > { %v1066_v9 = vrot.slane %v1065_v60, 4 }
 0x215   : > { %v1067_v12 = vadd.f32 %v1066_v9, %v1065_v60 }
 0x216   : > { %v1668_v20 = vpop.xlane.xlu2 %1667 }
 0x217   : > { %v1068_v32 = vrot.slane %v1067_v12, 2  ;;  %v1686_v17 = vadd.f32 %v1685_v13, %v1668_v20 }
 0x219   : > { %v1069_v31 = vadd.f32 %v1068_v32, %v1067_v12  ;;  %v1687_v28 = vrot.slane %v1686_v17, 4 }
 0x21b   : > { %v1070_v7 = vrot.slane %v1069_v31, 1  ;;  %v1688_v36 = vadd.f32 %v1687_v28, %v1686_v17 }
 0x21d   : > { %v1071_v1 = vadd.f32 %v1070_v7, %v1069_v31  ;;  %v1689_v50 = vrot.slane %v1688_v36, 2 }
 0x21f   : > { %v1690_v0 = vadd.f32 %v1689_v50, %v1688_v36  ;;  %v1072_v34 = vadd.f32 %v1071_v1, %v1048_v16 }
 0x221   : > { %v1691_v22 = vrot.slane %v1690_v0, 1  ;;  %1074 = vst.msk [vmem:[#allocation4] sm:$0x1] %vm1073_vm14, %v1072_v34 }
 0x222   : > { %1978 = dma.vmem_to_hbm [thread:$0]  (%p1985_p5), %s1702_s18, 16, %s1704_s21, [#allocation5]  }
 0x223   : > { %v1692_v30 = vadd.f32 %v1691_v22, %v1690_v0 }
 0x225   : > { %v1693_v29 = vadd.f32 %v1692_v30, %v1669_v49 }
 0x227   : > { %1694 = vst.msk [vmem:[#allocation6] sm:$0x1] %vm1073_vm14, %v1693_v29 }
 0x228   : > { %1980 = dma.vmem_to_hbm [thread:$0]  (%p1985_p5), %s1714_s23, 16, %s1716_s26, [#allocation7]  }
 0x229   : > { %2279 = dma.done.wait (%p1985_p5), [#allocation5], 16  }
 0x22a   : > { %2281 = vsyncadd (%p1985_p5), [#allocation5], 4294967280 }
 0x22b   : > { %2283 = dma.done.wait (%p1985_p5), [#allocation7], 16  }
 0x22c   : > { %2285 = vsyncadd (%p1985_p5), [#allocation7], 4294967280 }
 0x22d PF: > { %s17_s15 = sadd.s32 1, %s2288_s15  }
 0x22e   : > { %p14_p6 = scmp.ge.s32.totalorder %s17_s15, 4  }
 0x230   :  { %16 = sbr.rel (!%p14_p6) target bundleno = 2 (0x2), region = 93 }
 0x235   :  { %1734 = vsyncpa [#allocation5], 1 }
 0x236   :  { %1736 = vsyncpa [#allocation5 + $0x1], 1 }
 0x237   :  { %1737 = vsyncpa [#allocation7], 1 }
 0x238   :  { %1738 = vsyncmov [#allocation3] }
 0x23b   :  { %s1739_s27 = vpop.sfrf %1738 }
 0x23c   :  { %p1942_p7 = scmp.ne.s32.totalorder %s1739_s27, 0 }
 0x23e   :  { %1743 = shalt.err (%p1942_p7)  }

// kernel: _unnamed_function_.4
= control target key start
LH: loop header
LB: loop body
LE: loop exit
PB: predicated region body
PF: predicated region fallthrough
CT: control target
= control target key end

     0   :  { %10 = vsyncpa [#allocation5], 0  ;;  %s3434_s0 = inlined_call_operand.vmem [shape: bf16[144,128], index: 0, kind: input, shape index: {}]   ;;  %s3435_s1 = inlined_call_operand.vmem [shape: bf16[144,128], index: 1, kind: input, shape index: {}]   ;;  %s3436_s2 = inlined_call_operand.vmem [shape: bf16[128,256], index: 2, kind: input, shape index: {}]   ;;  %s3437_s3 = inlined_call_operand.hbm [shape: f32[1,1], index: 3, kind: output, shape index: {0}]   ;;  %s3438_s4 = inlined_call_operand.hbm [shape: f32[1,1], index: 4, kind: output, shape index: {1}]  }
   0x1   :  { %11 = vsyncpa [#allocation7], 0  ;;  %v30_v0 = vld [vmem:[%s3436_s2] sm:$0xff]  ;;  %v32_v1 = vld [vmem:[%s3436_s2 + $0x8] sm:$0xff] }
   0x2   :  { %31 = vst [vmem:[#allocation2] sm:$0xff] %v30_v0  ;;  %v34_v2 = vld [vmem:[%s3436_s2 + $0x10] sm:$0xff]  ;;  %v36_v3 = vld [vmem:[%s3436_s2 + $0x18] sm:$0xff]  ;;  %v38_v4 = vld [vmem:[%s3436_s2 + $0x20] sm:$0xff] }
   0x3   :  { %33 = vst [vmem:[#allocation2 + $0x8] sm:$0xff] %v32_v1  ;;  %v40_v5 = vld [vmem:[%s3436_s2 + $0x28] sm:$0xff]  ;;  %v42_v6 = vld [vmem:[%s3436_s2 + $0x30] sm:$0xff]  ;;  %v44_v7 = vld [vmem:[%s3436_s2 + $0x38] sm:$0xff] }
   0x4   :  { %35 = vst [vmem:[#allocation2 + $0x10] sm:$0xff] %v34_v2  ;;  %v46_v8 = vld [vmem:[%s3436_s2 + $0x40] sm:$0xff]  ;;  %v48_v9 = vld [vmem:[%s3436_s2 + $0x48] sm:$0xff]  ;;  %v50_v10 = vld [vmem:[%s3436_s2 + $0x50] sm:$0xff] }
   0x5   :  { %37 = vst [vmem:[#allocation2 + $0x18] sm:$0xff] %v36_v3  ;;  %v52_v11 = vld [vmem:[%s3436_s2 + $0x58] sm:$0xff]  ;;  %v54_v12 = vld [vmem:[%s3436_s2 + $0x60] sm:$0xff]  ;;  %v56_v13 = vld [vmem:[%s3436_s2 + $0x68] sm:$0xff] }
   0x6   :  { %39 = vst [vmem:[#allocation2 + $0x20] sm:$0xff] %v38_v4  ;;  %v58_v14 = vld [vmem:[%s3436_s2 + $0x70] sm:$0xff]  ;;  %v60_v15 = vld [vmem:[%s3436_s2 + $0x78] sm:$0xff] }
   0x7   :  { %41 = vst [vmem:[#allocation2 + $0x28] sm:$0xff] %v40_v5 }
   0x8   :  { %43 = vst [vmem:[#allocation2 + $0x30] sm:$0xff] %v42_v6 }
   0x9   :  { %45 = vst [vmem:[#allocation2 + $0x38] sm:$0xff] %v44_v7 }
   0xa   :  { %47 = vst [vmem:[#allocation2 + $0x40] sm:$0xff] %v46_v8 }
   0xb   :  { %49 = vst [vmem:[#allocation2 + $0x48] sm:$0xff] %v48_v9 }
   0xc   :  { %51 = vst [vmem:[#allocation2 + $0x50] sm:$0xff] %v50_v10 }
   0xd   :  { %53 = vst [vmem:[#allocation2 + $0x58] sm:$0xff] %v52_v11 }
   0xe   :  { %55 = vst [vmem:[#allocation2 + $0x60] sm:$0xff] %v54_v12 }
   0xf   :  { %57 = vst [vmem:[#allocation2 + $0x68] sm:$0xff] %v56_v13 }
  0x10   :  { %59 = vst [vmem:[#allocation2 + $0x70] sm:$0xff] %v58_v14 }
  0x11   :  { %61 = vst [vmem:[#allocation2 + $0x78] sm:$0xff] %v60_v15 }
  0x12   :  { %67 = vsyncadd [#allocation3], 2048 }
  0x13   :  { %2052 = dma.done.wait [#allocation3], 2048 }
  0x14   :  { %2053 = vsyncadd [#allocation3], 4294965248  ;;  %v1712_v28 = vld [vmem:[#allocation2 + $0x50] sm:$0xf]  ;;  %v1746_v29 = vld [vmem:[#allocation2 + $0x54] sm:$0xf0] }
  0x15   :  { %v1720_v21 = vld [vmem:[#allocation2 + $0x60] sm:$0xf]  ;;  %v1747_v24 = vld [vmem:[#allocation2 + $0x64] sm:$0xf]  ;;  %v1745_v30 = vld [vmem:[#allocation2 + $0x54] sm:$0xf]  ;;  %v1713_v32 = vor.u32 %v1746_v29, %v1712_v28 }
  0x16   :  { %v1748_v22 = vld [vmem:[#allocation2 + $0x64] sm:$0xf0]  ;;  %v1722_v25 = vld [vmem:[#allocation2 + $0x68] sm:$0xf0]  ;;  %v1714_v31 = vld [vmem:[#allocation2 + $0x58] sm:$0xf0] }
  0x17   :  { %v1728_v16 = vld [vmem:[#allocation2 + $0x70] sm:$0xf]  ;;  %v1749_v18 = vld [vmem:[#allocation2 + $0x74] sm:$0xf]  ;;  %v1721_v26 = vor.u32 %v1748_v22, %v1720_v21  ;;  %v1725_v27 = vor.u32 %v1747_v24, %v1722_v25  ;;  %v1717_v33 = vor.u32 %v1745_v30, %v1714_v31  ;;  %v1704_v34 = vld [vmem:[#allocation2 + $0x40] sm:$0xf] }
  0x18   :  { %v1750_v17 = vld [vmem:[#allocation2 + $0x74] sm:$0xf0]  ;;  %v1730_v20 = vld [vmem:[#allocation2 + $0x78] sm:$0xf0]  ;;  %v1744_v35 = vld [vmem:[#allocation2 + $0x44] sm:$0xf0] }
  0x19   :  { %v1729_v19 = vor.u32 %v1750_v17, %v1728_v16  ;;  %v1733_v23 = vor.u32 %v1749_v18, %v1730_v20  ;;  %v1743_v36 = vld [vmem:[#allocation2 + $0x44] sm:$0xf]  ;;  %v1706_v37 = vld [vmem:[#allocation2 + $0x48] sm:$0xf0]  ;;  %v1705_v38 = vor.u32 %v1744_v35, %v1704_v34  ;;  %v1696_v40 = vld [vmem:[#allocation2 + $0x30] sm:$0xf] }
  0x1a   :  { %v1709_v39 = vor.u32 %v1743_v36, %v1706_v37  ;;  %v1742_v41 = vld [vmem:[#allocation2 + $0x34] sm:$0xf0]  ;;  %v1741_v42 = vld [vmem:[#allocation2 + $0x34] sm:$0xf]  ;;  %v1698_v43 = vld [vmem:[#allocation2 + $0x38] sm:$0xf0] }
  0x1b   :  { %315 = vmatpush.bf16.msra.mxu0 %v1729_v19  ;;  %1769 = vmatpush.bf16.msra.mxu2 %v1729_v19  ;;  %v1697_v44 = vor.u32 %v1742_v41, %v1696_v40  ;;  %v1701_v45 = vor.u32 %v1741_v42, %v1698_v43  ;;  %v1688_v46 = vld [vmem:[#allocation2 + $0x20] sm:$0xf]  ;;  %v1740_v47 = vld [vmem:[#allocation2 + $0x24] sm:$0xf0]  ;;  %v1739_v48 = vld [vmem:[#allocation2 + $0x24] sm:$0xf] }
  0x1c   :  { %414 = vmatpush.bf16.msra.mxu1 %v1733_v23  ;;  %1777 = vmatpush.bf16.msra.mxu3 %v1733_v23  ;;  %v1690_v49 = vld [vmem:[#allocation2 + $0x28] sm:$0xf0]  ;;  %v1689_v50 = vor.u32 %v1740_v47, %v1688_v46  ;;  %v1680_v52 = vld [vmem:[#allocation2 + $0x10] sm:$0xf]  ;;  %v1738_v53 = vld [vmem:[#allocation2 + $0x14] sm:$0xf0] }
  0x1d   :  { %v1693_v51 = vor.u32 %v1739_v48, %v1690_v49  ;;  %v1737_v54 = vld [vmem:[#allocation2 + $0x14] sm:$0xf]  ;;  %v1682_v55 = vld [vmem:[#allocation2 + $0x18] sm:$0xf0]  ;;  %v1681_v56 = vor.u32 %v1738_v53, %v1680_v52  ;;  %v1672_v58 = vld [vmem:[#allocation2] sm:$0xf] }
  0x1e   :  { %v1685_v57 = vor.u32 %v1737_v54, %v1682_v55  ;;  %v1736_v59 = vld [vmem:[#allocation2 + $0x4] sm:$0xf0]  ;;  %v1735_v60 = vld [vmem:[#allocation2 + $0x4] sm:$0xf]  ;;  %v1674_v61 = vld [vmem:[#allocation2 + $0x8] sm:$0xf0] }
  0x1f   :  { %316 = vmatpush.bf16.msra.mxu0 %v1721_v26  ;;  %1770 = vmatpush.bf16.msra.mxu2 %v1721_v26  ;;  %v1673_v62 = vor.u32 %v1736_v59, %v1672_v58  ;;  %v1677_v63 = vor.u32 %v1735_v60, %v1674_v61  ;;  %v1751_v0 = vld [vmem:[%s3434_s0] sm:$0xff]  ;;  %v1752_v2 = vld [vmem:[%s3434_s0 + $0x8] sm:$0xff]  ;;  %v1753_v4 = vld [vmem:[%s3434_s0 + $0x10] sm:$0xff]  ;;  %s1563_s5 = sshll.u32 %s3437_s3, 4  ;;  %s2060_s6 = smov [#allocation6]   ;;  %s1564_s5 = int_to_ptr.hbm [resolvable:$true] %s1563_s5 }
  0x20   :  { %415 = vmatpush.bf16.msra.mxu1 %v1725_v27  ;;  %1778 = vmatpush.bf16.msra.mxu3 %v1725_v27  ;;  %v1760_v1 = vld [vmem:[%s3435_s1] sm:$0xff]  ;;  %v1761_v3 = vld [vmem:[%s3435_s1 + $0x8] sm:$0xff]  ;;  %v1762_v5 = vld [vmem:[%s3435_s1 + $0x10] sm:$0xff]  ;;  %s1572_s7 = sshll.u32 %s2060_s6, 4  ;;  %s1574_s10 = sshll.u32 %s3438_s4, 4  ;;  %s1573_s7 = int_to_ptr.vmem [resolvable:$true] %s1572_s7  ;;  %s1575_s10 = int_to_ptr.hbm [resolvable:$true] %s1574_s10 }
  0x21   :  { %v1754_v6 = vld [vmem:[%s3434_s0 + $0x18] sm:$0xff]  ;;  %v1755_v8 = vld [vmem:[%s3434_s0 + $0x20] sm:$0xff]  ;;  %v1756_v10 = vld [vmem:[%s3434_s0 + $0x28] sm:$0xff] }
  0x22   :  { %v1763_v7 = vld [vmem:[%s3435_s1 + $0x18] sm:$0xff]  ;;  %v1764_v9 = vld [vmem:[%s3435_s1 + $0x20] sm:$0xff]  ;;  %v1765_v11 = vld [vmem:[%s3435_s1 + $0x28] sm:$0xff] }
  0x23   :  { %317 = vmatpush.bf16.msra.mxu0 %v1713_v32  ;;  %1771 = vmatpush.bf16.msra.mxu2 %v1713_v32  ;;  %v1757_v12 = vld [vmem:[%s3434_s0 + $0x30] sm:$0xff]  ;;  %v1758_v14 = vld [vmem:[%s3434_s0 + $0x38] sm:$0xff]  ;;  %v1759_v16 = vld [vmem:[%s3434_s0 + $0x40] sm:$0xff]  ;;  %s2059_s0 = smov [#allocation4]  }
  0x24   :  { %416 = vmatpush.bf16.msra.mxu1 %v1717_v33  ;;  %1779 = vmatpush.bf16.msra.mxu3 %v1717_v33  ;;  %v1766_v13 = vld [vmem:[%s3435_s1 + $0x30] sm:$0xff]  ;;  %v1767_v15 = vld [vmem:[%s3435_s1 + $0x38] sm:$0xff]  ;;  %v1768_v17 = vld [vmem:[%s3435_s1 + $0x40] sm:$0xff]  ;;  %s1561_s1 = sshll.u32 %s2059_s0, 4  ;;  %s1562_s1 = int_to_ptr.vmem [resolvable:$true] %s1561_s1 }
  0x27   :  { %318 = vmatpush.bf16.msra.mxu0 %v1705_v38  ;;  %1772 = vmatpush.bf16.msra.mxu2 %v1705_v38 }
  0x28   :  { %417 = vmatpush.bf16.msra.mxu1 %v1709_v39  ;;  %1780 = vmatpush.bf16.msra.mxu3 %v1709_v39 }
  0x2b   :  { %319 = vmatpush.bf16.msra.mxu0 %v1697_v44  ;;  %1773 = vmatpush.bf16.msra.mxu2 %v1697_v44 }
  0x2c   :  { %418 = vmatpush.bf16.msra.mxu1 %v1701_v45  ;;  %1781 = vmatpush.bf16.msra.mxu3 %v1701_v45 }
  0x2f   :  { %320 = vmatpush.bf16.msra.mxu0 %v1689_v50  ;;  %1774 = vmatpush.bf16.msra.mxu2 %v1689_v50 }
  0x30   :  { %419 = vmatpush.bf16.msra.mxu1 %v1693_v51  ;;  %1782 = vmatpush.bf16.msra.mxu3 %v1693_v51 }
  0x33   :  { %321 = vmatpush.bf16.msra.mxu0 %v1681_v56  ;;  %1775 = vmatpush.bf16.msra.mxu2 %v1681_v56 }
  0x34   :  { %420 = vmatpush.bf16.msra.mxu1 %v1685_v57  ;;  %1783 = vmatpush.bf16.msra.mxu3 %v1685_v57 }
  0x37   :  { %322 = vmatpush.bf16.msra.mxu0 %v1673_v62  ;;  %1776 = vmatpush.bf16.msra.mxu2 %v1673_v62 }
  0x38   :  { %421 = vmatpush.bf16.msra.mxu1 %v1677_v63  ;;  %1784 = vmatpush.bf16.msra.mxu3 %v1677_v63 }
  0x3a   :  { %323 = vmatmul.bf16.vlgmr.msra.gmra.mxu0 %v1751_v0  ;;  %368 = vmatmul.bf16.vlgmr.msra.gmra.mxu2 %v1760_v1 }
  0x3b   :  { %422 = vmatmul.bf16.vlgmr.msra.gmra.mxu1 %v1751_v0  ;;  %467 = vmatmul.bf16.vlgmr.msra.gmra.mxu3 %v1760_v1 }
  0x4a   :  { %328 = vmatmul.bf16.gmra.mxu0 %v1752_v2  ;;  %373 = vmatmul.bf16.gmra.mxu2 %v1761_v3 }
  0x4b   :  { %427 = vmatmul.bf16.gmra.mxu1 %v1752_v2  ;;  %472 = vmatmul.bf16.gmra.mxu3 %v1761_v3 }
  0x5a   :  { %333 = vmatmul.bf16.gmra.mxu0 %v1753_v4  ;;  %378 = vmatmul.bf16.gmra.mxu2 %v1762_v5 }
  0x5b   :  { %432 = vmatmul.bf16.gmra.mxu1 %v1753_v4  ;;  %477 = vmatmul.bf16.gmra.mxu3 %v1762_v5 }
  0x6a   :  { %338 = vmatmul.bf16.gmra.mxu0 %v1754_v6  ;;  %383 = vmatmul.bf16.gmra.mxu2 %v1763_v7 }
  0x6b   :  { %437 = vmatmul.bf16.gmra.mxu1 %v1754_v6  ;;  %482 = vmatmul.bf16.gmra.mxu3 %v1763_v7 }
  0x7a   :  { %343 = vmatmul.bf16.gmra.mxu0 %v1755_v8  ;;  %388 = vmatmul.bf16.gmra.mxu2 %v1764_v9 }
  0x7b   :  { %442 = vmatmul.bf16.gmra.mxu1 %v1755_v8  ;;  %487 = vmatmul.bf16.gmra.mxu3 %v1764_v9 }
  0x8a   :  { %348 = vmatmul.bf16.gmra.mxu0 %v1756_v10  ;;  %393 = vmatmul.bf16.gmra.mxu2 %v1765_v11 }
  0x8b   :  { %447 = vmatmul.bf16.gmra.mxu1 %v1756_v10  ;;  %492 = vmatmul.bf16.gmra.mxu3 %v1765_v11 }
  0x9a   :  { %353 = vmatmul.bf16.gmra.mxu0 %v1757_v12  ;;  %398 = vmatmul.bf16.gmra.mxu2 %v1766_v13 }
  0x9b   :  { %452 = vmatmul.bf16.gmra.mxu1 %v1757_v12  ;;  %497 = vmatmul.bf16.gmra.mxu3 %v1766_v13 }
  0xaa   :  { %358 = vmatmul.bf16.gmra.mxu0 %v1758_v14  ;;  %403 = vmatmul.bf16.gmra.mxu2 %v1767_v15 }
  0xab   :  { %457 = vmatmul.bf16.gmra.mxu1 %v1758_v14  ;;  %502 = vmatmul.bf16.gmra.mxu3 %v1767_v15 }
  0xb7   :  { %v2188_v18 = vpop.f32.mrf.mxu0 }
  0xb8   :  { %v513_v19 = vmul.f32 %v2188_v18, %v2188_v18  ;;  %v2192_v20 = vpop.f32.mrf.mxu1 }
  0xb9   :  { %v531_v21 = vmul.f32 %v2192_v20, %v2192_v20 }
  0xba   :  { %363 = vmatmul.bf16.gmra.mxu0 %v1759_v16  ;;  %408 = vmatmul.bf16.gmra.mxu2 %v1768_v17 }
  0xbb   :  { %v549_v22 = vadd.f32 %v531_v21, %v513_v19  ;;  %462 = vmatmul.bf16.gmra.mxu1 %v1759_v16  ;;  %507 = vmatmul.bf16.gmra.mxu3 %v1768_v17 }
  0xbd   :  { %v2196_v23 = vmax.f32 %v549_v22, 1e-24  ;;  %v2198_v24 = vpop.f32.mrf.mxu2 }
  0xbe   :  { %v585_v25 = vmul.f32 %v2198_v24, %v2198_v24  ;;  %v2202_v26 = vpop.f32.mrf.mxu3 }
  0xbf   :  { %1788 = vlog2.f32 %v2196_v23  ;;  %v603_v27 = vmul.f32 %v2202_v26, %v2202_v26  ;;  %v2207_v28 = vpop.f32.mrf.mxu0  ;;  %vm942_vm0 = vweird.f32 %v2196_v23 }
  0xc0   :  { %1790 = vrsqrt.f32 %v2196_v23  ;;  %v514_v29 = vmul.f32 %v2207_v28, %v2207_v28  ;;  %v2212_v30 = vpop.f32.mrf.mxu1 }
  0xc1   :  { %v621_v31 = vadd.f32 %v603_v27, %v585_v25  ;;  %v532_v32 = vmul.f32 %v2212_v30, %v2212_v30 }
  0xc3   :  { %v2216_v33 = vmax.f32 %v621_v31, 1e-24  ;;  %v550_v34 = vadd.f32 %v532_v32, %v514_v29 }
  0xc5   :  { %v1789_v35 = vpop.eup %1788  ;;  %1792 = vlog2.f32 %v2216_v33  ;;  %v2219_v36 = vmax.f32 %v550_v34, 1e-24  ;;  %v2221_v37 = vpop.f32.mrf.mxu2  ;;  %vm1140_vm3 = vweird.f32 %v2216_v33 }
  0xc6   :  { %v1791_v38 = vpop.eup %1790  ;;  %v658_v39 = vmul.f32 0.6931472, %v1789_v35  ;;  %1794 = vrsqrt.f32 %v2216_v33  ;;  %v586_v40 = vmul.f32 %v2221_v37, %v2221_v37  ;;  %v2226_v41 = vpop.f32.mrf.mxu3 }
  0xc7   :  { %v937_v42 = vmul.f32 %v1791_v38, %v2196_v23  ;;  %1796 = vlog2.f32 %v2219_v36  ;;  %v2230_v43 = vpop.f32.mrf.mxu0  ;;  %v604_v45 = vmul.f32 %v2226_v41, %v2226_v41  ;;  %vm943_vm1 = vweird.f32 %v1791_v38 }
  0xc8   :  { %v693_v44 = vmul.f32 0.15, %v658_v39  ;;  %1798 = vrsqrt.f32 %v2219_v36  ;;  %v515_v46 = vmul.f32 %v2230_v43, %v2230_v43  ;;  %v2237_v47 = vpop.f32.mrf.mxu1  ;;  %vm944_vm2 = vmor %vm942_vm0, %vm943_vm1  ;;  %vm952_vm5 = vweird.f32 %v2219_v36 }
  0xc9   :  { %v938_v48 = vmul.f32 %v1791_v38, %v937_v42  ;;  %v533_v49 = vmul.f32 %v2237_v47, %v2237_v47  ;;  %v622_v51 = vadd.f32 %v604_v45, %v586_v40 }
  0xca   :  { %v711_v50 = vmul.f32 1.442695, %v693_v44 }
  0xcb   :  { %v1793_v52 = vpop.eup %1792  ;;  %v939_v53 = vmul.f32 0.5, %v938_v48  ;;  %v2243_v56 = vmax.f32 %v622_v51, 1e-24  ;;  %v551_v57 = vadd.f32 %v533_v49, %v515_v46 }
  0xcc   :  { %v2241_v54 = vpop.eup %1794  ;;  %v748_v55 = vmul.f32 0.6931472, %v1793_v52  ;;  %1800 = vpow2.f32 %v711_v50 }
  0xcd   :  { %v1797_v58 = vpop.eup %1796  ;;  %v2245_v59 = vpop.f32.mrf.mxu2  ;;  %v940_v61 = vsub.f32 1.5, %v939_v53  ;;  %v1135_v63 = vmul.f32 %v2241_v54, %v2216_v33  ;;  %1802 = vlog2.f32 %v2243_v56  ;;  %v2254_v2 = vmax.f32 %v551_v57, 1e-24 }
  0xce   :  { %v2247_v60 = vpop.eup %1798  ;;  %v783_v62 = vmul.f32 0.15, %v748_v55  ;;  %v660_v0 = vmul.f32 0.6931472, %v1797_v58  ;;  %v2251_v1 = vpop.f32.mrf.mxu3  ;;  %1804 = vrsqrt.f32 %v2243_v56  ;;  %v587_v6 = vmul.f32 %v2245_v59, %v2245_v59 }
  0xcf   :  { %v2256_v3 = vpop.f32.mrf.mxu0  ;;  %v947_v5 = vmul.f32 %v2247_v60, %v2219_v36  ;;  %v605_v7 = vmul.f32 %v2251_v1, %v2251_v1  ;;  %v941_v8 = vmul.f32 %v1791_v38, %v940_v61  ;;  %v1136_v10 = vmul.f32 %v2241_v54, %v1135_v63 }
  0xd0   :  { %v2258_v4 = vpop.f32.mrf.mxu1  ;;  %v801_v9 = vmul.f32 1.442695, %v783_v62  ;;  %v694_v11 = vmul.f32 0.15, %v660_v0  ;;  %1806 = vlog2.f32 %v2254_v2  ;;  %v516_v14 = vmul.f32 %v2256_v3, %v2256_v3 }
  0xd1   :  { %v623_v13 = vadd.f32 %v605_v7, %v587_v6  ;;  %v534_v15 = vmul.f32 %v2258_v4, %v2258_v4  ;;  %v948_v16 = vmul.f32 %v2247_v60, %v947_v5  ;;  %1808 = vrsqrt.f32 %v2254_v2 }
  0xd2   :  { %v1801_v12 = vpop.eup %1800  ;;  %v945_v22 = vsel %vm944_vm2, %v1791_v38, %v941_v8  ;;  %1810 = vpow2.f32 %v801_v9  ;;  %v1137_v25 = vmul.f32 0.5, %v1136_v10  ;;  %v713_v31 = vmul.f32 1.442695, %v694_v11 }
  0xd3   :  { %v1803_v17 = vpop.eup %1802  ;;  %v2279_v19 = vmax.f32 %v623_v13, 1e-24  ;;  %v1116_v29 = vmul.f32 %v1801_v12, %v945_v22  ;;  %v552_v32 = vadd.f32 %v534_v15, %v516_v14  ;;  %v949_v34 = vmul.f32 0.5, %v948_v16 }
  0xd4   :  { %v2281_v21 = vpop.eup %1804  ;;  %v750_v35 = vmul.f32 0.6931472, %v1803_v17  ;;  %v1138_v46 = vsub.f32 1.5, %v1137_v25  ;;  %vm1141_vm4 = vweird.f32 %v2241_v54  ;;  %vm953_vm6 = vweird.f32 %v2247_v60 }
  0xd5   :  { %v2283_v27 = vpop.f32.mrf.mxu2  ;;  %1812 = vlog2.f32 %v2279_v19  ;;  %v1145_v40 = vmul.f32 %v2281_v21, %v2243_v56  ;;  %v2304_v48 = vmul.f32 %v1116_v29, %v2192_v20  ;;  %v2306_v49 = vmax.f32 %v552_v32, 1e-24  ;;  %vm1142_vm7 = vmor %vm1140_vm3, %vm1141_vm4 }
  0xd6   :  { %v2286_v39 = vpop.f32.mrf.mxu3  ;;  %v1807_v23 = vpop.eup %1806  ;;  %1814 = vrsqrt.f32 %v2279_v19  ;;  %v588_v38 = vmul.f32 %v2283_v27, %v2283_v27  ;;  %v950_v52 = vsub.f32 1.5, %v949_v34  ;;  %v784_v53 = vmul.f32 0.15, %v750_v35  ;;  %vm2351_vm8 = vmor %vm952_vm5, %vm953_vm6 }
  0xd7   :  { %v2294_v42 = vpop.f32.mrf.mxu0  ;;  %v2298_v45 = vpop.eup %1808  ;;  %1816 = vpow2.f32 %v713_v31  ;;  %v606_v50 = vmul.f32 %v2286_v39, %v2286_v39  ;;  %v1146_v61 = vmul.f32 %v2281_v21, %v1145_v40  ;;  %v662_v20 = vmul.f32 0.6931472, %v1807_v23 }
  0xd8   :  { %v2296_v44 = vpop.f32.mrf.mxu1  ;;  %v1811_v51 = vpop.eup %1810  ;;  %v517_v55 = vmul.f32 %v2294_v42, %v2294_v42  ;;  %v957_v62 = vmul.f32 %v2298_v45, %v2254_v2  ;;  %v1139_v0 = vmul.f32 %v2241_v54, %v1138_v46  ;;  %1818 = vlog2.f32 %v2306_v49 }
  0xd9   :  { %v535_v57 = vmul.f32 %v2296_v44, %v2296_v44  ;;  %v624_v63 = vadd.f32 %v606_v50, %v588_v38  ;;  %1820 = vrsqrt.f32 %v2306_v49  ;;  %v837_v9 = vsub.f32 %v1801_v12, %v1811_v51 }
  0xda   :  { %v2325_v10 = vmul.f32 %v1116_v29, %v2188_v18  ;;  %v951_v11 = vmul.f32 %v2247_v60, %v950_v52  ;;  %v803_v13 = vmul.f32 1.442695, %v784_v53  ;;  %v1147_v22 = vmul.f32 0.5, %v1146_v61 }
  0xdb   :  { %v1813_v58 = vpop.eup %1812  ;;  %v553_v6 = vadd.f32 %v535_v57, %v517_v55  ;;  %v2322_v8 = vmax.f32 %v624_v63, 1e-24  ;;  %v695_v25 = vmul.f32 0.15, %v662_v20  ;;  %v958_v31 = vmul.f32 %v2298_v45, %v957_v62 }
  0xdc   :  { %v752_v5 = vmul.f32 0.6931472, %v1813_v58  ;;  %v2319_v7 = vpop.eup %1814  ;;  %v1143_v34 = vsel %vm1142_vm7, %v2241_v54, %v1139_v0  ;;  %vm1151_vm9 = vweird.f32 %v2281_v21  ;;  %v855_v33 = vmul.f32 %v837_v9, %v837_v9 }
  0xdd   :  { %v1155_v15 = vmul.f32 %v2319_v7, %v2279_v19  ;;  %v2330_v16 = vpop.f32.mrf.mxu2  ;;  %v2332_v17 = vpop.eup %1816  ;;  %1822 = vlog2.f32 %v2322_v8  ;;  %v2342_v29 = vmax.f32 %v553_v6, 1e-24  ;;  %v2358_v38 = vmul.f32 %v1811_v51, %v1143_v34 }
  0xde   :  { %v785_v14 = vmul.f32 0.15, %v752_v5  ;;  %1824 = vrsqrt.f32 %v2322_v8  ;;  %v2344_v32 = vpop.f32.mrf.mxu3  ;;  %v589_v23 = vmul.f32 %v2330_v16, %v2330_v16  ;;  %v1819_v40 = vpop.eup %1818  ;;  %v955_v54 = vsel %vm2351_vm8, %v2247_v60, %v951_v11  ;;  %873 = vadd.xlane.f32.xlu0 %v855_v33 }
  0xdf   :  { %v1156_v12 = vmul.f32 %v2319_v7, %v1155_v15  ;;  %1826 = vpow2.f32 %v803_v13  ;;  %vm1150_vm10 = vweird.f32 %v2243_v56  ;;  %v2364_v46 = vpop.f32.mrf.mxu0  ;;  %v2366_v50 = vpop.eup %1820  ;;  %v959_v52 = vmul.f32 0.5, %v958_v31 }
  0xe0   :  { %v805_v18 = vmul.f32 1.442695, %v785_v14  ;;  %vm962_vm11 = vweird.f32 %v2254_v2  ;;  %v664_v53 = vmul.f32 0.6931472, %v1819_v40  ;;  %1828 = vlog2.f32 %v2342_v29  ;;  %v2372_v55 = vpop.f32.mrf.mxu1  ;;  %vm1152_vm15 = vmor %vm1150_vm10, %vm1151_vm9 }
  0xe1   :  { %v1157_v36 = vmul.f32 0.5, %v1156_v12  ;;  %v607_v51 = vmul.f32 %v2344_v32, %v2344_v32  ;;  %v1148_v60 = vsub.f32 1.5, %v1147_v22  ;;  %v715_v57 = vmul.f32 1.442695, %v695_v25 }
  0xe2   :  { %1830 = vpow2.f32 %v805_v18  ;;  %v967_v58 = vmul.f32 %v2366_v50, %v2306_v49  ;;  %v696_v20 = vmul.f32 0.15, %v664_v53  ;;  %v518_v63 = vmul.f32 %v2364_v46, %v2364_v46 }
  0xe3   :  { %v1823_v61 = vpop.eup %1822  ;;  %1832 = vrsqrt.f32 %v2342_v29  ;;  %v625_v62 = vadd.f32 %v607_v51, %v589_v23  ;;  %v1158_v5 = vsub.f32 1.5, %v1157_v36  ;;  %v536_v11 = vmul.f32 %v2372_v55, %v2372_v55 }
  0xe4   :  { %v2379_v0 = vpop.eup %1824  ;;  %v968_v6 = vmul.f32 %v2366_v50, %v967_v58  ;;  %v754_v9 = vmul.f32 0.6931472, %v1823_v61  ;;  %v2385_v13 = vmul.f32 %v2332_v17, %v955_v54  ;;  %v960_v14 = vsub.f32 1.5, %v959_v52 }
  0xe5   :  { %v1165_v15 = vmul.f32 %v2379_v0, %v2322_v8  ;;  %v2389_v22 = vmax.f32 %v625_v62, 1e-24  ;;  %v2391_v25 = vpop.eup %1826  ;;  %v1149_v31 = vmul.f32 %v2281_v21, %v1148_v60  ;;  %vm963_vm12 = vweird.f32 %v2298_v45 }
  0xe6   :  { %vm1160_vm13 = vweird.f32 %v2279_v19  ;;  %v969_v18 = vmul.f32 0.5, %v968_v6  ;;  %v1829_v12 = vpop.eup %1828  ;;  %1834 = vpow2.f32 %v715_v57  ;;  %v717_v34 = vmul.f32 1.442695, %v696_v20  ;;  %vm2429_vm2 = vmor %vm962_vm11, %vm963_vm12 }
  0xe7   :  { %v1166_v35 = vmul.f32 %v2379_v0, %v1165_v15  ;;  %v554_v33 = vadd.f32 %v536_v11, %v518_v63  ;;  %v1159_v40 = vmul.f32 %v2319_v7, %v1158_v5  ;;  %vm1161_vm14 = vweird.f32 %v2319_v7 }
  0xe8   :  { %v2397_v23 = vpop.eup %1830  ;;  %v786_v54 = vmul.f32 0.15, %v754_v9  ;;  %1836 = vlog2.f32 %v2389_v22  ;;  %v1404_v52 = vmul.f32 %v2358_v38, %v2202_v26  ;;  %v2408_v53 = vmul.f32 %v2385_v13, %v2212_v30  ;;  %vm1162_vm1 = vmor %vm1160_vm13, %vm1161_vm14 }
  0xe9   :  { %v2402_v36 = vpop.eup %1832  ;;  %v961_v51 = vmul.f32 %v2298_v45, %v960_v14  ;;  %vm972_vm0 = vweird.f32 %v2306_v49  ;;  %v1153_v60 = vsel %vm1152_vm15, %v2281_v21, %v1149_v31  ;;  %v970_v57 = vsub.f32 1.5, %v969_v18 }
  0xea   :  { %v666_v58 = vmul.f32 0.6931472, %v1829_v12  ;;  %1838 = vrsqrt.f32 %v2389_v22  ;;  %v2419_v26 = vmul.f32 %v2391_v25, %v1153_v60  ;;  %v1167_v30 = vmul.f32 0.5, %v1166_v35  ;;  %v2456_v12 = vpop.f32.mrf.mxu2 }
  0xeb   :  { %1840 = vpow2.f32 %v717_v34  ;;  %v2423_v56 = vmax.f32 %v554_v33, 1e-24  ;;  %v1163_v61 = vsel %vm1162_vm1, %v2319_v7, %v1159_v40  ;;  %v807_v20 = vmul.f32 1.442695, %v786_v54  ;;  %v2458_v34 = vpop.f32.mrf.mxu3 }
  0xec   :  { %v977_v62 = vmul.f32 %v2402_v36, %v2342_v29  ;;  %v1350_v19 = vmul.f32 %v2358_v38, %v2198_v24  ;;  %v2438_v63 = vpop.eup %1834  ;;  %v965_v5 = vsel %vm2429_vm2, %v2298_v45, %v961_v51  ;;  %v1316_v2 = vmul.f32 %v2397_v23, %v1163_v61 }
  0xed   :  { %vm1170_vm3 = vweird.f32 %v2322_v8  ;;  %v1422_v6 = vsub.f32 %v2304_v48, %v1404_v52  ;;  %v971_v9 = vmul.f32 %v2366_v50, %v970_v57  ;;  %vm973_vm4 = vweird.f32 %v2366_v50  ;;  %v2477_v57 = vpop.f32.mrf.mxu0 }
  0xee   :  { %v1837_v7 = vpop.eup %1836  ;;  %v697_v11 = vmul.f32 0.15, %v666_v58  ;;  %v1368_v24 = vsub.f32 %v2325_v10, %v1350_v19  ;;  %v1168_v38 = vsub.f32 1.5, %v1167_v30  ;;  %1842 = vrsqrt.f32 %v2423_v56  ;;  %vm974_vm5 = vmor %vm972_vm0, %vm973_vm4  ;;  %v2479_v58 = vpop.f32.mrf.mxu1 }
  0xef   :  { %v756_v14 = vmul.f32 0.6931472, %v1837_v7  ;;  %v1458_v15 = vmul.f32 %v1422_v6, %v1422_v6  ;;  %v1405_v31 = vmul.f32 %v2419_v26, %v2226_v41  ;;  %v1118_v48 = vmul.f32 %v2438_v63, %v965_v5 }
  0xf0   :  { %v2450_v45 = vpop.eup %1838  ;;  %1844 = vpow2.f32 %v807_v20  ;;  %v978_v18 = vmul.f32 %v2402_v36, %v977_v62  ;;  %v1406_v35 = vmul.f32 %v1316_v2, %v2251_v1  ;;  %vm1171_vm6 = vweird.f32 %v2379_v0 }
  0xf1   :  { %v2460_v10 = vpop.eup %1840  ;;  %1846 = vlog2.f32 %v2423_v56  ;;  %v1440_v41 = vmul.f32 %v1368_v24, %v1368_v24  ;;  %v975_v33 = vsel %vm974_vm5, %v2366_v50, %v971_v9  ;;  %v719_v40 = vmul.f32 1.442695, %v697_v11  ;;  %vm2502_vm8 = vmor %vm1170_vm3, %vm1171_vm6 }
  0xf2   :  { %v787_v54 = vmul.f32 0.15, %v756_v14  ;;  %v838_v52 = vsub.f32 %v2332_v17, %v2391_v25  ;;  %v1169_v51 = vmul.f32 %v2379_v0, %v1168_v38  ;;  %v1175_v1 = vmul.f32 %v2450_v45, %v2389_v22 }
  0xf3   :  { %v1476_v60 = vadd.f32 %v1458_v15, %v1440_v41  ;;  %v590_v49 = vmul.f32 %v2456_v12, %v2456_v12  ;;  %v1388_v50 = vmul.f32 %v1118_v48, %v2237_v47  ;;  %v1119_v30 = vmul.f32 %v2460_v10, %v975_v33  ;;  %v2528_v41 = vpop.f32.mrf.mxu2  ;;  %v2530_v33 = vpop.f32.mrf.mxu3 }
  0xf4   :  { %v979_v21 = vmul.f32 0.5, %v978_v18  ;;  %v856_v61 = vmul.f32 %v838_v52, %v838_v52  ;;  %v2483_v17 = vpop.eup %1842  ;;  %v2486_v25 = vmul.f32 %v1118_v48, %v2230_v43  ;;  %v2489_v20 = vmul.f32 %v1316_v2, %v2245_v59 }
  0xf5   :  { %vm982_vm7 = vweird.f32 %v2342_v29  ;;  %1494 = vadd.xlane.f32.xlu1 %v1476_v60  ;;  %v608_v62 = vmul.f32 %v2458_v34, %v2458_v34  ;;  %v2496_v47 = vsub.f32 %v1388_v50, %v1406_v35  ;;  %1848 = vpow2.f32 %v719_v40  ;;  %v2547_v60 = vpop.f32.mrf.mxu0 }
  0xf6   :  { %v2494_v19 = vpop.eup %1844  ;;  %vm983_vm9 = vweird.f32 %v2402_v36  ;;  %v809_v59 = vmul.f32 1.442695, %v787_v54  ;;  %875 = vadd.xlane.f32.xlu0 %v856_v61  ;;  %v1173_v2 = vsel %vm2502_vm8, %v2379_v0, %v1169_v51  ;;  %v1176_v6 = vmul.f32 %v2450_v45, %v1175_v1 }
  0xf7   :  { %v1847_v5 = vpop.eup %1846  ;;  %v626_v7 = vadd.f32 %v608_v62, %v590_v49  ;;  %v519_v8 = vmul.f32 %v2477_v57, %v2477_v57  ;;  %v2514_v9 = vmul.f32 %v1119_v30, %v2256_v3  ;;  %v980_v11 = vsub.f32 1.5, %v979_v21  ;;  %v2549_v49 = vpop.f32.mrf.mxu1  ;;  %vm2564_vm11 = vmor %vm982_vm7, %vm983_vm9 }
  0xf8   :  { %v987_v24 = vmul.f32 %v2483_v17, %v2423_v56  ;;  %v537_v38 = vmul.f32 %v2479_v58, %v2479_v58  ;;  %v1333_v0 = vmul.f32 %v2385_v13, %v2207_v28  ;;  %v1351_v15 = vmul.f32 %v2419_v26, %v2221_v37 }
  0xf9   :  { %v2520_v14 = vmax.f32 %v626_v7, 1e-24  ;;  %v1423_v48 = vsub.f32 %v2408_v53, %v1405_v31  ;;  %v1317_v3 = vmul.f32 %v2494_v19, %v1173_v2  ;;  %1850 = vpow2.f32 %v809_v59 }
  0xfa   :  { %v668_v18 = vmul.f32 0.6931472, %v1847_v5  ;;  %v555_v35 = vadd.f32 %v537_v38, %v519_v8  ;;  %v1177_v40 = vmul.f32 0.5, %v1176_v6  ;;  %v1369_v54 = vsub.f32 %v1333_v0, %v1351_v15 }
  0xfb   :  { %1852 = vlog2.f32 %v2520_v14  ;;  %v1459_v52 = vmul.f32 %v1423_v48, %v1423_v48  ;;  %v2533_v28 = vpop.eup %1848  ;;  %v981_v37 = vmul.f32 %v2402_v36, %v980_v11  ;;  %v988_v13 = vmul.f32 %v2483_v17, %v987_v24 }
  0xfc   :  { %1854 = vrsqrt.f32 %v2520_v14  ;;  %v2538_v53 = vmax.f32 %v555_v35, 1e-24  ;;  %vm1180_vm10 = vweird.f32 %v2389_v22  ;;  %v1441_v26 = vmul.f32 %v1369_v54, %v1369_v54 }
  0xfd   :  { %v839_v31 = vsub.f32 %v2438_v63, %v2397_v23  ;;  %v591_v51 = vmul.f32 %v2528_v41, %v2528_v41  ;;  %v609_v1 = vmul.f32 %v2530_v33, %v2530_v33  ;;  %v1389_v50 = vmul.f32 %v1119_v30, %v2258_v4 }
  0xfe   :  { %v1407_v21 = vmul.f32 %v1317_v3, %v2286_v39  ;;  %v698_v61 = vmul.f32 0.15, %v668_v18  ;;  %1856 = vlog2.f32 %v2538_v53  ;;  %v1178_v62 = vsub.f32 1.5, %v1177_v40 }
  0xff   :  { %1858 = vrsqrt.f32 %v2538_v53  ;;  %v1477_v23 = vadd.f32 %v1459_v52, %v1441_v26  ;;  %v857_v63 = vmul.f32 %v839_v31, %v839_v31  ;;  %v2555_v43 = vpop.eup %1850  ;;  %v2558_v59 = vmul.f32 %v1317_v3, %v2283_v27  ;;  %v2598_v52 = vpop.f32.mrf.mxu2 }
 0x100   :  { %v989_v39 = vmul.f32 0.5, %v988_v13  ;;  %v627_v30 = vadd.f32 %v609_v1, %v591_v51  ;;  %v520_v5 = vmul.f32 %v2547_v60, %v2547_v60  ;;  %v985_v6 = vsel %vm2564_vm11, %v2402_v36, %v981_v37  ;;  %v2608_v13 = vpop.f32.mrf.mxu3  ;;  %v2612_v1 = vpop.f32.mrf.mxu0 }
 0x101   :  { %v1853_v2 = vpop.eup %1852  ;;  %vm1181_vm12 = vweird.f32 %v2450_v45  ;;  %1496 = vadd.xlane.f32.xlu2 %v1477_v23  ;;  %877 = vadd.xlane.f32.xlu1 %v857_v63  ;;  %v538_v27 = vmul.f32 %v2549_v49, %v2549_v49  ;;  %v1370_v29 = vsub.f32 %v2486_v25, %v2489_v20  ;;  %v2580_v8 = vsub.f32 %v1389_v50, %v1407_v21  ;;  %v2614_v50 = vpop.f32.mrf.mxu1 }
 0x102   :  { %v2578_v7 = vpop.eup %1854  ;;  %v721_v11 = vmul.f32 1.442695, %v698_v61  ;;  %v758_v24 = vmul.f32 0.6931472, %v1853_v2  ;;  %v2582_v38 = vmax.f32 %v627_v30, 1e-24  ;;  %v1179_v36 = vmul.f32 %v2450_v45, %v1178_v62  ;;  %vm1182_vm14 = vmor %vm1180_vm10, %vm1181_vm12 }
 0x103   :  { %v1185_v0 = vmul.f32 %v2578_v7, %v2520_v14  ;;  %v1460_v15 = vmul.f32 %v2496_v47, %v2496_v47  ;;  %v840_v48 = vsub.f32 %v2460_v10, %v2494_v19  ;;  %v1120_v20 = vmul.f32 %v2533_v28, %v985_v6 }
 0x104   :  { %v1857_v25 = vpop.eup %1856  ;;  %v990_v3 = vsub.f32 1.5, %v989_v39  ;;  %vm992_vm13 = vweird.f32 %v2423_v56  ;;  %1860 = vlog2.f32 %v2582_v38  ;;  %v556_v18 = vadd.f32 %v538_v27, %v520_v5 }
 0x105   :  { %v2594_v35 = vpop.eup %1858  ;;  %v788_v40 = vmul.f32 0.15, %v758_v24  ;;  %v1186_v54 = vmul.f32 %v2578_v7, %v1185_v0  ;;  %1862 = vrsqrt.f32 %v2582_v38  ;;  %v1442_v47 = vmul.f32 %v1370_v29, %v1370_v29 }
 0x106   :  { %1864 = vpow2.f32 %v721_v11  ;;  %v670_v10 = vmul.f32 0.6931472, %v1857_v25  ;;  %v997_v19 = vmul.f32 %v2594_v35, %v2538_v53  ;;  %v2606_v37 = vmax.f32 %v556_v18, 1e-24 }
 0x107   :  { %v1183_v26 = vsel %vm1182_vm14, %v2450_v45, %v1179_v36  ;;  %vm993_vm15 = vweird.f32 %v2483_v17  ;;  %v1478_v31 = vadd.f32 %v1460_v15, %v1442_v47  ;;  %v858_v51 = vmul.f32 %v840_v48, %v840_v48 }
 0x108   :  { %v1318_v22 = vmul.f32 %v2555_v43, %v1183_v26  ;;  %v991_v21 = vmul.f32 %v2483_v17, %v990_v3  ;;  %v1187_v61 = vmul.f32 0.5, %v1186_v54  ;;  %v592_v62 = vmul.f32 %v2598_v52, %v2598_v52  ;;  %vm994_vm1 = vmor %vm992_vm13, %vm993_vm15 }
 0x109   :  { %v811_v23 = vmul.f32 1.442695, %v788_v40  ;;  %v998_v63 = vmul.f32 %v2594_v35, %v997_v19  ;;  %1866 = vlog2.f32 %v2606_v37  ;;  %1498 = vadd.xlane.f32.xlu0 %v1478_v31  ;;  %879 = vadd.xlane.f32.xlu1 %v858_v51  ;;  %v610_v45 = vmul.f32 %v2608_v13, %v2608_v13 }
 0x10a   :  { %v1861_v4 = vpop.eup %1860  ;;  %v699_v39 = vmul.f32 0.15, %v670_v10  ;;  %1868 = vrsqrt.f32 %v2606_v37  ;;  %v521_v30 = vmul.f32 %v2612_v1, %v2612_v1  ;;  %v539_v5 = vmul.f32 %v2614_v50, %v2614_v50 }
 0x10b   :  { %v2629_v2 = vpop.eup %1862  ;;  %v2632_v6 = vmul.f32 %v1120_v20, %v2294_v42  ;;  %v1390_v27 = vmul.f32 %v1120_v20, %v2296_v44  ;;  %v760_v29 = vmul.f32 0.6931472, %v1861_v4  ;;  %v628_v11 = vadd.f32 %v610_v45, %v592_v62 }
 0x10c   :  { %v2635_v24 = vpop.eup %1864  ;;  %v1188_v36 = vsub.f32 1.5, %v1187_v61  ;;  %vm1190_vm0 = vweird.f32 %v2520_v14  ;;  %v1195_v0 = vmul.f32 %v2629_v2, %v2582_v38  ;;  %v557_v15 = vadd.f32 %v539_v5, %v521_v30  ;;  %v2688_v14 = vpop.f32.mrf.mxu2 }
 0x10d   :  { %v1408_v48 = vmul.f32 %v1318_v22, %v2344_v32  ;;  %1870 = vpow2.f32 %v811_v23  ;;  %v999_v42 = vmul.f32 0.5, %v998_v63  ;;  %v2645_v44 = vmax.f32 %v628_v11, 1e-24  ;;  %v2701_v11 = vpop.f32.mrf.mxu1 }
 0x10e   :  { %v995_v25 = vsel %vm994_vm1, %v2483_v17, %v991_v21  ;;  %v723_v20 = vmul.f32 1.442695, %v699_v39  ;;  %v789_v3 = vmul.f32 0.15, %v760_v29  ;;  %v1196_v18 = vmul.f32 %v2629_v2, %v1195_v0  ;;  %v2699_v29 = vpop.f32.mrf.mxu0 }
 0x10f   :  { %v1867_v40 = vpop.eup %1866  ;;  %v2650_v54 = vmul.f32 %v1318_v22, %v2330_v16  ;;  %v1121_v32 = vmul.f32 %v2635_v24, %v995_v25  ;;  %1872 = vlog2.f32 %v2645_v44  ;;  %v2654_v56 = vmax.f32 %v557_v15, 1e-24 }
 0x110   :  { %v2656_v47 = vpop.eup %1868  ;;  %v1189_v10 = vmul.f32 %v2578_v7, %v1188_v36  ;;  %vm1191_vm2 = vweird.f32 %v2578_v7  ;;  %v672_v17 = vmul.f32 0.6931472, %v1867_v40  ;;  %1874 = vrsqrt.f32 %v2645_v44 }
 0x111   :  { %v1000_v19 = vsub.f32 1.5, %v999_v42  ;;  %vm1002_vm3 = vweird.f32 %v2538_v53  ;;  %v1007_v16 = vmul.f32 %v2656_v47, %v2606_v37  ;;  %v1371_v26 = vsub.f32 %v2514_v9, %v2558_v59  ;;  %vm2675_vm4 = vmor %vm1190_vm0, %vm1191_vm2 }
 0x112   :  { %v2666_v31 = vsub.f32 %v1390_v27, %v1408_v48  ;;  %1876 = vpow2.f32 %v723_v20  ;;  %v813_v51 = vmul.f32 1.442695, %v789_v3  ;;  %v1197_v22 = vmul.f32 0.5, %v1196_v18 }
 0x113   :  { %v2668_v21 = vpop.eup %1870  ;;  %v2671_v61 = vmul.f32 %v1121_v32, %v2364_v46  ;;  %v700_v23 = vmul.f32 0.15, %v672_v17  ;;  %1878 = vlog2.f32 %v2654_v56  ;;  %v1461_v9 = vmul.f32 %v2580_v8, %v2580_v8 }
 0x114   :  { %v1391_v59 = vmul.f32 %v1121_v32, %v2372_v55  ;;  %v1193_v63 = vsel %vm2675_vm4, %v2578_v7, %v1189_v10  ;;  %vm1003_vm5 = vweird.f32 %v2594_v35  ;;  %v1008_v46 = vmul.f32 %v2656_v47, %v1007_v16  ;;  %v2694_v55 = vpop.f32.mrf.mxu3 }
 0x115   :  { %v1873_v45 = vpop.eup %1872  ;;  %v1001_v4 = vmul.f32 %v2594_v35, %v1000_v19  ;;  %1880 = vrsqrt.f32 %v2654_v56  ;;  %v1443_v39 = vmul.f32 %v1371_v26, %v1371_v26  ;;  %v841_v8 = vsub.f32 %v2533_v28, %v2555_v43  ;;  %vm1004_vm6 = vmor %vm1002_vm3, %vm1003_vm5 }
 0x116   :  { %v2696_v30 = vpop.eup %1874  ;;  %v1319_v7 = vmul.f32 %v2668_v21, %v1193_v63  ;;  %1882 = vpow2.f32 %v813_v51  ;;  %v1198_v5 = vsub.f32 1.5, %v1197_v22  ;;  %v762_v27 = vmul.f32 0.6931472, %v1873_v45 }
 0x117   :  { %v725_v36 = vmul.f32 1.442695, %v700_v23  ;;  %v1205_v0 = vmul.f32 %v2696_v30, %v2645_v44  ;;  %v1479_v15 = vadd.f32 %v1461_v9, %v1443_v39  ;;  %v593_v28 = vmul.f32 %v2688_v14, %v2688_v14 }
 0x118   :  { %v2707_v43 = vpop.eup %1876  ;;  %v1009_v48 = vmul.f32 0.5, %v1008_v46  ;;  %v790_v42 = vmul.f32 0.15, %v762_v27  ;;  %v859_v25 = vmul.f32 %v841_v8, %v841_v8  ;;  %v611_v20 = vmul.f32 %v2694_v55, %v2694_v55 }
 0x119   :  { %v1879_v3 = vpop.eup %1878  ;;  %vm1200_vm7 = vweird.f32 %v2582_v38  ;;  %v1206_v18 = vmul.f32 %v2696_v30, %v1205_v0  ;;  %1500 = vadd.xlane.f32.xlu1 %v1479_v15  ;;  %v522_v40 = vmul.f32 %v2699_v29, %v2699_v29  ;;  %v540_v32 = vmul.f32 %v2701_v11, %v2701_v11  ;;  %v2756_v15 = vpop.f32.mrf.mxu0 }
 0x11a   :  { %v1409_v10 = vmul.f32 %v1319_v7, %v2458_v34  ;;  %v1005_v17 = vsel %vm1004_vm6, %v2594_v35, %v1001_v4  ;;  %vm1201_vm8 = vweird.f32 %v2629_v2  ;;  %v674_v19 = vmul.f32 0.6931472, %v1879_v3  ;;  %881 = vadd.xlane.f32.xlu2 %v859_v25 }
 0x11b   :  { %v2724_v53 = vpop.eup %1880  ;;  %v1122_v16 = vmul.f32 %v2707_v43, %v1005_v17  ;;  %v1199_v26 = vmul.f32 %v2629_v2, %v1198_v5  ;;  %v629_v51 = vadd.f32 %v611_v20, %v593_v28  ;;  %v558_v22 = vadd.f32 %v540_v32, %v522_v40  ;;  %vm1202_vm10 = vmor %vm1200_vm7, %vm1201_vm8  ;;  %v2750_v5 = vpop.f32.mrf.mxu2 }
 0x11c   :  { %v2728_v62 = vpop.eup %1882  ;;  %1884 = vpow2.f32 %v725_v36  ;;  %v1010_v23 = vsub.f32 1.5, %v1009_v48  ;;  %v815_v9 = vmul.f32 1.442695, %v790_v42  ;;  %v1207_v34 = vmul.f32 0.5, %v1206_v18  ;;  %v2752_v38 = vpop.f32.mrf.mxu3 }
 0x11d   :  { %v1355_v35 = vmul.f32 %v1319_v7, %v2456_v12  ;;  %vm1012_vm9 = vweird.f32 %v2606_v37  ;;  %v1017_v63 = vmul.f32 %v2724_v53, %v2654_v56  ;;  %v2734_v46 = vmax.f32 %v629_v51, 1e-24 }
 0x11e   :  { %vm1013_vm11 = vweird.f32 %v2656_v47  ;;  %v701_v45 = vmul.f32 0.15, %v674_v19  ;;  %v2741_v4 = vmax.f32 %v558_v22, 1e-24  ;;  %v1372_v12 = vsub.f32 %v2632_v6, %v2650_v54  ;;  %v2763_v54 = vpop.f32.mrf.mxu1 }
 0x11f   :  { %v1427_v39 = vsub.f32 %v1391_v59, %v1409_v10  ;;  %v2746_v8 = vmul.f32 %v1122_v16, %v2477_v57  ;;  %v1203_v7 = vsel %vm1202_vm10, %v2629_v2, %v1199_v26  ;;  %1886 = vlog2.f32 %v2734_v46  ;;  %vm1014_vm13 = vmor %vm1012_vm9, %vm1013_vm11 }
 0x120   :  { %v1320_v27 = vmul.f32 %v2728_v62, %v1203_v7  ;;  %v1011_v36 = vmul.f32 %v2656_v47, %v1010_v23  ;;  %1888 = vpow2.f32 %v815_v9  ;;  %v1208_v0 = vsub.f32 1.5, %v1207_v34 }
 0x121   :  { %vm1210_vm12 = vweird.f32 %v2645_v44  ;;  %v1018_v57 = vmul.f32 %v2724_v53, %v1017_v63  ;;  %1890 = vrsqrt.f32 %v2734_v46  ;;  %v1444_v2 = vmul.f32 %v1372_v12, %v1372_v12 }
 0x122   :  { %v1462_v6 = vmul.f32 %v2666_v31, %v2666_v31  ;;  %v2765_v59 = vpop.eup %1884  ;;  %v727_v28 = vmul.f32 1.442695, %v701_v45  ;;  %1892 = vlog2.f32 %v2741_v4  ;;  %v594_v48 = vmul.f32 %v2750_v5, %v2750_v5 }
 0x123   :  { %v612_v42 = vmul.f32 %v2752_v38, %v2752_v38  ;;  %v1392_v25 = vmul.f32 %v1122_v16, %v2479_v58  ;;  %1894 = vrsqrt.f32 %v2741_v4  ;;  %v523_v20 = vmul.f32 %v2756_v15, %v2756_v15 }
 0x124   :  { %v1480_v31 = vadd.f32 %v1462_v6, %v1444_v2  ;;  %v1015_v3 = vsel %vm1014_vm13, %v2656_v47, %v1011_v36  ;;  %v541_v40 = vmul.f32 %v2763_v54, %v2763_v54  ;;  %v1373_v32 = vsub.f32 %v2671_v61, %v1355_v35  ;;  %v2819_v36 = vpop.f32.mrf.mxu3 }
 0x125   :  { %v630_v18 = vadd.f32 %v612_v42, %v594_v48  ;;  %v1887_v58 = vpop.eup %1886  ;;  %v1410_v10 = vmul.f32 %v1320_v27, %v2530_v33  ;;  %v1123_v37 = vmul.f32 %v2765_v59, %v1015_v3  ;;  %vm1211_vm14 = vweird.f32 %v2696_v30 }
 0x126   :  { %v1019_v17 = vmul.f32 0.5, %v1018_v57  ;;  %vm1022_vm15 = vweird.f32 %v2654_v56  ;;  %1502 = vadd.xlane.f32.xlu2 %v1480_v31  ;;  %v2788_v19 = vpop.eup %1888  ;;  %v1209_v47 = vmul.f32 %v2696_v30, %v1208_v0  ;;  %1896 = vpow2.f32 %v727_v28  ;;  %vm1212_vm1 = vmor %vm1210_vm12, %vm1211_vm14  ;;  %v2831_v31 = vpop.f32.mrf.mxu1 }
 0x127   :  { %v764_v16 = vmul.f32 0.6931472, %v1887_v58  ;;  %v2791_v26 = vmax.f32 %v630_v18, 1e-24  ;;  %v2793_v61 = vpop.eup %1890  ;;  %v559_v51 = vadd.f32 %v541_v40, %v523_v20  ;;  %v1445_v33 = vmul.f32 %v1373_v32, %v1373_v32 }
 0x128   :  { %v1463_v22 = vmul.f32 %v1427_v39, %v1427_v39  ;;  %v842_v23 = vsub.f32 %v2635_v24, %v2668_v21  ;;  %v1893_v9 = vpop.eup %1892  ;;  %v1356_v34 = vmul.f32 %v1320_v27, %v2528_v41  ;;  %v1215_v63 = vmul.f32 %v2793_v61, %v2734_v46  ;;  %v2807_v39 = vpop.f32.mrf.mxu2 }
 0x129   :  { %v791_v35 = vmul.f32 0.15, %v764_v16  ;;  %1898 = vlog2.f32 %v2791_v26  ;;  %v2801_v45 = vpop.eup %1894  ;;  %v2803_v12 = vsub.f32 %v1392_v25, %v1410_v10  ;;  %v1020_v7 = vsub.f32 1.5, %v1019_v17  ;;  %v2829_v25 = vpop.f32.mrf.mxu0 }
 0x12a   :  { %vm1023_vm0 = vweird.f32 %v2724_v53  ;;  %1900 = vrsqrt.f32 %v2791_v26  ;;  %v2810_v24 = vmul.f32 %v1123_v37, %v2547_v60  ;;  %v1216_v41 = vmul.f32 %v2793_v61, %v1215_v63 }
 0x12b   :  { %v676_v21 = vmul.f32 0.6931472, %v1893_v9  ;;  %v1027_v27 = vmul.f32 %v2801_v45, %v2741_v4  ;;  %v1213_v0 = vsel %vm1212_vm1, %v2696_v30, %v1209_v47  ;;  %v2822_v57 = vmax.f32 %v559_v51, 1e-24  ;;  %vm1024_vm2 = vmor %vm1022_vm15, %vm1023_vm0 }
 0x12c   :  { %v1481_v2 = vadd.f32 %v1463_v22, %v1445_v33  ;;  %v860_v60 = vmul.f32 %v842_v23, %v842_v23  ;;  %v2824_v6 = vpop.eup %1896  ;;  %v1321_v28 = vmul.f32 %v2788_v19, %v1213_v0  ;;  %v817_v44 = vmul.f32 1.442695, %v791_v35 }
 0x12d   :  { %v1217_v48 = vmul.f32 0.5, %v1216_v41  ;;  %v595_v42 = vmul.f32 %v2807_v39, %v2807_v39  ;;  %v1021_v20 = vmul.f32 %v2724_v53, %v1020_v7  ;;  %v1028_v30 = vmul.f32 %v2801_v45, %v1027_v27 }
 0x12e   :  { %1902 = vlog2.f32 %v2822_v57  ;;  %1504 = vadd.xlane.f32.xlu0 %v1481_v2  ;;  %883 = vadd.xlane.f32.xlu2 %v860_v60  ;;  %v613_v3 = vmul.f32 %v2819_v36, %v2819_v36  ;;  %v1393_v40 = vmul.f32 %v1123_v37, %v2549_v49  ;;  %v702_v58 = vmul.f32 0.15, %v676_v21 }
 0x12f   :  { %v1899_v18 = vpop.eup %1898  ;;  %v1218_v32 = vsub.f32 1.5, %v1217_v48  ;;  %1904 = vrsqrt.f32 %v2822_v57  ;;  %v524_v16 = vmul.f32 %v2829_v25, %v2829_v25  ;;  %v542_v51 = vmul.f32 %v2831_v31, %v2831_v31 }
 0x130   :  { %v2840_v10 = vpop.eup %1900  ;;  %v766_v17 = vmul.f32 0.6931472, %v1899_v18  ;;  %v631_v47 = vadd.f32 %v613_v3, %v595_v42  ;;  %v1411_v33 = vmul.f32 %v1321_v28, %v2608_v13  ;;  %1906 = vpow2.f32 %v817_v44 }
 0x131   :  { %vm1220_vm3 = vweird.f32 %v2734_v46  ;;  %v1225_v49 = vmul.f32 %v2840_v10, %v2791_v26  ;;  %v1025_v37 = vsel %vm1024_vm2, %v2724_v53, %v1021_v20  ;;  %v1029_v22 = vmul.f32 0.5, %v1028_v30 }
 0x132   :  { %v792_v23 = vmul.f32 0.15, %v766_v17  ;;  %v2855_v9 = vmax.f32 %v631_v47, 1e-24  ;;  %v1124_v35 = vmul.f32 %v2824_v6, %v1025_v37  ;;  %vm1221_vm4 = vweird.f32 %v2793_v61 }
 0x133   :  { %v729_v13 = vmul.f32 1.442695, %v702_v58  ;;  %v1226_v56 = vmul.f32 %v2840_v10, %v1225_v49  ;;  %v1219_v7 = vmul.f32 %v2793_v61, %v1218_v32  ;;  %vm1032_vm5 = vweird.f32 %v2741_v4  ;;  %vm1222_vm6 = vmor %vm1220_vm3, %vm1221_vm4  ;;  %v2896_v58 = vpop.f32.mrf.mxu2 }
 0x134   :  { %v1903_v63 = vpop.eup %1902  ;;  %1908 = vlog2.f32 %v2855_v9  ;;  %v560_v41 = vadd.f32 %v542_v51, %v524_v16  ;;  %v1374_v53 = vsub.f32 %v2746_v8, %v1356_v34  ;;  %v819_v27 = vmul.f32 1.442695, %v792_v23  ;;  %v2904_v51 = vpop.f32.mrf.mxu3 }
 0x135   :  { %v2864_v21 = vpop.eup %1904  ;;  %v1227_v0 = vmul.f32 0.5, %v1226_v56  ;;  %v678_v2 = vmul.f32 0.6931472, %v1903_v63  ;;  %1910 = vrsqrt.f32 %v2855_v9  ;;  %v2868_v60 = vmul.f32 %v1321_v28, %v2598_v52  ;;  %v2925_v56 = vpop.f32.mrf.mxu1 }
 0x136   :  { %v1030_v44 = vsub.f32 1.5, %v1029_v22  ;;  %v1037_v48 = vmul.f32 %v2864_v21, %v2822_v57  ;;  %v1464_v42 = vmul.f32 %v2803_v12, %v2803_v12  ;;  %v2874_v20 = vpop.eup %1906  ;;  %v2876_v8 = vsub.f32 %v1393_v40, %v1411_v33 }
 0x137   :  { %v2879_v34 = vmul.f32 %v1124_v35, %v2612_v1  ;;  %v2882_v30 = vmul.f32 %v1124_v35, %v2614_v50  ;;  %1912 = vpow2.f32 %v729_v13  ;;  %v1228_v52 = vsub.f32 1.5, %v1227_v0  ;;  %v2923_v13 = vpop.f32.mrf.mxu0 }
 0x138   :  { %v1038_v28 = vmul.f32 %v2864_v21, %v1037_v48  ;;  %v2889_v12 = vmax.f32 %v560_v41, 1e-24  ;;  %v1446_v3 = vmul.f32 %v1374_v53, %v1374_v53  ;;  %v1223_v18 = vsel %vm1222_vm6, %v2793_v61, %v1219_v7 }
 0x139   :  { %vm1033_vm7 = vweird.f32 %v2801_v45  ;;  %1914 = vpow2.f32 %v819_v27  ;;  %v703_v1 = vmul.f32 0.15, %v678_v2  ;;  %v1322_v40 = vmul.f32 %v2874_v20, %v1223_v18 }
 0x13a   :  { %v1909_v50 = vpop.eup %1908  ;;  %v1031_v32 = vmul.f32 %v2801_v45, %v1030_v44  ;;  %vm1230_vm8 = vweird.f32 %v2791_v26  ;;  %v1482_v46 = vadd.f32 %v1464_v42, %v1446_v3  ;;  %v1039_v47 = vmul.f32 0.5, %v1038_v28  ;;  %vm2917_vm11 = vmor %vm1032_vm5, %vm1033_vm7 }
 0x13b   :  { %v2898_v17 = vpop.eup %1910  ;;  %vm1042_vm9 = vweird.f32 %v2822_v57  ;;  %v768_v61 = vmul.f32 0.6931472, %v1909_v50  ;;  %1916 = vlog2.f32 %v2889_v12  ;;  %v843_v16 = vsub.f32 %v2707_v43, %v2728_v62 }
 0x13c   :  { %v1229_v33 = vmul.f32 %v2840_v10, %v1228_v52  ;;  %vm1231_vm10 = vweird.f32 %v2840_v10  ;;  %v1235_v49 = vmul.f32 %v2898_v17, %v2855_v9  ;;  %1918 = vrsqrt.f32 %v2889_v12  ;;  %1506 = vadd.xlane.f32.xlu1 %v1482_v46 }
 0x13d   :  { %v2911_v37 = vpop.eup %1912  ;;  %v731_v62 = vmul.f32 1.442695, %v703_v1  ;;  %v793_v22 = vmul.f32 0.15, %v768_v61  ;;  %v861_v23 = vmul.f32 %v843_v16, %v843_v16  ;;  %v844_v35 = vsub.f32 %v2765_v59, %v2788_v19  ;;  %vm1232_vm12 = vmor %vm1230_vm8, %vm1231_vm10 }
 0x13e   :  { %v1035_v63 = vsel %vm2917_vm11, %v2801_v45, %v1031_v32  ;;  %v1236_v4 = vmul.f32 %v2898_v17, %v1235_v49  ;;  %v596_v7 = vmul.f32 %v2896_v58, %v2896_v58  ;;  %v614_v41 = vmul.f32 %v2904_v51, %v2904_v51 }
 0x13f   :  { %v2935_v53 = vpop.eup %1914  ;;  %v2938_v59 = vmul.f32 %v1322_v40, %v2688_v14  ;;  %v1040_v19 = vsub.f32 1.5, %v1039_v47  ;;  %v821_v27 = vmul.f32 1.442695, %v793_v22  ;;  %885 = vadd.xlane.f32.xlu0 %v861_v23  ;;  %v862_v0 = vmul.f32 %v844_v35, %v844_v35  ;;  %v2965_v47 = vpop.f32.mrf.mxu2 }
 0x140   :  { %v1412_v2 = vmul.f32 %v1322_v40, %v2694_v55  ;;  %v1237_v45 = vmul.f32 0.5, %v1236_v4  ;;  %v632_v44 = vadd.f32 %v614_v41, %v596_v7  ;;  %v525_v48 = vmul.f32 %v2923_v13, %v2923_v13  ;;  %v2998_v23 = vpop.f32.mrf.mxu0  ;;  %v3000_v35 = vpop.f32.mrf.mxu1 }
 0x141   :  { %v1917_v42 = vpop.eup %1916  ;;  %v1125_v14 = vmul.f32 %v2911_v37, %v1035_v63  ;;  %v1233_v52 = vsel %vm1232_vm12, %v2840_v10, %v1229_v33  ;;  %1920 = vpow2.f32 %v731_v62  ;;  %887 = vadd.xlane.f32.xlu2 %v862_v0  ;;  %v543_v55 = vmul.f32 %v2925_v56, %v2925_v56  ;;  %v2986_v33 = vpop.f32.mrf.mxu3 }
 0x142   :  { %v2951_v28 = vpop.eup %1918  ;;  %v1323_v26 = vmul.f32 %v2935_v53, %v1233_v52  ;;  %vm1043_vm13 = vweird.f32 %v2864_v21  ;;  %vm1240_vm14 = vweird.f32 %v2855_v9  ;;  %v2956_v3 = vmax.f32 %v632_v44, 1e-24 }
 0x143   :  { %v1375_v18 = vsub.f32 %v2810_v24, %v2868_v60  ;;  %v1041_v10 = vmul.f32 %v2864_v21, %v1040_v19  ;;  %1922 = vpow2.f32 %v821_v27  ;;  %v1047_v1 = vmul.f32 %v2951_v28, %v2889_v12  ;;  %vm2977_vm15 = vmor %vm1042_vm9, %vm1043_vm13 }
 0x144   :  { %v561_v50 = vadd.f32 %v543_v55, %v525_v48  ;;  %v1430_v40 = vsub.f32 %v2882_v30, %v1412_v2  ;;  %v1238_v32 = vsub.f32 1.5, %v1237_v45  ;;  %v680_v46 = vmul.f32 0.6931472, %v1917_v42 }
 0x145   :  { %1924 = vlog2.f32 %v2956_v3  ;;  %v2968_v61 = vmul.f32 %v1125_v14, %v2699_v29  ;;  %v1395_v24 = vmul.f32 %v1125_v14, %v2701_v11  ;;  %v1048_v60 = vmul.f32 %v2951_v28, %v1047_v1 }
 0x146   :  { %1926 = vrsqrt.f32 %v2956_v3  ;;  %vm1241_vm0 = vweird.f32 %v2898_v17  ;;  %v2982_v16 = vmax.f32 %v561_v50, 1e-24  ;;  %v1447_v29 = vmul.f32 %v1375_v18, %v1375_v18 }
 0x147   :  { %v1465_v11 = vmul.f32 %v2876_v8, %v2876_v8  ;;  %v2988_v49 = vpop.eup %1920  ;;  %v1413_v43 = vmul.f32 %v1323_v26, %v2752_v38  ;;  %v1045_v57 = vsel %vm2977_vm15, %v2864_v21, %v1041_v10  ;;  %v845_v62 = vsub.f32 %v2824_v6, %v2874_v20  ;;  %vm1242_vm1 = vmor %vm1240_vm14, %vm1241_vm0 }
 0x148   :  { %v597_v22 = vmul.f32 %v2965_v47, %v2965_v47  ;;  %v1239_v8 = vmul.f32 %v2898_v17, %v1238_v32  ;;  %v704_v63 = vmul.f32 0.15, %v680_v46  ;;  %1928 = vlog2.f32 %v2982_v16 }
 0x149   :  { %v1483_v38 = vadd.f32 %v1465_v11, %v1447_v29  ;;  %v3004_v4 = vpop.eup %1922  ;;  %v1049_v7 = vmul.f32 0.5, %v1048_v60  ;;  %1930 = vrsqrt.f32 %v2982_v16  ;;  %v863_v21 = vmul.f32 %v845_v62, %v845_v62  ;;  %v3047_v11 = vpop.f32.mrf.mxu2 }
 0x14a   :  { %v615_v6 = vmul.f32 %v2986_v33, %v2986_v33  ;;  %v3010_v41 = vmul.f32 %v1323_v26, %v2750_v5  ;;  %v1126_v19 = vmul.f32 %v2988_v49, %v1045_v57  ;;  %v526_v27 = vmul.f32 %v2998_v23, %v2998_v23  ;;  %v3051_v62 = vpop.f32.mrf.mxu3 }
 0x14b   :  { %v1925_v20 = vpop.eup %1924  ;;  %1508 = vadd.xlane.f32.xlu0 %v1483_v38  ;;  %v544_v0 = vmul.f32 %v3000_v35, %v3000_v35  ;;  %v3019_v45 = vsub.f32 %v1395_v24, %v1413_v43  ;;  %889 = vadd.xlane.f32.xlu1 %v863_v21  ;;  %v1376_v48 = vsub.f32 %v2879_v34, %v2938_v59  ;;  %v733_v14 = vmul.f32 1.442695, %v704_v63  ;;  %v3055_v63 = vpop.f32.mrf.mxu0 }
 0x14c   :  { %v3017_v2 = vpop.eup %1926  ;;  %v770_v5 = vmul.f32 0.6931472, %v1925_v20  ;;  %v633_v44 = vadd.f32 %v615_v6, %v597_v22  ;;  %v1243_v42 = vsel %vm1242_vm1, %v2898_v17, %v1239_v8  ;;  %vm1053_vm2 = vweird.f32 %v2951_v28  ;;  %v3057_v38 = vpop.f32.mrf.mxu1 }
 0x14d   :  { %v1245_v52 = vmul.f32 %v3017_v2, %v2956_v3  ;;  %v562_v55 = vadd.f32 %v544_v0, %v526_v27  ;;  %v1324_v26 = vmul.f32 %v3004_v4, %v1243_v42  ;;  %v1050_v18 = vsub.f32 1.5, %v1049_v7 }
 0x14e   :  { %v794_v9 = vmul.f32 0.15, %v770_v5  ;;  %v3032_v10 = vmax.f32 %v633_v44, 1e-24  ;;  %v1929_v1 = vpop.eup %1928  ;;  %v3035_v50 = vmul.f32 %v1126_v19, %v2756_v15  ;;  %vm1052_vm3 = vweird.f32 %v2889_v12 }
 0x14f   :  { %v1246_v34 = vmul.f32 %v3017_v2, %v1245_v52  ;;  %v1448_v17 = vmul.f32 %v1376_v48, %v1376_v48  ;;  %v1466_v59 = vmul.f32 %v1430_v40, %v1430_v40  ;;  %v3039_v32 = vpop.eup %1930  ;;  %v682_v24 = vmul.f32 0.6931472, %v1929_v1  ;;  %vm1054_vm5 = vmor %vm1052_vm3, %vm1053_vm2 }
 0x150   :  { %v823_v46 = vmul.f32 1.442695, %v794_v9  ;;  %1932 = vlog2.f32 %v3032_v10  ;;  %v3042_v60 = vmax.f32 %v562_v55, 1e-24  ;;  %v1396_v30 = vmul.f32 %v1126_v19, %v2763_v54 }
 0x151   :  { %1934 = vpow2.f32 %v733_v14  ;;  %v1247_v29 = vmul.f32 0.5, %v1246_v34  ;;  %v1057_v15 = vmul.f32 %v3039_v32, %v2982_v16  ;;  %v1414_v43 = vmul.f32 %v1324_v26, %v2819_v36 }
 0x152   :  { %v1051_v40 = vmul.f32 %v2951_v28, %v1050_v18  ;;  %1936 = vpow2.f32 %v823_v46  ;;  %v705_v57 = vmul.f32 0.15, %v682_v24  ;;  %v1484_v54 = vadd.f32 %v1466_v59, %v1448_v17 }
 0x153   :  { %v1248_v22 = vsub.f32 1.5, %v1247_v29  ;;  %v1058_v8 = vmul.f32 %v3039_v32, %v1057_v15  ;;  %1938 = vrsqrt.f32 %v3032_v10  ;;  %v846_v36 = vsub.f32 %v2911_v37, %v2935_v53 }
 0x154   :  { %v735_v7 = vmul.f32 1.442695, %v705_v57  ;;  %1940 = vlog2.f32 %v3042_v60  ;;  %v598_v21 = vmul.f32 %v3047_v11, %v3047_v11  ;;  %vm1251_vm4 = vweird.f32 %v3017_v2  ;;  %1510 = vadd.xlane.f32.xlu2 %v1484_v54 }
 0x155   :  { %v1059_v6 = vmul.f32 0.5, %v1058_v8  ;;  %1942 = vrsqrt.f32 %v3042_v60  ;;  %v616_v20 = vmul.f32 %v3051_v62, %v3051_v62  ;;  %v1249_v27 = vmul.f32 %v3017_v2, %v1248_v22 }
 0x156   :  { %v1933_v19 = vpop.eup %1932  ;;  %v864_v0 = vmul.f32 %v846_v36, %v846_v36  ;;  %v527_v5 = vmul.f32 %v3055_v63, %v3055_v63  ;;  %v545_v37 = vmul.f32 %v3057_v38, %v3057_v38  ;;  %1944 = vpow2.f32 %v735_v7  ;;  %v3121_v7 = vpop.f32.mrf.mxu2 }
 0x157   :  { %v3073_v53 = vpop.eup %1934  ;;  %v1060_v44 = vsub.f32 1.5, %v1059_v6  ;;  %v772_v48 = vmul.f32 0.6931472, %v1933_v19  ;;  %v634_v42 = vadd.f32 %v616_v20, %v598_v21  ;;  %v3078_v52 = vmul.f32 %v1324_v26, %v2807_v39  ;;  %v3134_v20 = vpop.f32.mrf.mxu0 }
 0x158   :  { %v3075_v14 = vpop.eup %1936  ;;  %vm1250_vm6 = vweird.f32 %v2956_v3  ;;  %vm1062_vm7 = vweird.f32 %v2982_v16  ;;  %891 = vadd.xlane.f32.xlu0 %v864_v0  ;;  %v563_v55 = vadd.f32 %v545_v37, %v527_v5  ;;  %v3088_v9 = vsub.f32 %v1396_v30, %v1414_v43  ;;  %v3130_v16 = vpop.f32.mrf.mxu3 }
 0x159   :  { %v3086_v18 = vpop.eup %1938  ;;  %v1055_v1 = vsel %vm1054_vm5, %v2951_v28, %v1051_v40  ;;  %vm1252_vm8 = vmor %vm1250_vm6, %vm1251_vm4  ;;  %v795_v39 = vmul.f32 0.15, %v772_v48  ;;  %v1377_v12 = vsub.f32 %v2968_v61, %v3010_v41  ;;  %v3099_v59 = vmax.f32 %v634_v42, 1e-24 }
 0x15a   :  { %v1941_v26 = vpop.eup %1940  ;;  %v1127_v3 = vmul.f32 %v3073_v53, %v1055_v1  ;;  %v1253_v34 = vsel %vm1252_vm8, %v3017_v2, %v1249_v27  ;;  %v1255_v17 = vmul.f32 %v3086_v18, %v3032_v10  ;;  %v1061_v24 = vmul.f32 %v3039_v32, %v1060_v44 }
 0x15b   :  { %v3101_v46 = vpop.eup %1942  ;;  %v1325_v28 = vmul.f32 %v3075_v14, %v1253_v34  ;;  %vm1063_vm9 = vweird.f32 %v3039_v32  ;;  %v825_v30 = vmul.f32 1.442695, %v795_v39  ;;  %v684_v41 = vmul.f32 0.6931472, %v1941_v26 }
 0x15c   :  { %v1256_v61 = vmul.f32 %v3086_v18, %v1255_v17  ;;  %v1067_v2 = vmul.f32 %v3101_v46, %v3042_v60  ;;  %v3109_v29 = vmax.f32 %v563_v55, 1e-24  ;;  %v3111_v15 = vpop.eup %1944  ;;  %v1449_v43 = vmul.f32 %v1377_v12, %v1377_v12  ;;  %vm1064_vm10 = vmor %vm1062_vm7, %vm1063_vm9 }
 0x15d   :  { %1946 = vpow2.f32 %v825_v30  ;;  %v1467_v40 = vmul.f32 %v3019_v45, %v3019_v45  ;;  %v847_v57 = vsub.f32 %v2988_v49, %v3004_v4  ;;  %v706_v8 = vmul.f32 0.15, %v684_v41 }
 0x15e   :  { %v1257_v22 = vmul.f32 0.5, %v1256_v61  ;;  %v1068_v54 = vmul.f32 %v3101_v46, %v1067_v2  ;;  %1948 = vlog2.f32 %v3099_v59  ;;  %v3124_v36 = vmul.f32 %v1127_v3, %v2829_v25  ;;  %v3136_v25 = vpop.f32.mrf.mxu1 }
 0x15f   :  { %v1415_v21 = vmul.f32 %v1325_v28, %v2904_v51  ;;  %v1065_v45 = vsel %vm1064_vm10, %v3039_v32, %v1061_v24  ;;  %vm1260_vm11 = vweird.f32 %v3032_v10  ;;  %1950 = vrsqrt.f32 %v3099_v59 }
 0x160   :  { %v1128_v49 = vmul.f32 %v3111_v15, %v1065_v45  ;;  %v1258_v4 = vsub.f32 1.5, %v1257_v22  ;;  %v1069_v6 = vmul.f32 0.5, %v1068_v54  ;;  %1952 = vlog2.f32 %v3109_v29 }
 0x161   :  { %1954 = vrsqrt.f32 %v3109_v29  ;;  %v1485_v51 = vadd.f32 %v1467_v40, %v1449_v43  ;;  %v865_v32 = vmul.f32 %v847_v57, %v847_v57  ;;  %v599_v19 = vmul.f32 %v3121_v7, %v3121_v7 }
 0x162   :  { %v1397_v27 = vmul.f32 %v1127_v3, %v2831_v31  ;;  %v737_v0 = vmul.f32 1.442695, %v706_v8  ;;  %v1070_v5 = vsub.f32 1.5, %v1069_v6  ;;  %v617_v37 = vmul.f32 %v3130_v16, %v3130_v16 }
 0x163   :  { %v3144_v44 = vpop.eup %1946  ;;  %vm1261_vm12 = vweird.f32 %v3086_v18  ;;  %vm1072_vm13 = vweird.f32 %v3042_v60  ;;  %1512 = vadd.xlane.f32.xlu1 %v1485_v51  ;;  %893 = vadd.xlane.f32.xlu2 %v865_v32  ;;  %v528_v48 = vmul.f32 %v3134_v20, %v3134_v20  ;;  %v546_v42 = vmul.f32 %v3136_v25, %v3136_v25 }
 0x164   :  { %v1949_v31 = vpop.eup %1948  ;;  %v3153_v55 = vmul.f32 %v1325_v28, %v2896_v58  ;;  %vm1073_vm14 = vweird.f32 %v3101_v46  ;;  %v635_v1 = vadd.f32 %v617_v37, %v599_v19  ;;  %v1378_v39 = vsub.f32 %v3035_v50, %v3078_v52  ;;  %vm1262_vm15 = vmor %vm1260_vm11, %vm1261_vm12 }
 0x165   :  { %v3158_v12 = vpop.eup %1950  ;;  %v3160_v26 = vsub.f32 %v1397_v27, %v1415_v21  ;;  %v3163_v3 = vmul.f32 %v1128_v49, %v2923_v13  ;;  %v1259_v34 = vmul.f32 %v3086_v18, %v1258_v4  ;;  %v774_v17 = vmul.f32 0.6931472, %v1949_v31  ;;  %vm3191_vm1 = vmor %vm1072_vm13, %vm1073_vm14 }
 0x166   :  { %v1953_v24 = vpop.eup %1952  ;;  %1956 = vpow2.f32 %v737_v0  ;;  %v1071_v58 = vmul.f32 %v3101_v46, %v1070_v5  ;;  %v1265_v28 = vmul.f32 %v3158_v12, %v3099_v59  ;;  %v3169_v30 = vmax.f32 %v635_v1, 1e-24  ;;  %v3216_v5 = vpop.f32.mrf.mxu0 }
 0x167   :  { %v3171_v50 = vpop.eup %1954  ;;  %v796_v52 = vmul.f32 0.15, %v774_v17  ;;  %v686_v61 = vmul.f32 0.6931472, %v1953_v24  ;;  %v564_v41 = vadd.f32 %v546_v42, %v528_v48  ;;  %v1468_v13 = vmul.f32 %v3088_v9, %v3088_v9  ;;  %v3218_v37 = vpop.f32.mrf.mxu1 }
 0x168   :  { %v1266_v2 = vmul.f32 %v3158_v12, %v1265_v28  ;;  %vm1270_vm0 = vweird.f32 %v3099_v59  ;;  %v1077_v43 = vmul.f32 %v3171_v50, %v3109_v29  ;;  %1958 = vlog2.f32 %v3169_v30 }
 0x169   :  { %v1450_v40 = vmul.f32 %v1378_v39, %v1378_v39  ;;  %v1398_v57 = vmul.f32 %v1128_v49, %v2925_v56  ;;  %v1263_v22 = vsel %vm1262_vm15, %v3086_v18, %v1259_v34  ;;  %v827_v9 = vmul.f32 1.442695, %v796_v52  ;;  %v3198_v56 = vpop.f32.mrf.mxu2  ;;  %v3200_v18 = vpop.f32.mrf.mxu3 }
 0x16a   :  { %v707_v8 = vmul.f32 0.15, %v686_v61  ;;  %v1326_v54 = vmul.f32 %v3144_v44, %v1263_v22  ;;  %v1267_v21 = vmul.f32 0.5, %v1266_v2  ;;  %v1078_v45 = vmul.f32 %v3171_v50, %v1077_v43 }
 0x16b   :  { %vm1082_vm2 = vweird.f32 %v3109_v29  ;;  %1960 = vrsqrt.f32 %v3169_v30  ;;  %v1075_v49 = vsel %vm3191_vm1, %v3101_v46, %v1071_v58  ;;  %vm1271_vm3 = vweird.f32 %v3158_v12 }
 0x16c   :  { %1962 = vpow2.f32 %v827_v9  ;;  %v739_v60 = vmul.f32 1.442695, %v707_v8  ;;  %v3206_v4 = vpop.eup %1956  ;;  %v1268_v6 = vsub.f32 1.5, %v1267_v21  ;;  %v1079_v51 = vmul.f32 0.5, %v1078_v45  ;;  %vm1272_vm4 = vmor %vm1270_vm0, %vm1271_vm3 }
 0x16d   :  { %v3208_v32 = vmax.f32 %v564_v41, 1e-24  ;;  %v1486_v19 = vadd.f32 %v1468_v13, %v1450_v40  ;;  %v848_v27 = vsub.f32 %v3073_v53, %v3075_v14  ;;  %v600_v0 = vmul.f32 %v3198_v56, %v3198_v56 }
 0x16e   :  { %1964 = vpow2.f32 %v739_v60  ;;  %v618_v46 = vmul.f32 %v3200_v18, %v3200_v18  ;;  %v1959_v48 = vpop.eup %1958  ;;  %v1416_v42 = vmul.f32 %v1326_v54, %v2986_v33  ;;  %v1269_v31 = vmul.f32 %v3158_v12, %v1268_v6 }
 0x16f   :  { %v1080_v1 = vsub.f32 1.5, %v1079_v51  ;;  %1966 = vlog2.f32 %v3208_v32  ;;  %1514 = vadd.xlane.f32.xlu0 %v1486_v19  ;;  %v776_v53 = vmul.f32 0.6931472, %v1959_v48  ;;  %v866_v14 = vmul.f32 %v848_v27, %v848_v27 }
 0x170   :  { %1968 = vrsqrt.f32 %v3208_v32  ;;  %v636_v39 = vadd.f32 %v618_v46, %v600_v0  ;;  %v3227_v17 = vmul.f32 %v1326_v54, %v2965_v47  ;;  %v1129_v24 = vmul.f32 %v3206_v4, %v1075_v49 }
 0x171   :  { %v3224_v34 = vpop.eup %1960  ;;  %v529_v33 = vmul.f32 %v3216_v5, %v3216_v5  ;;  %v547_v58 = vmul.f32 %v3218_v37, %v3218_v37  ;;  %vm1083_vm5 = vweird.f32 %v3171_v50  ;;  %v797_v52 = vmul.f32 0.15, %v776_v53  ;;  %895 = vadd.xlane.f32.xlu1 %v866_v14  ;;  %v3276_v29 = vpop.f32.mrf.mxu2 }
 0x172   :  { %v3234_v28 = vpop.eup %1962  ;;  %v1275_v47 = vmul.f32 %v3224_v34, %v3169_v30  ;;  %v3243_v61 = vmax.f32 %v636_v39, 1e-24  ;;  %v3245_v41 = vsub.f32 %v1398_v57, %v1416_v42  ;;  %v1273_v13 = vsel %vm1272_vm4, %v3158_v12, %v1269_v31  ;;  %vm1084_vm7 = vmor %vm1082_vm2, %vm1083_vm5  ;;  %v3278_v6 = vpop.f32.mrf.mxu3 }
 0x173   :  { %v1081_v2 = vmul.f32 %v3171_v50, %v1080_v1  ;;  %v565_v43 = vadd.f32 %v547_v58, %v529_v33  ;;  %v1327_v59 = vmul.f32 %v3234_v28, %v1273_v13  ;;  %v829_v22 = vmul.f32 1.442695, %v797_v52 }
 0x174   :  { %v3249_v40 = vpop.eup %1964  ;;  %v1276_v9 = vmul.f32 %v3224_v34, %v1275_v47  ;;  %1970 = vlog2.f32 %v3243_v61  ;;  %v3255_v54 = vmul.f32 %v1129_v24, %v2998_v23  ;;  %vm1280_vm6 = vweird.f32 %v3169_v30 }
 0x175   :  { %v1967_v8 = vpop.eup %1966  ;;  %1972 = vrsqrt.f32 %v3243_v61  ;;  %v1379_v12 = vsub.f32 %v3124_v36, %v3153_v55  ;;  %v1399_v10 = vmul.f32 %v1129_v24, %v3000_v35  ;;  %v3268_v23 = vmax.f32 %v565_v43, 1e-24  ;;  %v3313_v43 = vpop.f32.mrf.mxu0 }
 0x176   :  { %v3261_v57 = vpop.eup %1968  ;;  %v1277_v21 = vmul.f32 0.5, %v1276_v9  ;;  %v688_v45 = vmul.f32 0.6931472, %v1967_v8  ;;  %v1085_v49 = vsel %vm1084_vm7, %v3171_v50, %v1081_v2  ;;  %1974 = vpow2.f32 %v829_v22 }
 0x177   :  { %vm1281_vm8 = vweird.f32 %v3224_v34  ;;  %v1087_v36 = vmul.f32 %v3261_v57, %v3208_v32  ;;  %v1417_v55 = vmul.f32 %v1327_v59, %v3051_v62  ;;  %1976 = vlog2.f32 %v3268_v23 }
 0x178   :  { %v1278_v35 = vsub.f32 1.5, %v1277_v21  ;;  %v708_v60 = vmul.f32 0.15, %v688_v45  ;;  %v1130_v51 = vmul.f32 %v3249_v40, %v1085_v49  ;;  %1978 = vrsqrt.f32 %v3268_v23  ;;  %vm1282_vm11 = vmor %vm1280_vm6, %vm1281_vm8 }
 0x179   :  { %v1088_v50 = vmul.f32 %v3261_v57, %v1087_v36  ;;  %v1451_v19 = vmul.f32 %v1379_v12, %v1379_v12  ;;  %v1469_v62 = vmul.f32 %v3160_v26, %v3160_v26  ;;  %v849_v48 = vsub.f32 %v3111_v15, %v3144_v44 }
 0x17a   :  { %v1971_v27 = vpop.eup %1970  ;;  %v1279_v0 = vmul.f32 %v3224_v34, %v1278_v35  ;;  %v741_v46 = vmul.f32 1.442695, %v708_v60  ;;  %vm1092_vm9 = vweird.f32 %v3208_v32  ;;  %v601_v53 = vmul.f32 %v3276_v29, %v3276_v29 }
 0x17b   :  { %v3288_v42 = vpop.eup %1972  ;;  %v1089_v31 = vmul.f32 0.5, %v1088_v50  ;;  %v778_v1 = vmul.f32 0.6931472, %v1971_v27  ;;  %v619_v14 = vmul.f32 %v3278_v6, %v3278_v6  ;;  %v3296_v39 = vmul.f32 %v1327_v59, %v3047_v11 }
 0x17c   :  { %v3298_v24 = vsub.f32 %v1399_v10, %v1417_v55  ;;  %v1285_v15 = vmul.f32 %v3288_v42, %v3243_v61  ;;  %vm1290_vm10 = vweird.f32 %v3243_v61  ;;  %v3303_v44 = vpop.eup %1974  ;;  %1980 = vpow2.f32 %v741_v46 }
 0x17d   :  { %v1090_v26 = vsub.f32 1.5, %v1089_v31  ;;  %v798_v33 = vmul.f32 0.15, %v778_v1  ;;  %v1487_v58 = vadd.f32 %v1469_v62, %v1451_v19  ;;  %v1977_v52 = vpop.eup %1976  ;;  %v3306_v47 = vmul.f32 %v1130_v51, %v3055_v63  ;;  %v3320_v63 = vpop.f32.mrf.mxu1 }
 0x17e   :  { %v1286_v11 = vmul.f32 %v3288_v42, %v1285_v15  ;;  %v867_v13 = vmul.f32 %v849_v48, %v849_v48  ;;  %v637_v2 = vadd.f32 %v619_v14, %v601_v53  ;;  %v3315_v59 = vpop.eup %1978  ;;  %v1283_v22 = vsel %vm1282_vm11, %v3224_v34, %v1279_v0  ;;  %v3346_v62 = vpop.f32.mrf.mxu2 }
 0x17f   :  { %vm1093_vm12 = vweird.f32 %v3261_v57  ;;  %v831_v9 = vmul.f32 1.442695, %v798_v33  ;;  %vm1291_vm13 = vweird.f32 %v3288_v42  ;;  %1516 = vadd.xlane.f32.xlu2 %v1487_v58  ;;  %v1328_v30 = vmul.f32 %v3303_v44, %v1283_v22 }
 0x180   :  { %v1287_v8 = vmul.f32 0.5, %v1286_v11  ;;  %v690_v12 = vmul.f32 0.6931472, %v1977_v52  ;;  %v1097_v10 = vmul.f32 %v3315_v59, %v3268_v23  ;;  %897 = vadd.xlane.f32.xlu0 %v867_v13  ;;  %v1091_v21 = vmul.f32 %v3261_v57, %v1090_v26  ;;  %vm1094_vm15 = vmor %vm1092_vm9, %vm1093_vm12 }
 0x181   :  { %1982 = vpow2.f32 %v831_v9  ;;  %v3326_v34 = vmax.f32 %v637_v2, 1e-24  ;;  %v530_v45 = vmul.f32 %v3313_v43, %v3313_v43  ;;  %v548_v35 = vmul.f32 %v3320_v63, %v3320_v63  ;;  %vm1292_vm0 = vmor %vm1290_vm10, %vm1291_vm13 }
 0x182   :  { %v1288_v49 = vsub.f32 1.5, %v1287_v8  ;;  %v709_v36 = vmul.f32 0.15, %v690_v12  ;;  %v1098_v55 = vmul.f32 %v3315_v59, %v1097_v10  ;;  %v3333_v60 = vpop.eup %1980  ;;  %v1400_v50 = vmul.f32 %v1130_v51, %v3057_v38  ;;  %v3348_v38 = vpop.f32.mrf.mxu3 }
 0x183   :  { %vm1102_vm14 = vweird.f32 %v3268_v23  ;;  %1984 = vlog2.f32 %v3326_v34  ;;  %v1380_v19 = vsub.f32 %v3163_v3, %v3227_v17  ;;  %v1418_v51 = vmul.f32 %v1328_v30, %v3130_v16 }
 0x184   :  { %v1289_v27 = vmul.f32 %v3288_v42, %v1288_v49  ;;  %v743_v0 = vmul.f32 1.442695, %v709_v36  ;;  %v1099_v46 = vmul.f32 0.5, %v1098_v55  ;;  %1986 = vrsqrt.f32 %v3326_v34 }
 0x185   :  { %v1095_v48 = vsel %vm1094_vm15, %v3261_v57, %v1091_v21  ;;  %v566_v3 = vadd.f32 %v548_v35, %v530_v45  ;;  %v1452_v32 = vmul.f32 %v1380_v19, %v1380_v19  ;;  %v1470_v53 = vmul.f32 %v3245_v41, %v3245_v41 }
 0x186   :  { %v1131_v17 = vmul.f32 %v3333_v60, %v1095_v48  ;;  %v1293_v31 = vsel %vm1292_vm0, %v3288_v42, %v1289_v27  ;;  %v1100_v1 = vsub.f32 1.5, %v1099_v46  ;;  %v850_v16 = vsub.f32 %v3206_v4, %v3234_v28 }
 0x187   :  { %v1983_v14 = vpop.eup %1982  ;;  %v3360_v15 = vmax.f32 %v566_v3, 1e-24  ;;  %v602_v61 = vmul.f32 %v3346_v62, %v3346_v62  ;;  %v620_v57 = vmul.f32 %v3348_v38, %v3348_v38  ;;  %1988 = vpow2.f32 %v743_v0 }
 0x188   :  { %v1329_v26 = vmul.f32 %v1983_v14, %v1293_v31  ;;  %v1488_v33 = vadd.f32 %v1470_v53, %v1452_v32  ;;  %v1381_v42 = vsub.f32 %v3255_v54, %v3296_v39  ;;  %v1364_v41 = vmul.f32 %v1328_v30, %v3121_v7 }
 0x189   :  { %v1985_v58 = vpop.eup %1984  ;;  %1990 = vlog2.f32 %v3360_v15  ;;  %v868_v52 = vmul.f32 %v850_v16, %v850_v16  ;;  %v638_v11 = vadd.f32 %v620_v57, %v602_v61  ;;  %v1436_v28 = vsub.f32 %v1400_v50, %v1418_v51 }
 0x18a   :  { %v3372_v4 = vpop.eup %1986  ;;  %v1101_v13 = vmul.f32 %v3315_v59, %v1100_v1  ;;  %vm1103_vm1 = vweird.f32 %v3315_v59  ;;  %v780_v2 = vmul.f32 0.6931472, %v1985_v58  ;;  %1518 = vadd.xlane.f32.xlu1 %v1488_v33  ;;  %v1419_v22 = vmul.f32 %v1329_v26, %v3200_v18 }
 0x18b   :  { %v1295_v54 = vmul.f32 %v3372_v4, %v3326_v34  ;;  %vm1300_vm2 = vweird.f32 %v3326_v34  ;;  %1992 = vrsqrt.f32 %v3360_v15  ;;  %899 = vadd.xlane.f32.xlu2 %v868_v52  ;;  %v3381_v7 = vmax.f32 %v638_v11, 1e-24  ;;  %vm3394_vm3 = vmor %vm1102_vm14, %vm1103_vm1 }
 0x18c   :  { %v1347_v39 = vmul.f32 %v1131_v17, %v3134_v20  ;;  %v799_v9 = vmul.f32 0.15, %v780_v2  ;;  %v1453_v30 = vmul.f32 %v1381_v42, %v1381_v42  ;;  %v1471_v8 = vmul.f32 %v3298_v24, %v3298_v24 }
 0x18d   :  { %v1401_v12 = vmul.f32 %v1131_v17, %v3136_v25  ;;  %v1365_v18 = vmul.f32 %v1329_v26, %v3198_v56  ;;  %v1296_v10 = vmul.f32 %v3372_v4, %v1295_v54  ;;  %1994 = vlog2.f32 %v3381_v7  ;;  %v1989_v21 = vpop.eup %1988 }
 0x18e   :  { %v833_v45 = vmul.f32 1.442695, %v799_v9  ;;  %1996 = vrsqrt.f32 %v3381_v7  ;;  %v1489_v24 = vadd.f32 %v1471_v8, %v1453_v30  ;;  %v851_v25 = vsub.f32 %v3249_v40, %v3303_v44 }
 0x18f   :  { %v1991_v56 = vpop.eup %1990  ;;  %v1437_v49 = vsub.f32 %v1401_v12, %v1419_v22  ;;  %v1105_v36 = vsel %vm3394_vm3, %v3315_v59, %v1101_v13  ;;  %v1297_v55 = vmul.f32 0.5, %v1296_v10  ;;  %v1382_v23 = vsub.f32 %v3306_v47, %v1364_v41 }
 0x190   :  { %1998 = vpow2.f32 %v833_v45  ;;  %v692_v35 = vmul.f32 0.6931472, %v1991_v56  ;;  %1520 = vadd.xlane.f32.xlu0 %v1489_v24  ;;  %v869_v50 = vmul.f32 %v851_v25, %v851_v25  ;;  %v1472_v19 = vmul.f32 %v1436_v28, %v1436_v28 }
 0x191   :  { %v1993_v27 = vpop.eup %1992  ;;  %v1298_v0 = vsub.f32 1.5, %v1297_v55  ;;  %vm1301_vm4 = vweird.f32 %v3372_v4  ;;  %v1454_v46 = vmul.f32 %v1382_v23, %v1382_v23  ;;  %v852_v40 = vsub.f32 %v3333_v60, %v1983_v14 }
 0x192   :  { %v1132_v44 = vmul.f32 %v1989_v21, %v1105_v36  ;;  %v710_v51 = vmul.f32 0.15, %v692_v35  ;;  %v1107_v48 = vmul.f32 %v1993_v27, %v3360_v15  ;;  %901 = vadd.xlane.f32.xlu1 %v869_v50  ;;  %v1383_v59 = vsub.f32 %v1347_v39, %v1365_v18  ;;  %vm1302_vm5 = vmor %vm1300_vm2, %vm1301_vm4 }
 0x193   :  { %v1995_v3 = vpop.eup %1994  ;;  %v1299_v47 = vmul.f32 %v3372_v4, %v1298_v0  ;;  %v1490_v32 = vadd.f32 %v1472_v19, %v1454_v46  ;;  %v870_v17 = vmul.f32 %v852_v40, %v852_v40  ;;  %v1473_v31 = vmul.f32 %v1437_v49, %v1437_v49  ;;  %v1495_v0 = vpop.xlane.xlu1 %1494 }
 0x194   :  { %v1997_v1 = vpop.eup %1996  ;;  %v745_v53 = vmul.f32 1.442695, %v710_v51  ;;  %v1108_v16 = vmul.f32 %v1993_v27, %v1107_v48  ;;  %v782_v61 = vmul.f32 0.6931472, %v1995_v3  ;;  %v1455_v60 = vmul.f32 %v1383_v59, %v1383_v59  ;;  %v1497_v46 = vpop.xlane.xlu2 %1496 }
 0x195   :  { %v1303_v14 = vsel %vm1302_vm5, %v3372_v4, %v1299_v47  ;;  %v1305_v57 = vmul.f32 %v1997_v1, %v3381_v7  ;;  %1522 = vadd.xlane.f32.xlu2 %v1490_v32  ;;  %v1348_v41 = vmul.f32 %v1132_v44, %v3216_v5  ;;  %v1402_v28 = vmul.f32 %v1132_v44, %v3218_v37 }
 0x196   :  { %v1999_v26 = vpop.eup %1998  ;;  %2000 = vpow2.f32 %v745_v53  ;;  %v1109_v33 = vmul.f32 0.5, %v1108_v16  ;;  %v800_v42 = vmul.f32 0.15, %v782_v61  ;;  %v1491_v58 = vadd.f32 %v1473_v31, %v1455_v60 }
 0x197   :  { %v1330_v52 = vmul.f32 %v1999_v26, %v1303_v14  ;;  %v1306_v11 = vmul.f32 %v1997_v1, %v1305_v57  ;;  %v853_v34 = vsub.f32 %v1989_v21, %v1999_v26  ;;  %vm1113_vm6 = vweird.f32 %v1993_v27 }
 0x198   :  { %v1110_v13 = vsub.f32 1.5, %v1109_v33  ;;  %v835_v2 = vmul.f32 1.442695, %v800_v42  ;;  %903 = vadd.xlane.f32.xlu0 %v870_v17  ;;  %vm1112_vm7 = vweird.f32 %v3360_v15  ;;  %vm1311_vm9 = vweird.f32 %v1997_v1 }
 0x199   :  { %v1366_v4 = vmul.f32 %v1330_v52, %v3276_v29  ;;  %v1420_v22 = vmul.f32 %v1330_v52, %v3278_v6  ;;  %v1307_v54 = vmul.f32 0.5, %v1306_v11  ;;  %v871_v39 = vmul.f32 %v853_v34, %v853_v34  ;;  %vm1114_vm8 = vmor %vm1112_vm7, %vm1113_vm6 }
 0x19a   :  { %v1111_v9 = vmul.f32 %v1993_v27, %v1110_v13  ;;  %2002 = vpow2.f32 %v835_v2  ;;  %1524 = vadd.xlane.f32.xlu1 %v1491_v58  ;;  %vm1310_vm10 = vweird.f32 %v3381_v7  ;;  %vm72_vm12 = vcmask 0  }
 0x19b   :  { %v1438_v30 = vsub.f32 %v1402_v28, %v1420_v22  ;;  %v1308_v5 = vsub.f32 1.5, %v1307_v54  ;;  %v1384_v8 = vsub.f32 %v1348_v41, %v1366_v4  ;;  %vm1312_vm11 = vmor %vm1310_vm10, %vm1311_vm9  ;;  %v878_v40 = vpop.xlane.xlu1 %877  ;;  %v2058_v60 = vmov 0.0  }
 0x19c   :  { %v2001_v12 = vpop.eup %2000  ;;  %v1115_v37 = vsel %vm1114_vm8, %v1993_v27, %v1111_v9  ;;  %v874_v27 = vpop.xlane.xlu0 %873  ;;  %73 = vst.msk [vmem:[#allocation4] sm:$0x1] %vm72_vm12, %v2058_v60  ;;  %v1531_v52 = vadd.f32 %v1497_v46, %v1495_v0 }
 0x19d   :  { %v1309_v18 = vmul.f32 %v1997_v1, %v1308_v5  ;;  %905 = vadd.xlane.f32.xlu2 %v871_v39  ;;  %v1456_v29 = vmul.f32 %v1384_v8, %v1384_v8  ;;  %v1474_v10 = vmul.f32 %v1438_v30, %v1438_v30  ;;  %v1133_v6 = vmul.f32 %v2001_v12, %v1115_v37 }
 0x19e   :  { %74 = vst.msk [vmem:[#allocation6] sm:$0x1] %vm72_vm12, %v2058_v60 }
 0x19f   :  { %v1492_v21 = vadd.f32 %v1474_v10, %v1456_v29  ;;  %v1313_v45 = vsel %vm1312_vm11, %v1997_v1, %v1309_v18  ;;  %v1349_v25 = vmul.f32 %v1133_v6, %v3313_v43  ;;  %v1403_v56 = vmul.f32 %v1133_v6, %v3320_v63  ;;  %v882_v43 = vpop.xlane.xlu2 %881 }
 0x1a0   :  { %v2003_v20 = vpop.eup %2002 }
 0x1a1   :  { %v1331_v24 = vmul.f32 %v2003_v20, %v1313_v45  ;;  %1526 = vadd.xlane.f32.xlu0 %v1492_v21  ;;  %v854_v15 = vsub.f32 %v2001_v12, %v2003_v20 }
 0x1a3   :  { %v1367_v49 = vmul.f32 %v1331_v24, %v3346_v62  ;;  %v1421_v36 = vmul.f32 %v1331_v24, %v3348_v38  ;;  %v872_v55 = vmul.f32 %v854_v15, %v854_v15  ;;  %v880_v63 = vpop.xlane.xlu1 %879 }
 0x1a4   :  { %v876_v44 = vpop.xlane.xlu0 %875 }
 0x1a5   :  { %v1439_v23 = vsub.f32 %v1403_v56, %v1421_v36  ;;  %907 = vadd.xlane.f32.xlu1 %v872_v55  ;;  %v1385_v35 = vsub.f32 %v1349_v25, %v1367_v49  ;;  %v910_v14 = vadd.f32 %v876_v44, %v874_v27 }
 0x1a7   :  { %v1475_v7 = vmul.f32 %v1439_v23, %v1439_v23  ;;  %v1457_v50 = vmul.f32 %v1385_v35, %v1385_v35  ;;  %v1503_v48 = vpop.xlane.xlu2 %1502  ;;  %v911_v26 = vadd.f32 %v910_v14, %v878_v40 }
 0x1a9   :  { %v1493_v19 = vadd.f32 %v1475_v7, %v1457_v50  ;;  %v912_v42 = vadd.f32 %v911_v26, %v880_v63 }
 0x1ab   :  { %1528 = vadd.xlane.f32.xlu2 %v1493_v19  ;;  %v1501_v59 = vpop.xlane.xlu1 %1500  ;;  %v913_v41 = vadd.f32 %v912_v42, %v882_v43 }
 0x1ac   :  { %v1499_v51 = vpop.xlane.xlu0 %1498 }
 0x1ad   :  { %v1532_v28 = vadd.f32 %v1531_v52, %v1499_v51 }
 0x1af   :  { %v884_v38 = vpop.xlane.xlu2 %883  ;;  %v1533_v4 = vadd.f32 %v1532_v28, %v1501_v59 }
 0x1b0   :  { %v914_v11 = vadd.f32 %v913_v41, %v884_v38 }
 0x1b1   :  { %v1534_v54 = vadd.f32 %v1533_v4, %v1503_v48 }
 0x1b3   :  { %v1507_v3 = vpop.xlane.xlu1 %1506 }
 0x1b4   :  { %v1505_v62 = vpop.xlane.xlu0 %1504 }
 0x1b5   :  { %v1535_v9 = vadd.f32 %v1534_v54, %v1505_v62 }
 0x1b7   :  { %v888_v32 = vpop.xlane.xlu2 %887  ;;  %v1536_v8 = vadd.f32 %v1535_v9, %v1507_v3 }
 0x1bc   :  { %v886_v47 = vpop.xlane.xlu0 %885 }
 0x1bd   :  { %v915_v13 = vadd.f32 %v914_v11, %v886_v47 }
 0x1be   :  { %v890_v17 = vpop.xlane.xlu1 %889 }
 0x1bf   :  { %v916_v39 = vadd.f32 %v915_v13, %v888_v32  ;;  %v909_v32 = vld [vmem:[#allocation4] sm:$0x1] }
 0x1c1   :  { %v917_v30 = vadd.f32 %v916_v39, %v890_v17 }
 0x1c4   :  { %v1509_v31 = vpop.xlane.xlu0 %1508 }
 0x1c5   :  { %v1537_v18 = vadd.f32 %v1536_v8, %v1509_v31 }
 0x1c7   :  { %v1511_v1 = vpop.xlane.xlu2 %1510 }
 0x1c8   :  { %v1538_v6 = vadd.f32 %v1537_v18, %v1511_v1 }
 0x1cc   :  { %v892_v16 = vpop.xlane.xlu0 %891 }
 0x1cd   :  { %v918_v12 = vadd.f32 %v917_v30, %v892_v16 }
 0x1d6   :  { %v1513_v53 = vpop.xlane.xlu1 %1512  ;;  %v894_v61 = vpop.xlane.xlu2 %893 }
 0x1d7   :  { %v919_v29 = vadd.f32 %v918_v12, %v894_v61  ;;  %v1539_v20 = vadd.f32 %v1538_v6, %v1513_v53  ;;  %v1530_v61 = vld [vmem:[#allocation6] sm:$0x1] }
 0x1e2   :  { %v1515_v33 = vpop.xlane.xlu0 %1514 }
 0x1e3   :  { %v1540_v15 = vadd.f32 %v1539_v20, %v1515_v33 }
 0x1e4   :  { %v896_v57 = vpop.xlane.xlu1 %895 }
 0x1e5   :  { %v920_v21 = vadd.f32 %v919_v29, %v896_v57 }
 0x1f2   :  { %v1517_v58 = vpop.xlane.xlu2 %1516 }
 0x1f3   :  { %v898_v2 = vpop.xlane.xlu0 %897  ;;  %v1541_v49 = vadd.f32 %v1540_v15, %v1517_v58 }
 0x1f4   :  { %v921_v45 = vadd.f32 %v920_v21, %v898_v2 }
 0x1fd   :  { %v1519_v34 = vpop.xlane.xlu1 %1518 }
 0x1fe   :  { %v900_v22 = vpop.xlane.xlu2 %899  ;;  %v1542_v23 = vadd.f32 %v1541_v49, %v1519_v34 }
 0x1ff   :  { %v922_v25 = vadd.f32 %v921_v45, %v900_v22 }
 0x203   :  { %v1521_v37 = vpop.xlane.xlu0 %1520 }
 0x204   :  { %v1543_v7 = vadd.f32 %v1542_v23, %v1521_v37 }
 0x205   :  { %v902_v5 = vpop.xlane.xlu1 %901 }
 0x206   :  { %v923_v36 = vadd.f32 %v922_v25, %v902_v5 }
 0x208   :  { %v1523_v10 = vpop.xlane.xlu2 %1522 }
 0x209   :  { %v1544_v27 = vadd.f32 %v1543_v7, %v1523_v10 }
 0x20b   :  { %v904_v56 = vpop.xlane.xlu0 %903 }
 0x20c   :  { %v924_v35 = vadd.f32 %v923_v36, %v904_v56 }
 0x20d   :  { %v1525_v24 = vpop.xlane.xlu1 %1524 }
 0x20e   :  { %v1545_v40 = vadd.f32 %v1544_v27, %v1525_v24 }
 0x210   :  { %v906_v55 = vpop.xlane.xlu2 %905 }
 0x211   :  { %v925_v50 = vadd.f32 %v924_v35, %v906_v55 }
 0x214   :  { %v1527_v46 = vpop.xlane.xlu0 %1526 }
 0x215   :  { %v1546_v43 = vadd.f32 %v1545_v40, %v1527_v46 }
 0x218   :  { %v908_v19 = vpop.xlane.xlu1 %907 }
 0x219   :  { %v926_v0 = vadd.f32 %v925_v50, %v908_v19 }
 0x21b   :  { %v927_v44 = vrot.slane %v926_v0, 4 }
 0x21d   :  { %v928_v51 = vadd.f32 %v927_v44, %v926_v0 }
 0x21e   :  { %v1529_v63 = vpop.xlane.xlu2 %1528 }
 0x21f   :  { %v929_v48 = vrot.slane %v928_v51, 2  ;;  %v1547_v62 = vadd.f32 %v1546_v43, %v1529_v63 }
 0x221   :  { %v930_v59 = vadd.f32 %v929_v48, %v928_v51  ;;  %v1548_v38 = vrot.slane %v1547_v62, 4 }
 0x223   :  { %v931_v3 = vrot.slane %v930_v59, 1  ;;  %v1549_v47 = vadd.f32 %v1548_v38, %v1547_v62 }
 0x225   :  { %v932_v17 = vadd.f32 %v931_v3, %v930_v59  ;;  %v1550_v31 = vrot.slane %v1549_v47, 2 }
 0x227   :  { %v933_v1 = vadd.f32 %v932_v17, %v909_v32  ;;  %v1551_v53 = vadd.f32 %v1550_v31, %v1549_v47 }
 0x229   :  { %935 = vst.msk [vmem:[#allocation4] sm:$0x1] %vm72_vm12, %v933_v1  ;;  %v1552_v16 = vrot.slane %v1551_v53, 1 }
 0x22a   :  { %1566 = dma.vmem_to_hbm [thread:$0]  %s1562_s1, 16, %s1564_s5, [#allocation5]  }
 0x22b   :  { %v1553_v60 = vadd.f32 %v1552_v16, %v1551_v53 }
 0x22d   :  { %v1554_v14 = vadd.f32 %v1553_v60, %v1530_v61 }
 0x22f   :  { %1555 = vst.msk [vmem:[#allocation6] sm:$0x1] %vm72_vm12, %v1554_v14 }
 0x230   :  { %1577 = dma.vmem_to_hbm [thread:$0]  %s1573_s7, 16, %s1575_s10, [#allocation7]  }
 0x231   :  { %2054 = dma.done.wait [#allocation5], 16  }
 0x232   :  { %2055 = vsyncadd [#allocation5], 4294967280 }
 0x233   :  { %2056 = dma.done.wait [#allocation7], 16  }
 0x234   :  { %2057 = vsyncadd [#allocation7], 4294967280 }
 0x235   :  { %1586 = vsyncpa [#allocation5], 1 }
 0x236   :  { %1587 = vsyncpa [#allocation7], 1 }
 0x237   :  { %1588 = vsyncmov [#allocation3] }
 0x23a   :  { %s1589_s3 = vpop.sfrf %1588 }
 0x23b   :  { %p1734_p0 = scmp.ne.s32.totalorder %s1589_s3, 0 }
 0x23d   :  { %1593 = shalt.err (%p1734_p0)  }

// kernel: _unnamed_function_.5
= control target key start
LH: loop header
LB: loop body
LE: loop exit
PB: predicated region body
PF: predicated region fallthrough
CT: control target
= control target key end

     0   :  { %10 = vsyncpa [#allocation5], 0  ;;  %s2437_s0 = inlined_call_operand.vmem [shape: bf16[80,256], index: 0, kind: input, shape index: {}]   ;;  %s2438_s1 = inlined_call_operand.vmem [shape: bf16[80,256], index: 1, kind: input, shape index: {}]   ;;  %s2439_s2 = inlined_call_operand.vmem [shape: bf16[256,256], index: 2, kind: input, shape index: {}]   ;;  %s2440_s3 = inlined_call_operand.hbm [shape: f32[1,1], index: 3, kind: output, shape index: {0}]   ;;  %s2441_s4 = inlined_call_operand.hbm [shape: f32[1,1], index: 4, kind: output, shape index: {1}]  }
   0x1   :  { %11 = vsyncpa [#allocation7], 0  ;;  %v30_v0 = vld [vmem:[%s2439_s2] sm:$0xff]  ;;  %v32_v1 = vld [vmem:[%s2439_s2 + $0x8] sm:$0xff] }
   0x2   :  { %31 = vst [vmem:[#allocation2] sm:$0xff] %v30_v0  ;;  %v34_v2 = vld [vmem:[%s2439_s2 + $0x10] sm:$0xff]  ;;  %v36_v3 = vld [vmem:[%s2439_s2 + $0x18] sm:$0xff]  ;;  %v38_v4 = vld [vmem:[%s2439_s2 + $0x20] sm:$0xff] }
   0x3   :  { %33 = vst [vmem:[#allocation2 + $0x8] sm:$0xff] %v32_v1  ;;  %v40_v5 = vld [vmem:[%s2439_s2 + $0x28] sm:$0xff]  ;;  %v42_v6 = vld [vmem:[%s2439_s2 + $0x30] sm:$0xff]  ;;  %v44_v7 = vld [vmem:[%s2439_s2 + $0x38] sm:$0xff] }
   0x4   :  { %35 = vst [vmem:[#allocation2 + $0x10] sm:$0xff] %v34_v2  ;;  %v46_v8 = vld [vmem:[%s2439_s2 + $0x40] sm:$0xff]  ;;  %v48_v9 = vld [vmem:[%s2439_s2 + $0x48] sm:$0xff]  ;;  %v50_v10 = vld [vmem:[%s2439_s2 + $0x50] sm:$0xff] }
   0x5   :  { %37 = vst [vmem:[#allocation2 + $0x18] sm:$0xff] %v36_v3  ;;  %v52_v11 = vld [vmem:[%s2439_s2 + $0x58] sm:$0xff]  ;;  %v54_v12 = vld [vmem:[%s2439_s2 + $0x60] sm:$0xff]  ;;  %v56_v13 = vld [vmem:[%s2439_s2 + $0x68] sm:$0xff] }
   0x6   :  { %39 = vst [vmem:[#allocation2 + $0x20] sm:$0xff] %v38_v4  ;;  %v58_v14 = vld [vmem:[%s2439_s2 + $0x70] sm:$0xff]  ;;  %v60_v15 = vld [vmem:[%s2439_s2 + $0x78] sm:$0xff]  ;;  %v62_v16 = vld [vmem:[%s2439_s2 + $0x80] sm:$0xff] }
   0x7   :  { %41 = vst [vmem:[#allocation2 + $0x28] sm:$0xff] %v40_v5  ;;  %v64_v17 = vld [vmem:[%s2439_s2 + $0x88] sm:$0xff]  ;;  %v66_v18 = vld [vmem:[%s2439_s2 + $0x90] sm:$0xff]  ;;  %v68_v19 = vld [vmem:[%s2439_s2 + $0x98] sm:$0xff] }
   0x8   :  { %43 = vst [vmem:[#allocation2 + $0x30] sm:$0xff] %v42_v6  ;;  %v70_v20 = vld [vmem:[%s2439_s2 + $0xa0] sm:$0xff]  ;;  %v72_v21 = vld [vmem:[%s2439_s2 + $0xa8] sm:$0xff]  ;;  %v74_v22 = vld [vmem:[%s2439_s2 + $0xb0] sm:$0xff] }
   0x9   :  { %45 = vst [vmem:[#allocation2 + $0x38] sm:$0xff] %v44_v7  ;;  %v76_v23 = vld [vmem:[%s2439_s2 + $0xb8] sm:$0xff]  ;;  %v78_v24 = vld [vmem:[%s2439_s2 + $0xc0] sm:$0xff]  ;;  %v80_v25 = vld [vmem:[%s2439_s2 + $0xc8] sm:$0xff] }
   0xa   :  { %47 = vst [vmem:[#allocation2 + $0x40] sm:$0xff] %v46_v8  ;;  %v82_v26 = vld [vmem:[%s2439_s2 + $0xd0] sm:$0xff]  ;;  %v84_v27 = vld [vmem:[%s2439_s2 + $0xd8] sm:$0xff]  ;;  %v86_v28 = vld [vmem:[%s2439_s2 + $0xe0] sm:$0xff] }
   0xb   :  { %49 = vst [vmem:[#allocation2 + $0x48] sm:$0xff] %v48_v9  ;;  %v88_v29 = vld [vmem:[%s2439_s2 + $0xe8] sm:$0xff]  ;;  %v90_v30 = vld [vmem:[%s2439_s2 + $0xf0] sm:$0xff]  ;;  %v92_v31 = vld [vmem:[%s2439_s2 + $0xf8] sm:$0xff] }
   0xc   :  { %51 = vst [vmem:[#allocation2 + $0x50] sm:$0xff] %v50_v10 }
   0xd   :  { %53 = vst [vmem:[#allocation2 + $0x58] sm:$0xff] %v52_v11 }
   0xe   :  { %55 = vst [vmem:[#allocation2 + $0x60] sm:$0xff] %v54_v12 }
   0xf   :  { %57 = vst [vmem:[#allocation2 + $0x68] sm:$0xff] %v56_v13 }
  0x10   :  { %59 = vst [vmem:[#allocation2 + $0x70] sm:$0xff] %v58_v14 }
  0x11   :  { %61 = vst [vmem:[#allocation2 + $0x78] sm:$0xff] %v60_v15 }
  0x12   :  { %63 = vst [vmem:[#allocation2 + $0x80] sm:$0xff] %v62_v16 }
  0x13   :  { %65 = vst [vmem:[#allocation2 + $0x88] sm:$0xff] %v64_v17 }
  0x14   :  { %67 = vst [vmem:[#allocation2 + $0x90] sm:$0xff] %v66_v18 }
  0x15   :  { %69 = vst [vmem:[#allocation2 + $0x98] sm:$0xff] %v68_v19 }
  0x16   :  { %71 = vst [vmem:[#allocation2 + $0xa0] sm:$0xff] %v70_v20 }
  0x17   :  { %73 = vst [vmem:[#allocation2 + $0xa8] sm:$0xff] %v72_v21 }
  0x18   :  { %75 = vst [vmem:[#allocation2 + $0xb0] sm:$0xff] %v74_v22 }
  0x19   :  { %77 = vst [vmem:[#allocation2 + $0xb8] sm:$0xff] %v76_v23 }
  0x1a   :  { %79 = vst [vmem:[#allocation2 + $0xc0] sm:$0xff] %v78_v24 }
  0x1b   :  { %81 = vst [vmem:[#allocation2 + $0xc8] sm:$0xff] %v80_v25 }
  0x1c   :  { %83 = vst [vmem:[#allocation2 + $0xd0] sm:$0xff] %v82_v26 }
  0x1d   :  { %85 = vst [vmem:[#allocation2 + $0xd8] sm:$0xff] %v84_v27 }
  0x1e   :  { %87 = vst [vmem:[#allocation2 + $0xe0] sm:$0xff] %v86_v28 }
  0x1f   :  { %89 = vst [vmem:[#allocation2 + $0xe8] sm:$0xff] %v88_v29 }
  0x20   :  { %91 = vst [vmem:[#allocation2 + $0xf0] sm:$0xff] %v90_v30 }
  0x21   :  { %93 = vst [vmem:[#allocation2 + $0xf8] sm:$0xff] %v92_v31 }
  0x22   :  { %99 = vsyncadd [#allocation3], 4096 }
  0x23   :  { %1716 = dma.done.wait [#allocation3], 4096 }
  0x24   :  { %1717 = vsyncadd [#allocation3], 4294963200  ;;  %v1422_v32 = vld [vmem:[#allocation2 + $0x70] sm:$0xf]  ;;  %v1508_v33 = vld [vmem:[#allocation2 + $0x74] sm:$0xf0] }
  0x25   :  { %v1423_v35 = vor.u32 %v1508_v33, %v1422_v32  ;;  %v1507_v37 = vld [vmem:[#allocation2 + $0x74] sm:$0xf]  ;;  %v1424_v38 = vld [vmem:[#allocation2 + $0x78] sm:$0xf0]  ;;  %v1414_v43 = vld [vmem:[#allocation2 + $0x60] sm:$0xf] }
  0x26   :  { %v1427_v40 = vor.u32 %v1507_v37, %v1424_v38  ;;  %v1506_v45 = vld [vmem:[#allocation2 + $0x64] sm:$0xf0]  ;;  %v1478_v46 = vld [vmem:[#allocation2 + $0xe0] sm:$0xf]  ;;  %v1505_v50 = vld [vmem:[#allocation2 + $0x64] sm:$0xf] }
  0x27   :  { %v1486_v34 = vld [vmem:[#allocation2 + $0xf0] sm:$0xf]  ;;  %v1523_v41 = vld [vmem:[#allocation2 + $0xf4] sm:$0xf]  ;;  %419 = vmatpush.bf16.msra.mxu0 %v1423_v35  ;;  %v1522_v47 = vld [vmem:[#allocation2 + $0xe4] sm:$0xf0]  ;;  %v1415_v48 = vor.u32 %v1506_v45, %v1414_v43 }
  0x28   :  { %v1524_v36 = vld [vmem:[#allocation2 + $0xf4] sm:$0xf0]  ;;  %v1488_v42 = vld [vmem:[#allocation2 + $0xf8] sm:$0xf0]  ;;  %537 = vmatpush.bf16.msra.mxu2 %v1427_v40  ;;  %v1479_v49 = vor.u32 %v1522_v47, %v1478_v46  ;;  %v1416_v51 = vld [vmem:[#allocation2 + $0x68] sm:$0xf0] }
  0x29   :  { %v1487_v39 = vor.u32 %v1524_v36, %v1486_v34  ;;  %v1491_v44 = vor.u32 %v1523_v41, %v1488_v42  ;;  %v1521_v52 = vld [vmem:[#allocation2 + $0xe4] sm:$0xf]  ;;  %v1419_v53 = vor.u32 %v1505_v50, %v1416_v51  ;;  %v1480_v54 = vld [vmem:[#allocation2 + $0xe8] sm:$0xf0]  ;;  %v1406_v55 = vld [vmem:[#allocation2 + $0x50] sm:$0xf] }
  0x2a   :  { %v1504_v56 = vld [vmem:[#allocation2 + $0x54] sm:$0xf0]  ;;  %v1483_v57 = vor.u32 %v1521_v52, %v1480_v54  ;;  %v1470_v58 = vld [vmem:[#allocation2 + $0xd0] sm:$0xf]  ;;  %v1503_v60 = vld [vmem:[#allocation2 + $0x54] sm:$0xf] }
  0x2b   :  { %478 = vmatpush.bf16.msra.mxu1 %v1487_v39  ;;  %596 = vmatpush.bf16.msra.mxu3 %v1491_v44  ;;  %v1520_v59 = vld [vmem:[#allocation2 + $0xd4] sm:$0xf0]  ;;  %v1407_v61 = vor.u32 %v1504_v56, %v1406_v55  ;;  %v1408_v62 = vld [vmem:[#allocation2 + $0x58] sm:$0xf0]  ;;  %v1519_v63 = vld [vmem:[#allocation2 + $0xd4] sm:$0xf] }
  0x2c   :  { %420 = vmatpush.bf16.msra.mxu0 %v1415_v48  ;;  %v1472_v0 = vld [vmem:[#allocation2 + $0xd8] sm:$0xf0]  ;;  %538 = vmatpush.bf16.msra.mxu2 %v1419_v53  ;;  %v1471_v1 = vor.u32 %v1520_v59, %v1470_v58  ;;  %v1411_v2 = vor.u32 %v1503_v60, %v1408_v62  ;;  %v1398_v3 = vld [vmem:[#allocation2 + $0x40] sm:$0xf]  ;;  %v1502_v4 = vld [vmem:[#allocation2 + $0x44] sm:$0xf0] }
  0x2d   :  { %v1462_v5 = vld [vmem:[#allocation2 + $0xc0] sm:$0xf]  ;;  %v1475_v6 = vor.u32 %v1519_v63, %v1472_v0  ;;  %v1518_v7 = vld [vmem:[#allocation2 + $0xc4] sm:$0xf0]  ;;  %v1501_v8 = vld [vmem:[#allocation2 + $0x44] sm:$0xf]  ;;  %v1399_v12 = vor.u32 %v1502_v4, %v1398_v3 }
  0x2e   :  { %v1400_v9 = vld [vmem:[#allocation2 + $0x48] sm:$0xf0]  ;;  %v1517_v10 = vld [vmem:[#allocation2 + $0xc4] sm:$0xf]  ;;  %v1463_v13 = vor.u32 %v1518_v7, %v1462_v5  ;;  %v1390_v15 = vld [vmem:[#allocation2 + $0x30] sm:$0xf] }
  0x2f   :  { %479 = vmatpush.bf16.msra.mxu1 %v1479_v49  ;;  %597 = vmatpush.bf16.msra.mxu3 %v1483_v57  ;;  %v1464_v11 = vld [vmem:[#allocation2 + $0xc8] sm:$0xf0]  ;;  %v1403_v14 = vor.u32 %v1501_v8, %v1400_v9  ;;  %v1500_v16 = vld [vmem:[#allocation2 + $0x34] sm:$0xf0]  ;;  %v1454_v17 = vld [vmem:[#allocation2 + $0xb0] sm:$0xf] }
  0x30   :  { %421 = vmatpush.bf16.msra.mxu0 %v1407_v61  ;;  %539 = vmatpush.bf16.msra.mxu2 %v1411_v2  ;;  %v1467_v18 = vor.u32 %v1517_v10, %v1464_v11  ;;  %v1516_v19 = vld [vmem:[#allocation2 + $0xb4] sm:$0xf0]  ;;  %v1499_v20 = vld [vmem:[#allocation2 + $0x34] sm:$0xf]  ;;  %v1392_v21 = vld [vmem:[#allocation2 + $0x38] sm:$0xf0]  ;;  %v1391_v24 = vor.u32 %v1500_v16, %v1390_v15 }
  0x31   :  { %v1515_v22 = vld [vmem:[#allocation2 + $0xb4] sm:$0xf]  ;;  %v1456_v23 = vld [vmem:[#allocation2 + $0xb8] sm:$0xf0]  ;;  %v1455_v25 = vor.u32 %v1516_v19, %v1454_v17  ;;  %v1395_v26 = vor.u32 %v1499_v20, %v1392_v21  ;;  %v1382_v27 = vld [vmem:[#allocation2 + $0x20] sm:$0xf] }
  0x32   :  { %v1498_v28 = vld [vmem:[#allocation2 + $0x24] sm:$0xf0]  ;;  %v1446_v29 = vld [vmem:[#allocation2 + $0xa0] sm:$0xf]  ;;  %v1459_v30 = vor.u32 %v1515_v22, %v1456_v23  ;;  %v1497_v32 = vld [vmem:[#allocation2 + $0x24] sm:$0xf] }
  0x33   :  { %480 = vmatpush.bf16.msra.mxu1 %v1471_v1  ;;  %598 = vmatpush.bf16.msra.mxu3 %v1475_v6  ;;  %v1514_v31 = vld [vmem:[#allocation2 + $0xa4] sm:$0xf0]  ;;  %v1384_v33 = vld [vmem:[#allocation2 + $0x28] sm:$0xf0]  ;;  %v1513_v34 = vld [vmem:[#allocation2 + $0xa4] sm:$0xf]  ;;  %v1383_v36 = vor.u32 %v1498_v28, %v1382_v27 }
  0x34   :  { %422 = vmatpush.bf16.msra.mxu0 %v1399_v12  ;;  %540 = vmatpush.bf16.msra.mxu2 %v1403_v14  ;;  %v1448_v35 = vld [vmem:[#allocation2 + $0xa8] sm:$0xf0]  ;;  %v1447_v37 = vor.u32 %v1514_v31, %v1446_v29  ;;  %v1387_v38 = vor.u32 %v1497_v32, %v1384_v33  ;;  %v1374_v39 = vld [vmem:[#allocation2 + $0x10] sm:$0xf]  ;;  %v1496_v40 = vld [vmem:[#allocation2 + $0x14] sm:$0xf0] }
  0x35   :  { %v1438_v41 = vld [vmem:[#allocation2 + $0x90] sm:$0xf]  ;;  %v1451_v42 = vor.u32 %v1513_v34, %v1448_v35  ;;  %v1512_v43 = vld [vmem:[#allocation2 + $0x94] sm:$0xf0]  ;;  %v1495_v44 = vld [vmem:[#allocation2 + $0x14] sm:$0xf]  ;;  %v1375_v48 = vor.u32 %v1496_v40, %v1374_v39 }
  0x36   :  { %v1376_v45 = vld [vmem:[#allocation2 + $0x18] sm:$0xf0]  ;;  %v1511_v46 = vld [vmem:[#allocation2 + $0x94] sm:$0xf]  ;;  %v1439_v49 = vor.u32 %v1512_v43, %v1438_v41  ;;  %v1366_v51 = vld [vmem:[#allocation2] sm:$0xf] }
  0x37   :  { %481 = vmatpush.bf16.msra.mxu1 %v1463_v13  ;;  %599 = vmatpush.bf16.msra.mxu3 %v1467_v18  ;;  %v1440_v47 = vld [vmem:[#allocation2 + $0x98] sm:$0xf0]  ;;  %v1379_v50 = vor.u32 %v1495_v44, %v1376_v45  ;;  %v1494_v52 = vld [vmem:[#allocation2 + $0x4] sm:$0xf0]  ;;  %v1430_v53 = vld [vmem:[#allocation2 + $0x80] sm:$0xf] }
  0x38   :  { %423 = vmatpush.bf16.msra.mxu0 %v1391_v24  ;;  %541 = vmatpush.bf16.msra.mxu2 %v1395_v26  ;;  %v1443_v54 = vor.u32 %v1511_v46, %v1440_v47  ;;  %v1510_v55 = vld [vmem:[#allocation2 + $0x84] sm:$0xf0]  ;;  %v1493_v56 = vld [vmem:[#allocation2 + $0x4] sm:$0xf]  ;;  %v1368_v57 = vld [vmem:[#allocation2 + $0x8] sm:$0xf0]  ;;  %v1367_v60 = vor.u32 %v1494_v52, %v1366_v51 }
  0x39   :  { %v1509_v58 = vld [vmem:[#allocation2 + $0x84] sm:$0xf]  ;;  %v1432_v59 = vld [vmem:[#allocation2 + $0x88] sm:$0xf0]  ;;  %v1286_v61 = vld [vmem:[%s2437_s0] sm:$0xf]  ;;  %v1431_v63 = vor.u32 %v1510_v55, %v1430_v53  ;;  %v1371_v0 = vor.u32 %v1493_v56, %v1368_v57 }
  0x3a   :  { %v1526_v62 = vld [vmem:[%s2437_s0 + $0x4] sm:$0xf0]  ;;  %v1525_v1 = vld [vmem:[%s2437_s0 + $0x4] sm:$0xf]  ;;  %v1288_v2 = vld [vmem:[%s2437_s0 + $0x8] sm:$0xf0]  ;;  %v1435_v3 = vor.u32 %v1509_v58, %v1432_v59 }
  0x3b   :  { %482 = vmatpush.bf16.msra.mxu1 %v1455_v25  ;;  %600 = vmatpush.bf16.msra.mxu3 %v1459_v30  ;;  %v1287_v4 = vor.u32 %v1526_v62, %v1286_v61  ;;  %v1291_v5 = vor.u32 %v1525_v1, %v1288_v2  ;;  %v1294_v6 = vld [vmem:[%s2437_s0 + $0x10] sm:$0xf]  ;;  %v1528_v7 = vld [vmem:[%s2437_s0 + $0x14] sm:$0xf0]  ;;  %v1527_v8 = vld [vmem:[%s2437_s0 + $0x14] sm:$0xf] }
  0x3c   :  { %424 = vmatpush.bf16.msra.mxu0 %v1383_v36  ;;  %542 = vmatpush.bf16.msra.mxu2 %v1387_v38  ;;  %v1296_v9 = vld [vmem:[%s2437_s0 + $0x18] sm:$0xf0]  ;;  %v1295_v10 = vor.u32 %v1528_v7, %v1294_v6  ;;  %v1302_v12 = vld [vmem:[%s2437_s0 + $0x20] sm:$0xf]  ;;  %v1530_v13 = vld [vmem:[%s2437_s0 + $0x24] sm:$0xf0] }
  0x3d   :  { %v1299_v11 = vor.u32 %v1527_v8, %v1296_v9  ;;  %v1529_v14 = vld [vmem:[%s2437_s0 + $0x24] sm:$0xf]  ;;  %v1304_v15 = vld [vmem:[%s2437_s0 + $0x28] sm:$0xf0]  ;;  %v1303_v16 = vor.u32 %v1530_v13, %v1302_v12  ;;  %v1310_v18 = vld [vmem:[%s2437_s0 + $0x30] sm:$0xf] }
  0x3e   :  { %v1307_v17 = vor.u32 %v1529_v14, %v1304_v15  ;;  %v1532_v19 = vld [vmem:[%s2437_s0 + $0x34] sm:$0xf0]  ;;  %v1531_v20 = vld [vmem:[%s2437_s0 + $0x34] sm:$0xf]  ;;  %v1312_v21 = vld [vmem:[%s2437_s0 + $0x38] sm:$0xf0] }
  0x3f   :  { %483 = vmatpush.bf16.msra.mxu1 %v1447_v37  ;;  %601 = vmatpush.bf16.msra.mxu3 %v1451_v42  ;;  %v1311_v22 = vor.u32 %v1532_v19, %v1310_v18  ;;  %v1315_v23 = vor.u32 %v1531_v20, %v1312_v21  ;;  %v1318_v24 = vld [vmem:[%s2437_s0 + $0x40] sm:$0xf]  ;;  %v1534_v25 = vld [vmem:[%s2437_s0 + $0x44] sm:$0xf0]  ;;  %v1533_v26 = vld [vmem:[%s2437_s0 + $0x44] sm:$0xf] }
  0x40   :  { %425 = vmatpush.bf16.msra.mxu0 %v1375_v48  ;;  %543 = vmatpush.bf16.msra.mxu2 %v1379_v50  ;;  %v1320_v27 = vld [vmem:[%s2437_s0 + $0x48] sm:$0xf0]  ;;  %v1319_v28 = vor.u32 %v1534_v25, %v1318_v24  ;;  %v1326_v30 = vld [vmem:[%s2438_s1] sm:$0xf]  ;;  %v1536_v31 = vld [vmem:[%s2438_s1 + $0x4] sm:$0xf0] }
  0x41   :  { %v1323_v29 = vor.u32 %v1533_v26, %v1320_v27  ;;  %v1535_v32 = vld [vmem:[%s2438_s1 + $0x4] sm:$0xf]  ;;  %v1328_v33 = vld [vmem:[%s2438_s1 + $0x8] sm:$0xf0]  ;;  %v1327_v34 = vor.u32 %v1536_v31, %v1326_v30  ;;  %v1334_v36 = vld [vmem:[%s2438_s1 + $0x10] sm:$0xf] }
  0x42   :  { %v1331_v35 = vor.u32 %v1535_v32, %v1328_v33  ;;  %v1538_v37 = vld [vmem:[%s2438_s1 + $0x14] sm:$0xf0]  ;;  %v1537_v38 = vld [vmem:[%s2438_s1 + $0x14] sm:$0xf]  ;;  %v1336_v39 = vld [vmem:[%s2438_s1 + $0x18] sm:$0xf0] }
  0x43   :  { %484 = vmatpush.bf16.msra.mxu1 %v1439_v49  ;;  %602 = vmatpush.bf16.msra.mxu3 %v1443_v54  ;;  %v1335_v40 = vor.u32 %v1538_v37, %v1334_v36  ;;  %v1339_v41 = vor.u32 %v1537_v38, %v1336_v39  ;;  %v1342_v42 = vld [vmem:[%s2438_s1 + $0x20] sm:$0xf]  ;;  %v1540_v43 = vld [vmem:[%s2438_s1 + $0x24] sm:$0xf0]  ;;  %v1539_v44 = vld [vmem:[%s2438_s1 + $0x24] sm:$0xf] }
  0x44   :  { %426 = vmatpush.bf16.msra.mxu0 %v1367_v60  ;;  %544 = vmatpush.bf16.msra.mxu2 %v1371_v0  ;;  %v1344_v45 = vld [vmem:[%s2438_s1 + $0x28] sm:$0xf0]  ;;  %v1343_v46 = vor.u32 %v1540_v43, %v1342_v42  ;;  %v1350_v48 = vld [vmem:[%s2438_s1 + $0x30] sm:$0xf]  ;;  %v1542_v49 = vld [vmem:[%s2438_s1 + $0x34] sm:$0xf0] }
  0x45   :  { %v1347_v47 = vor.u32 %v1539_v44, %v1344_v45  ;;  %v1541_v50 = vld [vmem:[%s2438_s1 + $0x34] sm:$0xf]  ;;  %v1352_v51 = vld [vmem:[%s2438_s1 + $0x38] sm:$0xf0]  ;;  %v1351_v52 = vor.u32 %v1542_v49, %v1350_v48  ;;  %v1358_v1 = vld [vmem:[%s2438_s1 + $0x40] sm:$0xf] }
  0x46   :  { %v1355_v54 = vor.u32 %v1541_v50, %v1352_v51  ;;  %v1544_v2 = vld [vmem:[%s2438_s1 + $0x44] sm:$0xf0]  ;;  %s1249_s2 = sshll.u32 %s2440_s3, 4  ;;  %s1724_s27 = smov [#allocation6]   ;;  %s1250_s2 = int_to_ptr.hbm [resolvable:$true] %s1249_s2 }
  0x47   :  { %485 = vmatpush.bf16.msra.mxu1 %v1431_v63  ;;  %603 = vmatpush.bf16.msra.mxu3 %v1435_v3  ;;  %v1359_v8 = vor.u32 %v1544_v2, %v1358_v1  ;;  %s1258_s28 = sshll.u32 %s1724_s27, 4  ;;  %s1260_s5 = sshll.u32 %s2441_s4, 4  ;;  %s1259_s28 = int_to_ptr.vmem [resolvable:$true] %s1258_s28  ;;  %s1261_s5 = int_to_ptr.hbm [resolvable:$true] %s1260_s5 }
  0x48   :  { %427 = vmatmul.bf16.vlgmr.msra.gmra.mxu0 %v1287_v4  ;;  %545 = vmatmul.bf16.vlgmr.msra.gmra.mxu2 %v1287_v4  ;;  %v1543_v4 = vld [vmem:[%s2438_s1 + $0x44] sm:$0xf] }
  0x4a   :  { %486 = vmatmul.bf16.vlgmr.msra.gmra.mxu1 %v1291_v5  ;;  %604 = vmatmul.bf16.vlgmr.msra.gmra.mxu3 %v1291_v5  ;;  %v1360_v5 = vld [vmem:[%s2438_s1 + $0x48] sm:$0xf0]  ;;  %s1723_s1 = smov [#allocation4]  }
  0x4b   :  { %s1247_s24 = sshll.u32 %s1723_s1, 4  ;;  %s1248_s24 = int_to_ptr.vmem [resolvable:$true] %s1247_s24 }
  0x58   :  { %432 = vmatmul.bf16.gmra.mxu0 %v1295_v10  ;;  %550 = vmatmul.bf16.gmra.mxu2 %v1295_v10 }
  0x5a   :  { %491 = vmatmul.bf16.gmra.mxu1 %v1299_v11  ;;  %609 = vmatmul.bf16.gmra.mxu3 %v1299_v11  ;;  %v1363_v11 = vor.u32 %v1543_v4, %v1360_v5 }
  0x68   :  { %437 = vmatmul.bf16.gmra.mxu0 %v1303_v16  ;;  %555 = vmatmul.bf16.gmra.mxu2 %v1303_v16 }
  0x6a   :  { %496 = vmatmul.bf16.gmra.mxu1 %v1307_v17  ;;  %614 = vmatmul.bf16.gmra.mxu3 %v1307_v17 }
  0x78   :  { %442 = vmatmul.bf16.gmra.mxu0 %v1311_v22  ;;  %560 = vmatmul.bf16.gmra.mxu2 %v1311_v22 }
  0x7a   :  { %501 = vmatmul.bf16.gmra.mxu1 %v1315_v23  ;;  %619 = vmatmul.bf16.gmra.mxu3 %v1315_v23 }
  0x88   :  { %447 = vmatmul.bf16.gmra.mxu0 %v1319_v28  ;;  %565 = vmatmul.bf16.gmra.mxu2 %v1319_v28 }
  0x8a   :  { %506 = vmatmul.bf16.gmra.mxu1 %v1323_v29  ;;  %624 = vmatmul.bf16.gmra.mxu3 %v1323_v29 }
  0x98   :  { %452 = vmatmul.bf16.gmra.mxu0 %v1327_v34  ;;  %570 = vmatmul.bf16.gmra.mxu2 %v1327_v34 }
  0x9a   :  { %511 = vmatmul.bf16.gmra.mxu1 %v1331_v35  ;;  %629 = vmatmul.bf16.gmra.mxu3 %v1331_v35 }
  0xa8   :  { %457 = vmatmul.bf16.gmra.mxu0 %v1335_v40  ;;  %575 = vmatmul.bf16.gmra.mxu2 %v1335_v40 }
  0xaa   :  { %516 = vmatmul.bf16.gmra.mxu1 %v1339_v41  ;;  %634 = vmatmul.bf16.gmra.mxu3 %v1339_v41 }
  0xb8   :  { %462 = vmatmul.bf16.gmra.mxu0 %v1343_v46  ;;  %580 = vmatmul.bf16.gmra.mxu2 %v1343_v46 }
  0xba   :  { %521 = vmatmul.bf16.gmra.mxu1 %v1347_v47  ;;  %639 = vmatmul.bf16.gmra.mxu3 %v1347_v47 }
  0xc5   :  { %v428_v53 = vpop.f32.mrf.mxu0 }
  0xc7   :  { %v487_v55 = vpop.f32.mrf.mxu1 }
  0xc8   :  { %v1954_v56 = vadd.f32 %v487_v55, %v428_v53  ;;  %467 = vmatmul.bf16.gmra.mxu0 %v1351_v52  ;;  %585 = vmatmul.bf16.gmra.mxu2 %v1351_v52 }
  0xca   :  { %526 = vmatmul.bf16.gmra.mxu1 %v1355_v54  ;;  %644 = vmatmul.bf16.gmra.mxu3 %v1355_v54  ;;  %v655_v60 = vmul.f32 %v1954_v56, %v1954_v56 }
  0xcb   :  { %v546_v57 = vpop.f32.mrf.mxu2 }
  0xcd   :  { %v605_v58 = vpop.f32.mrf.mxu3  ;;  %v430_v59 = vpop.f32.mrf.mxu0 }
  0xce   :  { %v1958_v61 = vadd.f32 %v605_v58, %v546_v57 }
  0xcf   :  { %v489_v62 = vpop.f32.mrf.mxu1 }
  0xd0   :  { %v1960_v63 = vadd.f32 %v489_v62, %v430_v59  ;;  %v665_v0 = vmul.f32 %v1958_v61, %v1958_v61 }
  0xd2   :  { %v675_v3 = vadd.f32 %v665_v0, %v655_v60  ;;  %v656_v15 = vmul.f32 %v1960_v63, %v1960_v63 }
  0xd3   :  { %v548_v7 = vpop.f32.mrf.mxu2 }
  0xd4   :  { %v685_v6 = vmax.f32 %v675_v3, 1e-24 }
  0xd5   :  { %v607_v9 = vpop.f32.mrf.mxu3  ;;  %v433_v10 = vpop.f32.mrf.mxu0 }
  0xd6   :  { %1548 = vlog2.f32 %v685_v6  ;;  %v1976_v12 = vadd.f32 %v607_v9, %v548_v7  ;;  %vm900_vm1 = vweird.f32 %v685_v6 }
  0xd7   :  { %v492_v13 = vpop.f32.mrf.mxu1  ;;  %1550 = vrsqrt.f32 %v685_v6 }
  0xd8   :  { %v1978_v14 = vadd.f32 %v492_v13, %v433_v10  ;;  %v666_v16 = vmul.f32 %v1976_v12, %v1976_v12  ;;  %472 = vmatmul.bf16.gmra.mxu0 %v1359_v8  ;;  %590 = vmatmul.bf16.gmra.mxu2 %v1359_v8 }
  0xda   :  { %531 = vmatmul.bf16.gmra.mxu1 %v1363_v11  ;;  %v676_v17 = vadd.f32 %v666_v16, %v656_v15  ;;  %649 = vmatmul.bf16.gmra.mxu3 %v1363_v11  ;;  %v657_v26 = vmul.f32 %v1978_v14, %v1978_v14 }
  0xdb   :  { %v551_v20 = vpop.f32.mrf.mxu2 }
  0xdc   :  { %v1549_v18 = vpop.eup %1548  ;;  %v1984_v19 = vmax.f32 %v676_v17, 1e-24 }
  0xdd   :  { %v1551_v21 = vpop.eup %1550  ;;  %v736_v22 = vmul.f32 0.6931472, %v1549_v18  ;;  %v610_v23 = vpop.f32.mrf.mxu3 }
  0xde   :  { %v435_v24 = vpop.f32.mrf.mxu0  ;;  %v895_v25 = vmul.f32 %v1551_v21, %v685_v6  ;;  %1552 = vlog2.f32 %v1984_v19  ;;  %v1990_v29 = vadd.f32 %v610_v23, %v551_v20  ;;  %vm901_vm0 = vweird.f32 %v1551_v21 }
  0xdf   :  { %v494_v27 = vpop.f32.mrf.mxu1  ;;  %v755_v28 = vmul.f32 0.15, %v736_v22  ;;  %1554 = vrsqrt.f32 %v1984_v19  ;;  %vm902_vm2 = vmor %vm900_vm1, %vm901_vm0  ;;  %vm910_vm4 = vweird.f32 %v1984_v19 }
  0xe0   :  { %v1992_v30 = vadd.f32 %v494_v27, %v435_v24  ;;  %v896_v31 = vmul.f32 %v1551_v21, %v895_v25  ;;  %v667_v33 = vmul.f32 %v1990_v29, %v1990_v29 }
  0xe1   :  { %v765_v32 = vmul.f32 1.442695, %v755_v28 }
  0xe2   :  { %v897_v34 = vmul.f32 0.5, %v896_v31  ;;  %v677_v35 = vadd.f32 %v667_v33, %v657_v26  ;;  %v658_v51 = vmul.f32 %v1992_v30, %v1992_v30 }
  0xe3   :  { %1556 = vpow2.f32 %v765_v32  ;;  %v553_v38 = vpop.f32.mrf.mxu2 }
  0xe4   :  { %v1553_v36 = vpop.eup %1552  ;;  %v898_v37 = vsub.f32 1.5, %v897_v34  ;;  %v1996_v41 = vmax.f32 %v677_v35, 1e-24 }
  0xe5   :  { %v1555_v39 = vpop.eup %1554  ;;  %v738_v40 = vmul.f32 0.6931472, %v1553_v36  ;;  %v612_v42 = vpop.f32.mrf.mxu3 }
  0xe6   :  { %v438_v43 = vpop.f32.mrf.mxu0  ;;  %v899_v44 = vmul.f32 %v1551_v21, %v898_v37  ;;  %v905_v45 = vmul.f32 %v1555_v39, %v1984_v19  ;;  %v1999_v46 = vadd.f32 %v612_v42, %v553_v38  ;;  %1558 = vlog2.f32 %v1996_v41 }
  0xe7   :  { %v497_v47 = vpop.f32.mrf.mxu1  ;;  %v756_v48 = vmul.f32 0.15, %v738_v40  ;;  %1560 = vrsqrt.f32 %v1996_v41  ;;  %vm911_vm3 = vweird.f32 %v1555_v39  ;;  %vm920_vm6 = vweird.f32 %v1996_v41 }
  0xe8   :  { %v2002_v49 = vadd.f32 %v497_v47, %v438_v43  ;;  %v906_v50 = vmul.f32 %v1555_v39, %v905_v45  ;;  %v668_v52 = vmul.f32 %v1999_v46, %v1999_v46  ;;  %v903_v54 = vsel %vm902_vm2, %v1551_v21, %v899_v44  ;;  %vm912_vm5 = vmor %vm910_vm4, %vm911_vm3 }
  0xe9   :  { %v2009_v53 = vpop.eup %1556  ;;  %v767_v55 = vmul.f32 1.442695, %v756_v48 }
  0xea   :  { %v994_v57 = vmul.f32 %v2009_v53, %v903_v54  ;;  %v907_v58 = vmul.f32 0.5, %v906_v50  ;;  %v678_v59 = vadd.f32 %v668_v52, %v658_v51 }
  0xeb   :  { %1562 = vpow2.f32 %v767_v55  ;;  %v556_v1 = vpop.f32.mrf.mxu2 }
  0xec   :  { %v2013_v60 = vmul.f32 %v994_v57, %v1958_v61  ;;  %v908_v62 = vsub.f32 1.5, %v907_v58  ;;  %v2015_v0 = vmax.f32 %v678_v59, 1e-24  ;;  %v2018_v2 = vmul.f32 %v994_v57, %v1954_v56  ;;  %v1559_v3 = vpop.eup %1558 }
  0xed   :  { %v615_v4 = vpop.f32.mrf.mxu3  ;;  %v1561_v6 = vpop.eup %1560  ;;  %v740_v8 = vmul.f32 0.6931472, %v1559_v3  ;;  %v659_v56 = vmul.f32 %v2002_v49, %v2002_v49 }
  0xee   :  { %v440_v5 = vpop.f32.mrf.mxu0  ;;  %v909_v7 = vmul.f32 %v1555_v39, %v908_v62  ;;  %1564 = vlog2.f32 %v2015_v0  ;;  %v915_v9 = vmul.f32 %v1561_v6, %v1996_v41  ;;  %v2026_v10 = vadd.f32 %v615_v4, %v556_v1 }
  0xef   :  { %v499_v61 = vpop.f32.mrf.mxu1  ;;  %1566 = vrsqrt.f32 %v2015_v0  ;;  %v757_v11 = vmul.f32 0.15, %v740_v8  ;;  %vm921_vm7 = vweird.f32 %v1561_v6  ;;  %vm930_vm10 = vweird.f32 %v2015_v0 }
  0xf0   :  { %v2028_v13 = vadd.f32 %v499_v61, %v440_v5  ;;  %v913_v16 = vsel %vm912_vm5, %v1555_v39, %v909_v7  ;;  %v916_v17 = vmul.f32 %v1561_v6, %v915_v9  ;;  %v669_v18 = vmul.f32 %v2026_v10, %v2026_v10  ;;  %vm922_vm8 = vmor %vm920_vm6, %vm921_vm7 }
  0xf1   :  { %v2030_v15 = vpop.eup %1562  ;;  %v769_v20 = vmul.f32 1.442695, %v757_v11 }
  0xf2   :  { %v995_v19 = vmul.f32 %v2030_v15, %v913_v16  ;;  %v917_v21 = vmul.f32 0.5, %v916_v17  ;;  %v679_v22 = vadd.f32 %v669_v18, %v659_v56 }
  0xf3   :  { %1568 = vpow2.f32 %v769_v20  ;;  %v558_v25 = vpop.f32.mrf.mxu2 }
  0xf4   :  { %v1565_v23 = vpop.eup %1564  ;;  %v2036_v24 = vmul.f32 %v995_v19, %v1976_v12  ;;  %v2039_v26 = vmul.f32 %v995_v19, %v1960_v63  ;;  %v918_v28 = vsub.f32 1.5, %v917_v21  ;;  %v2041_v32 = vmax.f32 %v679_v22, 1e-24 }
  0xf5   :  { %v1567_v27 = vpop.eup %1566  ;;  %v742_v31 = vmul.f32 0.6931472, %v1565_v23  ;;  %v617_v33 = vpop.f32.mrf.mxu3  ;;  %v660_v63 = vmul.f32 %v2028_v13, %v2028_v13 }
  0xf6   :  { %v443_v34 = vpop.f32.mrf.mxu0  ;;  %v925_v35 = vmul.f32 %v1567_v27, %v2015_v0  ;;  %v2045_v36 = vadd.f32 %v617_v33, %v558_v25  ;;  %v919_v37 = vmul.f32 %v1561_v6, %v918_v28  ;;  %1570 = vlog2.f32 %v2041_v32 }
  0xf7   :  { %v502_v12 = vpop.f32.mrf.mxu1  ;;  %v758_v38 = vmul.f32 0.15, %v742_v31  ;;  %1572 = vrsqrt.f32 %v2041_v32  ;;  %vm931_vm9 = vweird.f32 %v1567_v27  ;;  %vm940_vm12 = vweird.f32 %v2041_v32 }
  0xf8   :  { %v926_v39 = vmul.f32 %v1567_v27, %v925_v35  ;;  %v670_v40 = vmul.f32 %v2045_v36, %v2045_v36  ;;  %v2053_v41 = vadd.f32 %v502_v12, %v443_v34  ;;  %v923_v44 = vsel %vm922_vm8, %v1561_v6, %v919_v37  ;;  %vm932_vm11 = vmor %vm930_vm10, %vm931_vm9 }
  0xf9   :  { %v771_v42 = vmul.f32 1.442695, %v758_v38  ;;  %v2055_v43 = vpop.eup %1568 }
  0xfa   :  { %v927_v45 = vmul.f32 0.5, %v926_v39  ;;  %v680_v47 = vadd.f32 %v670_v40, %v660_v63  ;;  %v996_v48 = vmul.f32 %v2055_v43, %v923_v44 }
  0xfb   :  { %1574 = vpow2.f32 %v771_v42  ;;  %v561_v52 = vpop.f32.mrf.mxu2 }
  0xfc   :  { %v928_v50 = vsub.f32 1.5, %v927_v45  ;;  %v2058_v51 = vmax.f32 %v680_v47, 1e-24  ;;  %v1571_v54 = vpop.eup %1570  ;;  %v2061_v55 = vmul.f32 %v996_v48, %v1990_v29  ;;  %v2064_v59 = vmul.f32 %v996_v48, %v1978_v14 }
  0xfd   :  { %v620_v57 = vpop.f32.mrf.mxu3  ;;  %v1573_v62 = vpop.eup %1572  ;;  %v744_v3 = vmul.f32 0.6931472, %v1571_v54  ;;  %v661_v29 = vmul.f32 %v2053_v41, %v2053_v41 }
  0xfe   :  { %v445_v58 = vpop.f32.mrf.mxu0  ;;  %v929_v1 = vmul.f32 %v1567_v27, %v928_v50  ;;  %1576 = vlog2.f32 %v2058_v51  ;;  %v935_v5 = vmul.f32 %v1573_v62, %v2041_v32  ;;  %v2072_v6 = vadd.f32 %v620_v57, %v561_v52 }
  0xff   :  { %v504_v4 = vpop.f32.mrf.mxu1  ;;  %1578 = vrsqrt.f32 %v2058_v51  ;;  %v759_v14 = vmul.f32 0.15, %v744_v3  ;;  %vm941_vm13 = vweird.f32 %v1573_v62  ;;  %vm950_vm0 = vweird.f32 %v2058_v51 }
 0x100   :  { %v2074_v7 = vadd.f32 %v504_v4, %v445_v58  ;;  %v933_v0 = vsel %vm932_vm11, %v1567_v27, %v929_v1  ;;  %v936_v61 = vmul.f32 %v1573_v62, %v935_v5  ;;  %v671_v9 = vmul.f32 %v2072_v6, %v2072_v6  ;;  %vm942_vm14 = vmor %vm940_vm12, %vm941_vm13 }
 0x101   :  { %v2076_v8 = vpop.eup %1574  ;;  %v773_v11 = vmul.f32 1.442695, %v759_v14 }
 0x102   :  { %v997_v56 = vmul.f32 %v2076_v8, %v933_v0  ;;  %v937_v16 = vmul.f32 0.5, %v936_v61  ;;  %v681_v17 = vadd.f32 %v671_v9, %v661_v29 }
 0x103   :  { %1580 = vpow2.f32 %v773_v11  ;;  %v563_v20 = vpop.f32.mrf.mxu2 }
 0x104   :  { %v1577_v18 = vpop.eup %1576  ;;  %v2082_v19 = vmul.f32 %v997_v56, %v1999_v46  ;;  %v2085_v21 = vmul.f32 %v997_v56, %v1992_v30  ;;  %v938_v23 = vsub.f32 1.5, %v937_v16  ;;  %v2087_v27 = vmax.f32 %v681_v17, 1e-24 }
 0x105   :  { %v1579_v22 = vpop.eup %1578  ;;  %v746_v25 = vmul.f32 0.6931472, %v1577_v18  ;;  %v622_v28 = vpop.f32.mrf.mxu3  ;;  %v662_v30 = vmul.f32 %v2074_v7, %v2074_v7 }
 0x106   :  { %v448_v31 = vpop.f32.mrf.mxu0  ;;  %v945_v33 = vmul.f32 %v1579_v22, %v2058_v51  ;;  %v2091_v34 = vadd.f32 %v622_v28, %v563_v20  ;;  %v939_v35 = vmul.f32 %v1573_v62, %v938_v23  ;;  %1582 = vlog2.f32 %v2087_v27 }
 0x107   :  { %v507_v46 = vpop.f32.mrf.mxu1  ;;  %v760_v12 = vmul.f32 0.15, %v746_v25  ;;  %1584 = vrsqrt.f32 %v2087_v27  ;;  %vm951_vm15 = vweird.f32 %v1579_v22  ;;  %vm960_vm3 = vweird.f32 %v2087_v27 }
 0x108   :  { %v946_v37 = vmul.f32 %v1579_v22, %v945_v33  ;;  %v672_v38 = vmul.f32 %v2091_v34, %v2091_v34  ;;  %v2099_v32 = vadd.f32 %v507_v46, %v448_v31  ;;  %v943_v40 = vsel %vm942_vm14, %v1573_v62, %v939_v35  ;;  %vm952_vm1 = vmor %vm950_vm0, %vm951_vm15 }
 0x109   :  { %v775_v63 = vmul.f32 1.442695, %v760_v12  ;;  %v2101_v39 = vpop.eup %1580 }
 0x10a   :  { %v947_v42 = vmul.f32 0.5, %v946_v37  ;;  %v682_v44 = vadd.f32 %v672_v38, %v662_v30  ;;  %v998_v45 = vmul.f32 %v2101_v39, %v943_v40 }
 0x10b   :  { %1586 = vpow2.f32 %v775_v63  ;;  %v566_v50 = vpop.f32.mrf.mxu2 }
 0x10c   :  { %v948_v47 = vsub.f32 1.5, %v947_v42  ;;  %v2104_v48 = vmax.f32 %v682_v44, 1e-24  ;;  %v1583_v52 = vpop.eup %1582  ;;  %v2107_v54 = vmul.f32 %v998_v45, %v2026_v10  ;;  %v2110_v1 = vmul.f32 %v998_v45, %v2002_v49 }
 0x10d   :  { %v625_v57 = vpop.f32.mrf.mxu3  ;;  %v1585_v62 = vpop.eup %1584  ;;  %v748_v4 = vmul.f32 0.6931472, %v1583_v52  ;;  %v663_v10 = vmul.f32 %v2099_v32, %v2099_v32 }
 0x10e   :  { %v450_v58 = vpop.f32.mrf.mxu0  ;;  %v949_v3 = vmul.f32 %v1579_v22, %v948_v47  ;;  %1588 = vlog2.f32 %v2104_v48  ;;  %v955_v29 = vmul.f32 %v1585_v62, %v2087_v27  ;;  %v2118_v14 = vadd.f32 %v625_v57, %v566_v50 }
 0x10f   :  { %v509_v5 = vpop.f32.mrf.mxu1  ;;  %1590 = vrsqrt.f32 %v2104_v48  ;;  %v761_v49 = vmul.f32 0.15, %v748_v4  ;;  %vm961_vm2 = vweird.f32 %v1585_v62  ;;  %vm970_vm6 = vweird.f32 %v2104_v48 }
 0x110   :  { %v2120_v0 = vadd.f32 %v509_v5, %v450_v58  ;;  %v953_v51 = vsel %vm952_vm1, %v1579_v22, %v949_v3  ;;  %v956_v9 = vmul.f32 %v1585_v62, %v955_v29  ;;  %v673_v56 = vmul.f32 %v2118_v14, %v2118_v14  ;;  %vm962_vm4 = vmor %vm960_vm3, %vm961_vm2 }
 0x111   :  { %v2122_v61 = vpop.eup %1586  ;;  %v777_v16 = vmul.f32 1.442695, %v761_v49 }
 0x112   :  { %v999_v11 = vmul.f32 %v2122_v61, %v953_v51  ;;  %v957_v17 = vmul.f32 0.5, %v956_v9  ;;  %v683_v18 = vadd.f32 %v673_v56, %v663_v10  ;;  %v664_v40 = vmul.f32 %v2120_v0, %v2120_v0 }
 0x113   :  { %1592 = vpow2.f32 %v777_v16  ;;  %v568_v25 = vpop.f32.mrf.mxu2 }
 0x114   :  { %v1589_v20 = vpop.eup %1588  ;;  %v2128_v23 = vmul.f32 %v999_v11, %v2045_v36  ;;  %v2131_v28 = vmul.f32 %v999_v11, %v2028_v13  ;;  %v958_v22 = vsub.f32 1.5, %v957_v17  ;;  %v2133_v46 = vmax.f32 %v683_v18, 1e-24 }
 0x115   :  { %v1591_v31 = vpop.eup %1590  ;;  %v750_v33 = vmul.f32 0.6931472, %v1589_v20  ;;  %v627_v35 = vpop.f32.mrf.mxu3 }
 0x116   :  { %v453_v12 = vpop.f32.mrf.mxu0  ;;  %v965_v30 = vmul.f32 %v1591_v31, %v2104_v48  ;;  %v2136_v37 = vadd.f32 %v627_v35, %v568_v25  ;;  %v959_v36 = vmul.f32 %v1585_v62, %v958_v22  ;;  %1594 = vlog2.f32 %v2133_v46 }
 0x117   :  { %v512_v38 = vpop.f32.mrf.mxu1  ;;  %v762_v63 = vmul.f32 0.15, %v750_v33  ;;  %1596 = vrsqrt.f32 %v2133_v46  ;;  %vm971_vm5 = vweird.f32 %v1591_v31  ;;  %vm980_vm9 = vweird.f32 %v2133_v46 }
 0x118   :  { %v966_v13 = vmul.f32 %v1591_v31, %v965_v30  ;;  %v674_v42 = vmul.f32 %v2136_v37, %v2136_v37  ;;  %v963_v47 = vsel %vm962_vm4, %v1585_v62, %v959_v36  ;;  %v2148_v57 = vadd.f32 %v512_v38, %v453_v12  ;;  %vm972_vm7 = vmor %vm970_vm6, %vm971_vm5 }
 0x119   :  { %v779_v44 = vmul.f32 1.442695, %v762_v63  ;;  %v2145_v45 = vpop.eup %1592 }
 0x11a   :  { %v967_v50 = vmul.f32 0.5, %v966_v13  ;;  %v684_v52 = vadd.f32 %v674_v42, %v664_v40  ;;  %v1000_v27 = vmul.f32 %v2145_v45, %v963_v47 }
 0x11b   :  { %1598 = vpow2.f32 %v779_v44  ;;  %v571_v4 = vpop.f32.mrf.mxu2 }
 0x11c   :  { %v968_v58 = vsub.f32 1.5, %v967_v50  ;;  %v2150_v3 = vmax.f32 %v684_v52, 1e-24  ;;  %v1595_v5 = vpop.eup %1594  ;;  %v2153_v29 = vmul.f32 %v1000_v27, %v2072_v6  ;;  %v2156_v62 = vmul.f32 %v1000_v27, %v2053_v41 }
 0x11d   :  { %v630_v10 = vpop.f32.mrf.mxu3  ;;  %v1597_v51 = vpop.eup %1596  ;;  %v752_v56 = vmul.f32 0.6931472, %v1595_v5  ;;  %v695_v6 = vmul.f32 %v2148_v57, %v2148_v57 }
 0x11e   :  { %v455_v49 = vpop.f32.mrf.mxu0  ;;  %v969_v9 = vmul.f32 %v1591_v31, %v968_v58  ;;  %1600 = vlog2.f32 %v2150_v3  ;;  %v975_v16 = vmul.f32 %v1597_v51, %v2133_v46  ;;  %v2164_v17 = vadd.f32 %v630_v10, %v571_v4 }
 0x11f   :  { %v514_v11 = vpop.f32.mrf.mxu1  ;;  %1602 = vrsqrt.f32 %v2150_v3  ;;  %v763_v41 = vmul.f32 0.15, %v752_v56  ;;  %vm981_vm8 = vweird.f32 %v1597_v51  ;;  %vm990_vm12 = vweird.f32 %v2150_v3 }
 0x120   :  { %v973_v20 = vsel %vm972_vm7, %v1591_v31, %v969_v9  ;;  %v976_v25 = vmul.f32 %v1597_v51, %v975_v16  ;;  %v705_v48 = vmul.f32 %v2164_v17, %v2164_v17  ;;  %v2174_v36 = vadd.f32 %v514_v11, %v455_v49  ;;  %vm982_vm10 = vmor %vm980_vm9, %vm981_vm8 }
 0x121   :  { %v2166_v18 = vpop.eup %1598  ;;  %v781_v33 = vmul.f32 1.442695, %v763_v41 }
 0x122   :  { %v1001_v22 = vmul.f32 %v2166_v18, %v973_v20  ;;  %v977_v35 = vmul.f32 0.5, %v976_v25  ;;  %v715_v12 = vadd.f32 %v705_v48, %v695_v6  ;;  %v696_v5 = vmul.f32 %v2174_v36, %v2174_v36 }
 0x123   :  { %1604 = vpow2.f32 %v781_v33  ;;  %v573_v63 = vpop.f32.mrf.mxu2 }
 0x124   :  { %v1601_v30 = vpop.eup %1600  ;;  %v2172_v38 = vmul.f32 %v1001_v22, %v2091_v34  ;;  %v2177_v13 = vmul.f32 %v1001_v22, %v2074_v7  ;;  %v978_v40 = vsub.f32 1.5, %v977_v35  ;;  %v2179_v44 = vmax.f32 %v715_v12, 1e-24 }
 0x125   :  { %v1603_v31 = vpop.eup %1602  ;;  %v754_v42 = vmul.f32 0.6931472, %v1601_v30  ;;  %v632_v47 = vpop.f32.mrf.mxu3 }
 0x126   :  { %v458_v50 = vpop.f32.mrf.mxu0  ;;  %v985_v52 = vmul.f32 %v1603_v31, %v2150_v3  ;;  %v2182_v27 = vadd.f32 %v632_v47, %v573_v63  ;;  %v979_v58 = vmul.f32 %v1597_v51, %v978_v40  ;;  %1606 = vlog2.f32 %v2179_v44 }
 0x127   :  { %v517_v34 = vpop.f32.mrf.mxu1  ;;  %v764_v4 = vmul.f32 0.15, %v754_v42  ;;  %1608 = vrsqrt.f32 %v2179_v44  ;;  %vm991_vm11 = vweird.f32 %v1603_v31  ;;  %vm1010_vm15 = vweird.f32 %v2179_v44 }
 0x128   :  { %v986_v7 = vmul.f32 %v1603_v31, %v985_v52  ;;  %v706_v10 = vmul.f32 %v2182_v27, %v2182_v27  ;;  %v983_v56 = vsel %vm982_vm10, %v1597_v51, %v979_v58  ;;  %v2194_v6 = vadd.f32 %v517_v34, %v458_v50  ;;  %vm992_vm13 = vmor %vm990_vm12, %vm991_vm11 }
 0x129   :  { %v783_v49 = vmul.f32 1.442695, %v764_v4  ;;  %v2191_v9 = vpop.eup %1604 }
 0x12a   :  { %v987_v11 = vmul.f32 0.5, %v986_v7  ;;  %v716_v16 = vadd.f32 %v706_v10, %v696_v5  ;;  %v1002_v46 = vmul.f32 %v2191_v9, %v983_v56 }
 0x12b   :  { %1610 = vpow2.f32 %v783_v49  ;;  %v576_v25 = vpop.f32.mrf.mxu2 }
 0x12c   :  { %v988_v41 = vsub.f32 1.5, %v987_v11  ;;  %v2196_v20 = vmax.f32 %v716_v16, 1e-24  ;;  %v1607_v48 = vpop.eup %1606  ;;  %v2199_v22 = vmul.f32 %v1002_v46, %v2118_v14  ;;  %v2202_v51 = vmul.f32 %v1002_v46, %v2099_v32 }
 0x12d   :  { %v635_v33 = vpop.f32.mrf.mxu3  ;;  %v1609_v12 = vpop.eup %1608  ;;  %v786_v63 = vmul.f32 0.6931472, %v1607_v48  ;;  %v697_v14 = vmul.f32 %v2194_v6, %v2194_v6 }
 0x12e   :  { %v460_v35 = vpop.f32.mrf.mxu0  ;;  %v989_v30 = vmul.f32 %v1603_v31, %v988_v41  ;;  %1612 = vlog2.f32 %v2196_v20  ;;  %v1005_v42 = vmul.f32 %v1609_v12, %v2179_v44  ;;  %v2210_v47 = vadd.f32 %v635_v33, %v576_v25 }
 0x12f   :  { %v519_v40 = vpop.f32.mrf.mxu1  ;;  %1614 = vrsqrt.f32 %v2196_v20  ;;  %v805_v32 = vmul.f32 0.15, %v786_v63  ;;  %vm1011_vm14 = vweird.f32 %v1609_v12  ;;  %vm1020_vm2 = vweird.f32 %v2196_v20 }
 0x130   :  { %v993_v52 = vsel %vm992_vm13, %v1603_v31, %v989_v30  ;;  %v1006_v34 = vmul.f32 %v1609_v12, %v1005_v42  ;;  %v707_v3 = vmul.f32 %v2210_v47, %v2210_v47  ;;  %v2220_v56 = vadd.f32 %v519_v40, %v460_v35  ;;  %vm1012_vm0 = vmor %vm1010_vm15, %vm1011_vm14 }
 0x131   :  { %v2212_v50 = vpop.eup %1610  ;;  %v815_v4 = vmul.f32 1.442695, %v805_v32 }
 0x132   :  { %v1003_v58 = vmul.f32 %v2212_v50, %v993_v52  ;;  %v1007_v7 = vmul.f32 0.5, %v1006_v34  ;;  %v717_v5 = vadd.f32 %v707_v3, %v697_v14  ;;  %v698_v40 = vmul.f32 %v2220_v56, %v2220_v56 }
 0x133   :  { %1616 = vpow2.f32 %v815_v4  ;;  %v578_v11 = vpop.f32.mrf.mxu2 }
 0x134   :  { %v1613_v10 = vpop.eup %1612  ;;  %v2218_v49 = vmul.f32 %v1003_v58, %v2136_v37  ;;  %v2223_v16 = vmul.f32 %v1003_v58, %v2120_v0  ;;  %v1008_v46 = vsub.f32 1.5, %v1007_v7  ;;  %v2225_v25 = vmax.f32 %v717_v5, 1e-24 }
 0x135   :  { %v1615_v31 = vpop.eup %1614  ;;  %v788_v41 = vmul.f32 0.6931472, %v1613_v10  ;;  %v637_v48 = vpop.f32.mrf.mxu3 }
 0x136   :  { %v463_v33 = vpop.f32.mrf.mxu0  ;;  %v1015_v30 = vmul.f32 %v1615_v31, %v2196_v20  ;;  %v2228_v63 = vadd.f32 %v637_v48, %v578_v11  ;;  %v1009_v42 = vmul.f32 %v1609_v12, %v1008_v46  ;;  %1618 = vlog2.f32 %v2225_v25 }
 0x137   :  { %v522_v37 = vpop.f32.mrf.mxu1  ;;  %v806_v35 = vmul.f32 0.15, %v788_v41  ;;  %1620 = vrsqrt.f32 %v2225_v25  ;;  %vm1021_vm1 = vweird.f32 %v1615_v31  ;;  %vm1030_vm5 = vweird.f32 %v2225_v25 }
 0x138   :  { %v1016_v0 = vmul.f32 %v1615_v31, %v1015_v30  ;;  %v708_v14 = vmul.f32 %v2228_v63, %v2228_v63  ;;  %v1013_v34 = vsel %vm1012_vm0, %v1609_v12, %v1009_v42  ;;  %v2237_v44 = vadd.f32 %v522_v37, %v463_v33  ;;  %vm1022_vm3 = vmor %vm1020_vm2, %vm1021_vm1 }
 0x139   :  { %v817_v32 = vmul.f32 1.442695, %v806_v35  ;;  %v1617_v52 = vpop.eup %1616 }
 0x13a   :  { %v1017_v3 = vmul.f32 0.5, %v1016_v0  ;;  %v718_v58 = vadd.f32 %v708_v14, %v698_v40  ;;  %v1104_v4 = vmul.f32 %v1617_v52, %v1013_v34  ;;  %v835_v7 = vsub.f32 %v2009_v53, %v1617_v52 }
 0x13b   :  { %1622 = vpow2.f32 %v817_v32  ;;  %v581_v11 = vpop.f32.mrf.mxu2 }
 0x13c   :  { %v1018_v5 = vsub.f32 1.5, %v1017_v3  ;;  %v2240_v10 = vmax.f32 %v718_v58, 1e-24  ;;  %v1619_v46 = vpop.eup %1618  ;;  %v1154_v41 = vmul.f32 %v1104_v4, %v2164_v17  ;;  %v845_v30 = vmul.f32 %v835_v7, %v835_v7 }
 0x13d   :  { %v640_v48 = vpop.f32.mrf.mxu3  ;;  %v1124_v12 = vmul.f32 %v1104_v4, %v2148_v57  ;;  %v2244_v42 = vpop.eup %1620  ;;  %v790_v33 = vmul.f32 0.6931472, %v1619_v46  ;;  %v699_v17 = vmul.f32 %v2237_v44, %v2237_v44 }
 0x13e   :  { %v465_v35 = vpop.f32.mrf.mxu0  ;;  %v1019_v0 = vmul.f32 %v1615_v31, %v1018_v5  ;;  %1624 = vlog2.f32 %v2240_v10  ;;  %v1025_v37 = vmul.f32 %v2244_v42, %v2225_v25  ;;  %v2253_v40 = vadd.f32 %v640_v48, %v581_v11  ;;  %855 = vadd.xlane.f32.xlu0 %v845_v30 }
 0x13f   :  { %v524_v53 = vpop.f32.mrf.mxu1  ;;  %1626 = vrsqrt.f32 %v2240_v10  ;;  %v807_v57 = vmul.f32 0.15, %v790_v33  ;;  %v1134_v20 = vsub.f32 %v2018_v2, %v1124_v12  ;;  %v1164_v3 = vsub.f32 %v2013_v60, %v1154_v41 }
 0x140   :  { %v1023_v32 = vsel %vm1022_vm3, %v1615_v31, %v1019_v0  ;;  %v1026_v52 = vmul.f32 %v2244_v42, %v1025_v37  ;;  %v709_v34 = vmul.f32 %v2253_v40, %v2253_v40  ;;  %v2263_v31 = vadd.f32 %v524_v53, %v465_v35 }
 0x141   :  { %v1623_v14 = vpop.eup %1622  ;;  %v819_v4 = vmul.f32 1.442695, %v807_v57  ;;  %v1174_v7 = vmul.f32 %v1134_v20, %v1134_v20  ;;  %v1184_v46 = vmul.f32 %v1164_v3, %v1164_v3  ;;  %vm1031_vm4 = vweird.f32 %v2244_v42 }
 0x142   :  { %v1105_v58 = vmul.f32 %v1623_v14, %v1023_v32  ;;  %v1027_v5 = vmul.f32 0.5, %v1026_v52  ;;  %v719_v11 = vadd.f32 %v709_v34, %v699_v17  ;;  %v836_v48 = vsub.f32 %v2030_v15, %v1623_v14  ;;  %vm1032_vm6 = vmor %vm1030_vm5, %vm1031_vm4 }
 0x143   :  { %1628 = vpow2.f32 %v819_v4  ;;  %v583_v12 = vpop.f32.mrf.mxu2  ;;  %v1194_v57 = vadd.f32 %v1184_v46, %v1174_v7  ;;  %v700_v52 = vmul.f32 %v2263_v31, %v2263_v31  ;;  %vm1040_vm8 = vweird.f32 %v2240_v10 }
 0x144   :  { %v1625_v30 = vpop.eup %1624  ;;  %v1155_v2 = vmul.f32 %v1105_v58, %v2182_v27  ;;  %v1125_v0 = vmul.f32 %v1105_v58, %v2174_v36  ;;  %v1028_v60 = vsub.f32 1.5, %v1027_v5  ;;  %v2268_v37 = vmax.f32 %v719_v11, 1e-24 }
 0x145   :  { %v2266_v33 = vpop.eup %1626  ;;  %v792_v41 = vmul.f32 0.6931472, %v1625_v30  ;;  %v642_v17 = vpop.f32.mrf.mxu3  ;;  %v846_v35 = vmul.f32 %v836_v48, %v836_v48  ;;  %1204 = vadd.xlane.f32.xlu1 %v1194_v57 }
 0x146   :  { %v468_v20 = vpop.f32.mrf.mxu0  ;;  %v1035_v15 = vmul.f32 %v2266_v33, %v2240_v10  ;;  %v2273_v27 = vadd.f32 %v642_v17, %v583_v12  ;;  %v1029_v36 = vmul.f32 %v2244_v42, %v1028_v60  ;;  %1630 = vlog2.f32 %v2268_v37 }
 0x147   :  { %v527_v53 = vpop.f32.mrf.mxu1  ;;  %v808_v14 = vmul.f32 0.15, %v792_v41  ;;  %1632 = vrsqrt.f32 %v2268_v37  ;;  %857 = vadd.xlane.f32.xlu0 %v846_v35  ;;  %v1135_v25 = vsub.f32 %v2039_v26, %v1125_v0  ;;  %v1165_v58 = vsub.f32 %v2036_v24, %v1155_v2 }
 0x148   :  { %v1036_v32 = vmul.f32 %v2266_v33, %v1035_v15  ;;  %v710_v34 = vmul.f32 %v2273_v27, %v2273_v27  ;;  %v1033_v7 = vsel %vm1032_vm6, %v2244_v42, %v1029_v36  ;;  %v2289_v46 = vadd.f32 %v527_v53, %v468_v20 }
 0x149   :  { %v821_v3 = vmul.f32 1.442695, %v808_v14  ;;  %v1629_v4 = vpop.eup %1628  ;;  %v1175_v30 = vmul.f32 %v1135_v25, %v1135_v25  ;;  %v1185_v12 = vmul.f32 %v1165_v58, %v1165_v58  ;;  %vm1041_vm7 = vweird.f32 %v2266_v33 }
 0x14a   :  { %v1037_v5 = vmul.f32 0.5, %v1036_v32  ;;  %v720_v11 = vadd.f32 %v710_v34, %v700_v52  ;;  %v1106_v48 = vmul.f32 %v1629_v4, %v1033_v7  ;;  %v837_v26 = vsub.f32 %v2055_v43, %v1629_v4  ;;  %vm1042_vm9 = vmor %vm1040_vm8, %vm1041_vm7 }
 0x14b   :  { %1634 = vpow2.f32 %v821_v3  ;;  %v586_v57 = vpop.f32.mrf.mxu2  ;;  %v1195_v42 = vadd.f32 %v1185_v12, %v1175_v30  ;;  %vm1050_vm11 = vweird.f32 %v2268_v37 }
 0x14c   :  { %v1038_v60 = vsub.f32 1.5, %v1037_v5  ;;  %v2292_v41 = vmax.f32 %v720_v11, 1e-24  ;;  %v1631_v24 = vpop.eup %1630  ;;  %v1156_v2 = vmul.f32 %v1106_v48, %v2210_v47  ;;  %v1126_v20 = vmul.f32 %v1106_v48, %v2194_v6 }
 0x14d   :  { %v645_v0 = vpop.f32.mrf.mxu3  ;;  %v2297_v15 = vpop.eup %1632  ;;  %v794_v53 = vmul.f32 0.6931472, %v1631_v24  ;;  %v701_v6 = vmul.f32 %v2289_v46, %v2289_v46  ;;  %1206 = vadd.xlane.f32.xlu1 %v1195_v42  ;;  %v847_v32 = vmul.f32 %v837_v26, %v837_v26 }
 0x14e   :  { %v470_v17 = vpop.f32.mrf.mxu0  ;;  %v1039_v35 = vmul.f32 %v2266_v33, %v1038_v60  ;;  %1636 = vlog2.f32 %v2292_v41  ;;  %v1045_v43 = vmul.f32 %v2297_v15, %v2268_v37  ;;  %v2309_v47 = vadd.f32 %v645_v0, %v586_v57 }
 0x14f   :  { %v529_v36 = vpop.f32.mrf.mxu1  ;;  %1638 = vrsqrt.f32 %v2292_v41  ;;  %v809_v14 = vmul.f32 0.15, %v794_v53  ;;  %v1136_v25 = vsub.f32 %v2064_v59, %v1126_v20  ;;  %v1166_v58 = vsub.f32 %v2061_v55, %v1156_v2  ;;  %859 = vadd.xlane.f32.xlu2 %v847_v32 }
 0x150   :  { %v1043_v10 = vsel %vm1042_vm9, %v2266_v33, %v1039_v35  ;;  %v1046_v34 = vmul.f32 %v2297_v15, %v1045_v43  ;;  %v711_v3 = vmul.f32 %v2309_v47, %v2309_v47  ;;  %v2317_v5 = vadd.f32 %v529_v36, %v470_v17 }
 0x151   :  { %v1635_v52 = vpop.eup %1634  ;;  %v823_v7 = vmul.f32 1.442695, %v809_v14  ;;  %v1176_v30 = vmul.f32 %v1136_v25, %v1136_v25  ;;  %v1186_v12 = vmul.f32 %v1166_v58, %v1166_v58  ;;  %vm1051_vm10 = vweird.f32 %v2297_v15 }
 0x152   :  { %v1107_v4 = vmul.f32 %v1635_v52, %v1043_v10  ;;  %v838_v11 = vsub.f32 %v2076_v8, %v1635_v52  ;;  %v1047_v33 = vmul.f32 0.5, %v1046_v34  ;;  %v721_v48 = vadd.f32 %v711_v3, %v701_v6  ;;  %vm1052_vm12 = vmor %vm1050_vm11, %vm1051_vm10 }
 0x153   :  { %1640 = vpow2.f32 %v823_v7  ;;  %v588_v26 = vpop.f32.mrf.mxu2  ;;  %v1196_v8 = vadd.f32 %v1186_v12, %v1176_v30  ;;  %v702_v10 = vmul.f32 %v2317_v5, %v2317_v5  ;;  %vm1060_vm13 = vweird.f32 %v2292_v41 }
 0x154   :  { %v1637_v60 = vpop.eup %1636  ;;  %v1157_v57 = vmul.f32 %v1107_v4, %v2228_v63  ;;  %v848_v24 = vmul.f32 %v838_v11, %v838_v11  ;;  %v1127_v59 = vmul.f32 %v1107_v4, %v2220_v56  ;;  %v1048_v2 = vsub.f32 1.5, %v1047_v33 }
 0x155   :  { %v2322_v55 = vpop.eup %1638  ;;  %v796_v42 = vmul.f32 0.6931472, %v1637_v60  ;;  %v2324_v0 = vmax.f32 %v721_v48, 1e-24  ;;  %v647_v17 = vpop.f32.mrf.mxu3 }
 0x156   :  { %v473_v20 = vpop.f32.mrf.mxu0  ;;  %v1055_v35 = vmul.f32 %v2322_v55, %v2292_v41  ;;  %v2329_v63 = vadd.f32 %v647_v17, %v588_v26  ;;  %861 = vadd.xlane.f32.xlu0 %v848_v24  ;;  %v1137_v56 = vsub.f32 %v2085_v21, %v1127_v59  ;;  %v1049_v36 = vmul.f32 %v2297_v15, %v1048_v2 }
 0x157   :  { %v532_v53 = vpop.f32.mrf.mxu1  ;;  %v810_v43 = vmul.f32 0.15, %v796_v42  ;;  %1642 = vlog2.f32 %v2324_v0  ;;  %v1167_v21 = vsub.f32 %v2082_v19, %v1157_v57  ;;  %1208 = vadd.xlane.f32.xlu2 %v1196_v8  ;;  %vm1061_vm14 = vweird.f32 %v2322_v55 }
 0x158   :  { %v1056_v6 = vmul.f32 %v2322_v55, %v1055_v35  ;;  %1644 = vrsqrt.f32 %v2324_v0  ;;  %v712_v14 = vmul.f32 %v2329_v63, %v2329_v63  ;;  %v1177_v52 = vmul.f32 %v1137_v56, %v1137_v56  ;;  %vm1062_vm15 = vmor %vm1060_vm13, %vm1061_vm14 }
 0x159   :  { %v825_v32 = vmul.f32 1.442695, %v810_v43  ;;  %v1641_v34 = vpop.eup %1640  ;;  %v1053_v37 = vsel %vm1052_vm12, %v2297_v15, %v1049_v36  ;;  %v2343_v58 = vadd.f32 %v532_v53, %v473_v20  ;;  %v1187_v7 = vmul.f32 %v1167_v21, %v1167_v21 }
 0x15a   :  { %v1057_v3 = vmul.f32 0.5, %v1056_v6  ;;  %v722_v25 = vadd.f32 %v712_v14, %v702_v10  ;;  %v1108_v4 = vmul.f32 %v1641_v34, %v1053_v37  ;;  %v839_v11 = vsub.f32 %v2101_v39, %v1641_v34 }
 0x15b   :  { %1646 = vpow2.f32 %v825_v32  ;;  %v591_v19 = vpop.f32.mrf.mxu2  ;;  %v1197_v15 = vadd.f32 %v1187_v7, %v1177_v52  ;;  %vm1070_vm0 = vweird.f32 %v2324_v0  ;;  %vm104_vm12 = vcmask 0  }
 0x15c   :  { %v1058_v33 = vsub.f32 1.5, %v1057_v3  ;;  %v2347_v48 = vmax.f32 %v722_v25, 1e-24  ;;  %v1158_v12 = vmul.f32 %v1108_v4, %v2253_v40  ;;  %v1128_v57 = vmul.f32 %v1108_v4, %v2237_v44 }
 0x15d   :  { %v1643_v30 = vpop.eup %1642  ;;  %v650_v60 = vpop.f32.mrf.mxu3  ;;  %v849_v59 = vmul.f32 %v839_v11, %v839_v11  ;;  %v703_v40 = vmul.f32 %v2343_v58, %v2343_v58  ;;  %1210 = vadd.xlane.f32.xlu1 %v1197_v15 }
 0x15e   :  { %v2352_v26 = vpop.eup %1644  ;;  %v1059_v24 = vmul.f32 %v2322_v55, %v1058_v33  ;;  %v798_v39 = vmul.f32 0.6931472, %v1643_v30  ;;  %1648 = vlog2.f32 %v2347_v48  ;;  %v2361_v42 = vadd.f32 %v650_v60, %v591_v19  ;;  %v475_v44 = vpop.f32.mrf.mxu0 }
 0x15f   :  { %v1065_v2 = vmul.f32 %v2352_v26, %v2324_v0  ;;  %1650 = vrsqrt.f32 %v2347_v48  ;;  %v534_v17 = vpop.f32.mrf.mxu1  ;;  %v1138_v20 = vsub.f32 %v2110_v1, %v1128_v57  ;;  %v1168_v43 = vsub.f32 %v2107_v54, %v1158_v12  ;;  %863 = vadd.xlane.f32.xlu2 %v849_v59 }
 0x160   :  { %v811_v8 = vmul.f32 0.15, %v798_v39  ;;  %v1063_v53 = vsel %vm1062_vm15, %v2322_v55, %v1059_v24  ;;  %v713_v36 = vmul.f32 %v2361_v42, %v2361_v42  ;;  %v2373_v14 = vadd.f32 %v534_v17, %v475_v44 }
 0x161   :  { %v1647_v35 = vpop.eup %1646  ;;  %v1066_v56 = vmul.f32 %v2352_v26, %v1065_v2  ;;  %v1178_v41 = vmul.f32 %v1138_v20, %v1138_v20  ;;  %v1188_v52 = vmul.f32 %v1168_v43, %v1168_v43  ;;  %vm1071_vm1 = vweird.f32 %v2352_v26 }
 0x162   :  { %v1109_v6 = vmul.f32 %v1647_v35, %v1063_v53  ;;  %v827_v10 = vmul.f32 1.442695, %v811_v8  ;;  %v723_v21 = vadd.f32 %v713_v36, %v703_v40  ;;  %v840_v1 = vsub.f32 %v2122_v61, %v1647_v35  ;;  %vm1072_vm2 = vmor %vm1070_vm0, %vm1071_vm1 }
 0x163   :  { %v1067_v32 = vmul.f32 0.5, %v1066_v56  ;;  %v593_v37 = vpop.f32.mrf.mxu2  ;;  %v1198_v11 = vadd.f32 %v1188_v52, %v1178_v41  ;;  %vm1080_vm4 = vweird.f32 %v2347_v48 }
 0x164   :  { %v1649_v34 = vpop.eup %1648  ;;  %v1159_v55 = vmul.f32 %v1109_v6, %v2273_v27  ;;  %1652 = vpow2.f32 %v827_v10  ;;  %v1129_v54 = vmul.f32 %v1109_v6, %v2263_v31  ;;  %v2379_v7 = vmax.f32 %v723_v21, 1e-24 }
 0x165   :  { %v1651_v3 = vpop.eup %1650  ;;  %v1068_v25 = vsub.f32 1.5, %v1067_v32  ;;  %v800_v4 = vmul.f32 0.6931472, %v1649_v34  ;;  %v652_v33 = vpop.f32.mrf.mxu3  ;;  %v850_v27 = vmul.f32 %v840_v1, %v840_v1  ;;  %v704_v31 = vmul.f32 %v2373_v14, %v2373_v14  ;;  %1212 = vadd.xlane.f32.xlu0 %v1198_v11 }
 0x166   :  { %v1075_v61 = vmul.f32 %v1651_v3, %v2347_v48  ;;  %v2383_v19 = vadd.f32 %v652_v33, %v593_v37  ;;  %1654 = vlog2.f32 %v2379_v7  ;;  %v1139_v57 = vsub.f32 %v2131_v28, %v1129_v54 }
 0x167   :  { %v1069_v30 = vmul.f32 %v2352_v26, %v1068_v25  ;;  %v812_v12 = vmul.f32 0.15, %v800_v4  ;;  %1656 = vrsqrt.f32 %v2379_v7  ;;  %865 = vadd.xlane.f32.xlu1 %v850_v27  ;;  %v1169_v39 = vsub.f32 %v2128_v23, %v1159_v55 }
 0x168   :  { %v1076_v15 = vmul.f32 %v1651_v3, %v1075_v61  ;;  %v714_v60 = vmul.f32 %v2383_v19, %v2383_v19  ;;  %v1179_v17 = vmul.f32 %v1139_v57, %v1139_v57  ;;  %vm1081_vm3 = vweird.f32 %v1651_v3 }
 0x169   :  { %v829_v24 = vmul.f32 1.442695, %v812_v12  ;;  %v1073_v2 = vsel %vm1072_vm2, %v2352_v26, %v1069_v30  ;;  %v1189_v20 = vmul.f32 %v1169_v39, %v1169_v39  ;;  %vm1082_vm5 = vmor %vm1080_vm4, %vm1081_vm3  ;;  %vm1090_vm7 = vweird.f32 %v2379_v7 }
 0x16a   :  { %v1653_v59 = vpop.eup %1652  ;;  %v1077_v40 = vmul.f32 0.5, %v1076_v15  ;;  %v724_v44 = vadd.f32 %v714_v60, %v704_v31 }
 0x16b   :  { %v1110_v8 = vmul.f32 %v1653_v59, %v1073_v2  ;;  %1658 = vpow2.f32 %v829_v24  ;;  %v841_v35 = vsub.f32 %v2145_v45, %v1653_v59  ;;  %v1199_v36 = vadd.f32 %v1189_v20, %v1179_v17 }
 0x16c   :  { %v1078_v53 = vsub.f32 1.5, %v1077_v40  ;;  %v2398_v28 = vmax.f32 %v724_v44, 1e-24  ;;  %v1655_v0 = vpop.eup %1654 }
 0x16d   :  { %v1160_v56 = vmul.f32 %v1110_v8, %v2309_v47  ;;  %v851_v23 = vmul.f32 %v841_v35, %v841_v35  ;;  %v1130_v43 = vmul.f32 %v1110_v8, %v2289_v46  ;;  %v1657_v26 = vpop.eup %1656  ;;  %v802_v10 = vmul.f32 0.6931472, %v1655_v0  ;;  %1214 = vadd.xlane.f32.xlu2 %v1199_v36 }
 0x16e   :  { %v1079_v6 = vmul.f32 %v1651_v3, %v1078_v53  ;;  %1660 = vlog2.f32 %v2398_v28  ;;  %v1085_v45 = vmul.f32 %v1657_v26, %v2379_v7  ;;  %vm1091_vm6 = vweird.f32 %v1657_v26 }
 0x16f   :  { %1662 = vrsqrt.f32 %v2398_v28  ;;  %867 = vadd.xlane.f32.xlu0 %v851_v23  ;;  %v1140_v41 = vsub.f32 %v2156_v62, %v1130_v43  ;;  %v813_v47 = vmul.f32 0.15, %v802_v10  ;;  %v1170_v46 = vsub.f32 %v2153_v29, %v1160_v56  ;;  %vm1092_vm8 = vmor %vm1090_vm7, %vm1091_vm6 }
 0x170   :  { %v1083_v21 = vsel %vm1082_vm5, %v1651_v3, %v1079_v6  ;;  %v1086_v52 = vmul.f32 %v1657_v26, %v1085_v45  ;;  %vm1100_vm10 = vweird.f32 %v2398_v28 }
 0x171   :  { %v1659_v32 = vpop.eup %1658  ;;  %v1180_v1 = vmul.f32 %v1140_v41, %v1140_v41  ;;  %v831_v55 = vmul.f32 1.442695, %v813_v47  ;;  %v1190_v48 = vmul.f32 %v1170_v46, %v1170_v46 }
 0x172   :  { %v1111_v34 = vmul.f32 %v1659_v32, %v1083_v21  ;;  %v842_v37 = vsub.f32 %v2166_v18, %v1659_v32  ;;  %v1087_v54 = vmul.f32 0.5, %v1086_v52  ;;  %v1722_v32 = vmov 0.0  }
 0x173   :  { %1664 = vpow2.f32 %v831_v55  ;;  %v1200_v62 = vadd.f32 %v1190_v48, %v1180_v1  ;;  %105 = vst.msk [vmem:[#allocation4] sm:$0x1] %vm104_vm12, %v1722_v32 }
 0x174   :  { %v1661_v25 = vpop.eup %1660  ;;  %v1161_v4 = vmul.f32 %v1111_v34, %v2329_v63  ;;  %v852_v11 = vmul.f32 %v842_v37, %v842_v37  ;;  %v1088_v61 = vsub.f32 1.5, %v1087_v54  ;;  %v1131_v29 = vmul.f32 %v1111_v34, %v2317_v5  ;;  %106 = vst.msk [vmem:[#allocation6] sm:$0x1] %vm104_vm12, %v1722_v32 }
 0x175   :  { %v1663_v33 = vpop.eup %1662  ;;  %v804_v27 = vmul.f32 0.6931472, %v1661_v25  ;;  %1216 = vadd.xlane.f32.xlu1 %v1200_v62 }
 0x176   :  { %v1095_v3 = vmul.f32 %v1663_v33, %v2398_v28  ;;  %v1171_v30 = vsub.f32 %v2172_v38, %v1161_v4  ;;  %v1089_v12 = vmul.f32 %v1657_v26, %v1088_v61  ;;  %869 = vadd.xlane.f32.xlu2 %v852_v11  ;;  %v1141_v31 = vsub.f32 %v2177_v13, %v1131_v29 }
 0x177   :  { %v814_v18 = vmul.f32 0.15, %v804_v27  ;;  %vm1101_vm9 = vweird.f32 %v1663_v33 }
 0x178   :  { %v1096_v63 = vmul.f32 %v1663_v33, %v1095_v3  ;;  %v1191_v15 = vmul.f32 %v1171_v30, %v1171_v30  ;;  %v1181_v57 = vmul.f32 %v1141_v31, %v1141_v31  ;;  %v1093_v5 = vsel %vm1092_vm8, %v1657_v26, %v1089_v12  ;;  %vm1102_vm11 = vmor %vm1100_vm10, %vm1101_vm9 }
 0x179   :  { %v833_v60 = vmul.f32 1.442695, %v814_v18  ;;  %v1665_v24 = vpop.eup %1664 }
 0x17a   :  { %v1097_v39 = vmul.f32 0.5, %v1096_v63  ;;  %v1112_v59 = vmul.f32 %v1665_v24, %v1093_v5  ;;  %v1201_v2 = vadd.f32 %v1191_v15, %v1181_v57  ;;  %v843_v38 = vsub.f32 %v2191_v9, %v1665_v24 }
 0x17b   :  { %1666 = vpow2.f32 %v833_v60 }
 0x17c   :  { %v1098_v40 = vsub.f32 1.5, %v1097_v39  ;;  %v1162_v44 = vmul.f32 %v1112_v59, %v2361_v42  ;;  %1218 = vadd.xlane.f32.xlu0 %v1201_v2  ;;  %v853_v13 = vmul.f32 %v843_v38, %v843_v38  ;;  %v1132_v7 = vmul.f32 %v1112_v59, %v2343_v58 }
 0x17e   :  { %v1099_v17 = vmul.f32 %v1663_v33, %v1098_v40  ;;  %871 = vadd.xlane.f32.xlu1 %v853_v13  ;;  %v1142_v8 = vsub.f32 %v2202_v51, %v1132_v7  ;;  %v1172_v20 = vsub.f32 %v2199_v22, %v1162_v44 }
 0x180   :  { %v1103_v53 = vsel %vm1102_vm11, %v1663_v33, %v1099_v17  ;;  %v1182_v9 = vmul.f32 %v1142_v8, %v1142_v8  ;;  %v1192_v0 = vmul.f32 %v1172_v20, %v1172_v20  ;;  %v875_v17 = vld [vmem:[#allocation4] sm:$0x1] }
 0x181   :  { %v1667_v35 = vpop.eup %1666 }
 0x182   :  { %v1113_v56 = vmul.f32 %v1667_v35, %v1103_v53  ;;  %v844_v42 = vsub.f32 %v2212_v50, %v1667_v35  ;;  %v1202_v36 = vadd.f32 %v1192_v0, %v1182_v9  ;;  %v1224_v0 = vld [vmem:[#allocation6] sm:$0x1] }
 0x184   :  { %v1163_v23 = vmul.f32 %v1113_v56, %v2383_v19  ;;  %v854_v58 = vmul.f32 %v844_v42, %v844_v42  ;;  %v1133_v43 = vmul.f32 %v1113_v56, %v2373_v14  ;;  %1220 = vadd.xlane.f32.xlu2 %v1202_v36 }
 0x186   :  { %873 = vadd.xlane.f32.xlu0 %v854_v58  ;;  %v1143_v51 = vsub.f32 %v2223_v16, %v1133_v43  ;;  %v1173_v22 = vsub.f32 %v2218_v49, %v1163_v23 }
 0x188   :  { %v1183_v28 = vmul.f32 %v1143_v51, %v1143_v51  ;;  %v1193_v26 = vmul.f32 %v1173_v22, %v1173_v22 }
 0x18a   :  { %v1203_v6 = vadd.f32 %v1193_v26, %v1183_v28 }
 0x18c   :  { %1222 = vadd.xlane.f32.xlu1 %v1203_v6 }
 0x1b1   :  { %v856_v10 = vpop.xlane.xlu0 %855 }
 0x1b8   :  { %v1205_v45 = vpop.xlane.xlu1 %1204 }
 0x1ba   :  { %v858_v50 = vpop.xlane.xlu0 %857 }
 0x1bb   :  { %v876_v1 = vadd.f32 %v858_v50, %v856_v10 }
 0x1c0   :  { %v1207_v47 = vpop.xlane.xlu1 %1206 }
 0x1c1   :  { %v1225_v54 = vadd.f32 %v1207_v47, %v1205_v45 }
 0x1c2   :  { %v860_v41 = vpop.xlane.xlu2 %859 }
 0x1c3   :  { %v877_v55 = vadd.f32 %v876_v1, %v860_v41 }
 0x1c9   :  { %v862_v19 = vpop.xlane.xlu0 %861 }
 0x1ca   :  { %v1209_v46 = vpop.xlane.xlu2 %1208  ;;  %v878_v37 = vadd.f32 %v877_v55, %v862_v19 }
 0x1cb   :  { %v1226_v62 = vadd.f32 %v1225_v54, %v1209_v46 }
 0x1d0   :  { %v1211_v16 = vpop.xlane.xlu1 %1210 }
 0x1d1   :  { %v1227_v61 = vadd.f32 %v1226_v62, %v1211_v16 }
 0x1d2   :  { %v864_v49 = vpop.xlane.xlu2 %863 }
 0x1d3   :  { %v879_v25 = vadd.f32 %v878_v37, %v864_v49 }
 0x1d8   :  { %v1213_v14 = vpop.xlane.xlu0 %1212 }
 0x1d9   :  { %v1228_v3 = vadd.f32 %v1227_v61, %v1213_v14 }
 0x1da   :  { %v866_v21 = vpop.xlane.xlu1 %865 }
 0x1db   :  { %v880_v11 = vadd.f32 %v879_v25, %v866_v21 }
 0x1e0   :  { %v1215_v34 = vpop.xlane.xlu2 %1214 }
 0x1e1   :  { %v1229_v12 = vadd.f32 %v1228_v3, %v1215_v34 }
 0x1e2   :  { %v868_v52 = vpop.xlane.xlu0 %867 }
 0x1e3   :  { %v881_v27 = vadd.f32 %v880_v11, %v868_v52 }
 0x1e8   :  { %v1217_v48 = vpop.xlane.xlu1 %1216 }
 0x1e9   :  { %v870_v33 = vpop.xlane.xlu2 %869  ;;  %v1230_v63 = vadd.f32 %v1229_v12, %v1217_v48 }
 0x1ea   :  { %v882_v30 = vadd.f32 %v881_v27, %v870_v33 }
 0x1ef   :  { %v1219_v4 = vpop.xlane.xlu0 %1218 }
 0x1f0   :  { %v1231_v57 = vadd.f32 %v1230_v63, %v1219_v4 }
 0x1f1   :  { %v872_v29 = vpop.xlane.xlu1 %871 }
 0x1f2   :  { %v883_v18 = vadd.f32 %v882_v30, %v872_v29 }
 0x1f7   :  { %v1221_v60 = vpop.xlane.xlu2 %1220 }
 0x1f8   :  { %v1232_v5 = vadd.f32 %v1231_v57, %v1221_v60 }
 0x1f9   :  { %v874_v31 = vpop.xlane.xlu0 %873 }
 0x1fa   :  { %v884_v15 = vadd.f32 %v883_v18, %v874_v31 }
 0x1fc   :  { %v885_v24 = vrot.slane %v884_v15, 4 }
 0x1fe   :  { %v886_v39 = vadd.f32 %v885_v24, %v884_v15 }
 0x1ff   :  { %v1223_v59 = vpop.xlane.xlu1 %1222 }
 0x200   :  { %v887_v2 = vrot.slane %v886_v39, 2  ;;  %v1233_v38 = vadd.f32 %v1232_v5, %v1223_v59 }
 0x202   :  { %v888_v40 = vadd.f32 %v887_v2, %v886_v39  ;;  %v1234_v44 = vrot.slane %v1233_v38, 4 }
 0x204   :  { %v889_v13 = vrot.slane %v888_v40, 1  ;;  %v1235_v7 = vadd.f32 %v1234_v44, %v1233_v38 }
 0x206   :  { %v890_v8 = vadd.f32 %v889_v13, %v888_v40  ;;  %v1236_v20 = vrot.slane %v1235_v7, 2 }
 0x208   :  { %v891_v35 = vadd.f32 %v890_v8, %v875_v17  ;;  %v1237_v53 = vadd.f32 %v1236_v20, %v1235_v7 }
 0x20a   :  { %893 = vst.msk [vmem:[#allocation4] sm:$0x1] %vm104_vm12, %v891_v35  ;;  %v1238_v9 = vrot.slane %v1237_v53, 1 }
 0x20b   :  { %1252 = dma.vmem_to_hbm [thread:$0]  %s1248_s24, 16, %s1250_s2, [#allocation5]  }
 0x20c   :  { %v1239_v56 = vadd.f32 %v1238_v9, %v1237_v53 }
 0x20e   :  { %v1240_v42 = vadd.f32 %v1239_v56, %v1224_v0 }
 0x210   :  { %1241 = vst.msk [vmem:[#allocation6] sm:$0x1] %vm104_vm12, %v1240_v42 }
 0x211   :  { %1263 = dma.vmem_to_hbm [thread:$0]  %s1259_s28, 16, %s1261_s5, [#allocation7]  }
 0x212   :  { %1718 = dma.done.wait [#allocation5], 16  }
 0x213   :  { %1719 = vsyncadd [#allocation5], 4294967280 }
 0x214   :  { %1720 = dma.done.wait [#allocation7], 16  }
 0x215   :  { %1721 = vsyncadd [#allocation7], 4294967280 }
 0x216   :  { %1272 = vsyncpa [#allocation5], 1 }
 0x217   :  { %1273 = vsyncpa [#allocation7], 1 }
 0x218   :  { %1274 = vsyncmov [#allocation3] }
 0x21b   :  { %s1275_s3 = vpop.sfrf %1274 }
 0x21c   :  { %p1492_p0 = scmp.ne.s32.totalorder %s1275_s3, 0 }
 0x21e   :  { %1279 = shalt.err (%p1492_p0)  }

</bundles_post_ra>
